<compile_context>
chip_gen: v5e
topology: v5e:2x2
jax: 0.10.0
libtpu: 0.0.40
codegen_flags: <defaults>
</compile_context>

<pallas_src>
import numpy as np

import jax
import jax.numpy as jnp
from jax import lax
from jax.experimental import pallas as pl
from jax.experimental.pallas import tpu as pltpu


def _round_up(x, m):
    return ((x + m - 1) // m) * m


def _cdiv(a, b):
    return -(-a // b)


def _make_kernel(wp2, rh, n_rb):
    """Kernel for one (c2-block, batch, strip) grid point.

    x_ref     : (LX, C1)          bf16  flattened zero-padded (TH+2, W+2) strip (+8 slack rows)
    w_ref     : (9, C1, TC2)      bf16  fused 3x3 taps (tap = kh*3+kw), one C2 block
    scale_ref : (1, TC2)          f32   BN scale  gamma * rsqrt(var+eps)
    shift_ref : (1, TC2)          f32   BN shift  beta - mean*scale
    o_ref     : (TH*(W+2), TC2)         flattened padded-width output strip (lane-dense)
    """
    m = rh * wp2  # GEMM M dimension per row block

    def kernel(x_ref, w_ref, scale_ref, shift_ref, o_ref):
        scale = scale_ref[...]
        shift = shift_ref[...]
        tc2 = o_ref.shape[-1]

        def row_block(r, carry):
            base = r * m                                   # flat output offset of this row block
            acc = jnp.zeros((m, tc2), jnp.float32)
            for dh in range(3):                            # 9 tap-GEMMs, unrolled at trace time
                for dw in range(3):
                    xs = x_ref[pl.ds(base + dh * wp2 + dw, m), :]      # contiguous (M, C1) slice
                    acc = acc + jnp.dot(xs, w_ref[dh * 3 + dw],
                                        preferred_element_type=jnp.float32)
            y = acc * scale + shift                        # fused eval-mode BatchNorm
            y = y * pl.reciprocal(1.0 + jnp.exp(-y), approx=True)      # SiLU (EUP exp + recip)
            o_ref[pl.ds(base, m), :] = y.astype(o_ref.dtype)
            return carry

        lax.fori_loop(0, n_rb, row_block, 0, unroll=(n_rb <= 8))

    return kernel


def conv2_bn_silu(x_nchw, w3, w1, bn_gamma, bn_beta, bn_mean, bn_var, *,
                  eps=1e-5, out_dtype=None):
    """Conv2 forward: SiLU(BN(conv3x3(x, p=1) + conv1x1(x))).  NCHW in / NCHW out.

    w3: (C2, C1, 3, 3) main 3x3 weight (OIHW);  w1: (C2, C1, 1, 1) parallel 1x1 weight.
    Only the module defaults are supported: k=3, s=1, p=autopad=1, g=1, d=1, eval-mode BN.
    """
    x_nchw = jnp.asarray(x_nchw)
    w3 = jnp.asarray(w3); w1 = jnp.asarray(w1)
    bn_gamma = jnp.asarray(bn_gamma); bn_beta = jnp.asarray(bn_beta)
    bn_mean = jnp.asarray(bn_mean); bn_var = jnp.asarray(bn_var)

    N, C1, H, W = x_nchw.shape
    C2 = w3.shape[0]
    assert w3.shape == (C2, C1, 3, 3), "kernel specialized to k=3, s=1, p=1, g=1, d=1"
    assert w1.shape == (C2, C1, 1, 1)
    # TODO(synk): stride>1, groups>1, dilation>1 Conv2 variants and training-mode BN
    #             (batch statistics + running-stat updates) are not modeled.

    out_dtype = jnp.dtype(out_dtype) if out_dtype is not None else x_nchw.dtype
    out_bytes = out_dtype.itemsize

    # ---------------- per-generation tiling parameters ----------------
    try:
        vmem_cap = int(pltpu.get_tpu_info().vmem_capacity_bytes)
    except Exception:
        vmem_cap = 64 << 20                       # conservative (v7x)
    try:
        kind = jax.devices()[0].device_kind.lower()
    except Exception:
        kind = ""
    is_v5 = "v5" in kind

    C2pad = _round_up(C2, 128)                    # lane-dense output channels (unmasked vst)
    if (not is_v5) and C1 >= 128 and C2pad % 256 == 0:
        tc2 = 256                                 # fill the 256-wide MXU on v6e/v7x
    else:
        tc2 = 128
    n_c2 = C2pad // tc2
    # MXU M target per GEMM; capped so the f32 accumulator stays around <=128 KiB.
    m_target = 128 if (is_v5 or tc2 == 256) else 256

    Wp2 = W + 2
    c1_lanes = _round_up(C1, 128)                 # VMEM lane padding of the activation

    usable_vmem = vmem_cap * 3 // 4               # ~48 MiB v7x, ~96 MiB v5e/v6e
    block_budget = max(usable_vmem - (8 << 20), 4 << 20)

    def vmem_need(th):
        lx = (th + 2) * Wp2 + 8
        x_b = 2 * _round_up(lx, 16) * c1_lanes * 2           # x strip, bf16, double-buffered
        o_b = 2 * _round_up(th * Wp2, 8) * tc2 * out_bytes    # out strip, double-buffered
        w_b = 2 * 9 * max(C1, 16) * tc2 * 2                   # fused weights
        s_b = 4 * 8 * tc2 * 4                                 # BN scale/shift
        return x_b + o_b + w_b + s_b

    TH = H
    while TH > 1 and vmem_need(TH) > block_budget:
        TH = max(1, TH // 2)
    n_h = _cdiv(H, TH)
    TH = _cdiv(H, n_h)                            # rebalance strip heights
    H_pad = n_h * TH

    # Row-block height: RH output rows per GEMM so M = RH*(W+2) >= m_target, with RH | TH.
    rh0 = max(1, _cdiv(m_target, Wp2))
    divisors = [d for d in range(1, TH + 1) if TH % d == 0]
    cand = [d for d in divisors if d >= rh0]
    RH = min(cand) if cand else TH
    n_rb = TH // RH
    LX = (TH + 2) * Wp2 + 8                       # +8 slack rows: junk-column taps read 2 past the strip

    # ---------------- weight / BN folding (once, outside the kernel) ----------------
    w_fused = w3.astype(jnp.float32).at[:, :, 1, 1].add(w1[:, :, 0, 0].astype(jnp.float32))
    w_taps = jnp.transpose(w_fused, (2, 3, 1, 0)).reshape(9, C1, C2)       # (kh*3+kw, c1, c2)
    if C2pad != C2:
        w_taps = jnp.pad(w_taps, ((0, 0), (0, 0), (0, C2pad - C2)))
    w_taps = w_taps.astype(jnp.bfloat16)
    # TODO(synk): small-C1 layers (first conv, narrow necks) would benefit from an im2col
    #             path that folds the 9 taps into the contraction dim (K = 9*C1).

    scale = bn_gamma.astype(jnp.float32) * lax.rsqrt(bn_var.astype(jnp.float32) + eps)
    shift = bn_beta.astype(jnp.float32) - bn_mean.astype(jnp.float32) * scale
    if C2pad != C2:
        scale = jnp.pad(scale, (0, C2pad - C2))
        shift = jnp.pad(shift, (0, C2pad - C2))
    scale = scale.reshape(1, C2pad)
    shift = shift.reshape(1, C2pad)

    # ---------------- activation prep: NCHW -> padded NHWC strips (2-row halo) ----------------
    # TODO(synk): a real network should keep NHWC end-to-end; this per-call NCHW<->NHWC round
    #             trip plus strip materialization is wrapper-side traffic XLA can mostly fuse.
    x_nhwc = jnp.transpose(x_nchw, (0, 2, 3, 1)).astype(jnp.bfloat16)
    x_padded = jnp.pad(x_nhwc, ((0, 0), (1, 1 + H_pad - H), (1, 1), (0, 0)))
    strips = jnp.stack([x_padded[:, i * TH:i * TH + TH + 2] for i in range(n_h)], axis=1)
    x_flat = strips.reshape(N, n_h, (TH + 2) * Wp2, C1)
    x_flat = jnp.pad(x_flat, ((0, 0), (0, 0), (0, 8), (0, 0)))              # -> (N, n_h, LX, C1)

    # ---------------- pallas_call ----------------
    flops = 2 * N * H_pad * Wp2 * 9 * C1 * C2pad
    bytes_accessed = (n_c2 * x_flat.size * 2 + w_taps.size * 2 + 8 * C2pad
                      + N * n_h * TH * Wp2 * C2pad * out_bytes)
    cost = pl.CostEstimate(flops=flops, transcendentals=N * H_pad * Wp2 * C2pad,
                           bytes_accessed=bytes_accessed)
    vmem_limit = int(min(max(vmem_need(TH) + (8 << 20), 32 << 20), usable_vmem))

    kernel = _make_kernel(Wp2, RH, n_rb)
    # Grid: c2 blocks OUTERMOST -> fused weights / BN params are the resident operands
    # (re-DMA'd only when the c2 block changes); activation strips stream over (batch, strip).
    out = pl.pallas_call(
        kernel,
        out_shape=jax.ShapeDtypeStruct((N, n_h, TH * Wp2, C2pad), out_dtype),
        grid=(n_c2, N, n_h),
        in_specs=[
            pl.BlockSpec((None, None, LX, C1), lambda j, n, i: (n, i, 0, 0)),
            pl.BlockSpec((9, C1, tc2), lambda j, n, i: (0, 0, j)),
            pl.BlockSpec((1, tc2), lambda j, n, i: (0, j)),
            pl.BlockSpec((1, tc2), lambda j, n, i: (0, j)),
        ],
        out_specs=pl.BlockSpec((None, None, TH * Wp2, tc2), lambda j, n, i: (n, i, 0, j)),
        compiler_params=pltpu.CompilerParams(
            dimension_semantics=("parallel", "parallel", "parallel"),
            vmem_limit_bytes=vmem_limit),
        cost_estimate=cost,
    )(x_flat, w_taps, scale, shift)

    # ---------------- unpack: drop junk cols / pad rows / pad channels, back to NCHW ----------------
    out = out.reshape(N, n_h, TH, Wp2, C2pad)[:, :, :, :W, :C2]
    out = out.reshape(N, H_pad, W, C2)[:, :H]
    return jnp.transpose(out, (0, 3, 1, 2))


def _reference(x, w3, w1, gamma, beta, mean, var, eps=1e-5):
    """Pure-JAX f32 reference: conv3x3(p=1) + conv1x1(p=0), BN(eval), SiLU."""
    dn = ("NCHW", "OIHW", "NCHW")
    y = lax.conv_general_dilated(x, w3, (1, 1), [(1, 1), (1, 1)], dimension_numbers=dn)
    y = y + lax.conv_general_dilated(x, w1, (1, 1), [(0, 0), (0, 0)], dimension_numbers=dn)
    s = (gamma / jnp.sqrt(var + eps)).reshape(1, -1, 1, 1)
    b = (beta - mean * gamma / jnp.sqrt(var + eps)).reshape(1, -1, 1, 1)
    y = y * s + b
    return y * jax.nn.sigmoid(y)


if __name__ == "__main__":
    N, C1, C2, H, W = 2, 4, 8, 16, 16

    key = jax.random.PRNGKey(0)
    kx, k3, k1, kg, kb, km, kv = jax.random.split(key, 7)

    x = jax.random.normal(kx, (N, C1, H, W), dtype=jnp.float32)
    w3 = jax.random.normal(k3, (C2, C1, 3, 3), dtype=jnp.float32) * 0.1
    w1 = jax.random.normal(k1, (C2, C1, 1, 1), dtype=jnp.float32) * 0.1
    bn_gamma = 1.0 + 0.1 * jax.random.normal(kg, (C2,), dtype=jnp.float32)
    bn_beta = 0.1 * jax.random.normal(kb, (C2,), dtype=jnp.float32)
    bn_mean = 0.1 * jax.random.normal(km, (C2,), dtype=jnp.float32)
    bn_var = jnp.abs(jax.random.normal(kv, (C2,), dtype=jnp.float32)) + 0.5

    y = conv2_bn_silu(x, w3, w1, bn_gamma, bn_beta, bn_mean, bn_var)
    y = jax.block_until_ready(y)
    assert y.shape == (N, C2, H, W)

    y_ref = _reference(x, w3, w1, bn_gamma, bn_beta, bn_mean, bn_var)
    np.testing.assert_allclose(np.asarray(y), np.asarray(y_ref), rtol=2e-2, atol=2e-2)

    print("KERNEL_OK")
</pallas_src>

<mosaic_0001>
module attributes {stable_mosaic.version = 11 : i64} {
  func.func @kernel(%arg0: i32, %arg1: i32, %arg2: i32, %arg3: memref<1x1x332x4xbf16, #tpu.memory_space<vmem>>, %arg4: memref<9x4x128xbf16, #tpu.memory_space<vmem>>, %arg5: memref<1x128xf32, #tpu.memory_space<vmem>>, %arg6: memref<1x128xf32, #tpu.memory_space<vmem>>, %arg7: memref<1x1x288x128xf32, #tpu.memory_space<vmem>>) attributes {dimension_semantics = [#tpu.dimension_semantics<parallel>, #tpu.dimension_semantics<parallel>, #tpu.dimension_semantics<parallel>], iteration_bounds = array<i64: 1, 2, 1>, scalar_prefetch = 0 : i64, scratch_operands = 0 : i64, tpu.core_type = #tpu.core_type<tc>, window_params = [{transform_indices = @transform_0, window_bounds = array<i64: 1, 1, 332, 4>}, {transform_indices = @transform_1, window_bounds = array<i64: 9, 4, 128>}, {transform_indices = @transform_2, window_bounds = array<i64: 1, 128>}, {transform_indices = @transform_3, window_bounds = array<i64: 1, 128>}, {transform_indices = @transform_4, window_bounds = array<i64: 1, 1, 288, 128>}]} {
    %c0 = arith.constant 0 : index
    %c0_0 = arith.constant 0 : index
    %0 = vector.load %arg5[%c0, %c0_0] : memref<1x128xf32, #tpu.memory_space<vmem>>, vector<1x128xf32>
    %c0_1 = arith.constant 0 : index
    %c0_2 = arith.constant 0 : index
    %1 = vector.load %arg6[%c0_1, %c0_2] : memref<1x128xf32, #tpu.memory_space<vmem>>, vector<1x128xf32>
    %c0_i32 = arith.constant 0 : i32
    %c288_i32 = arith.constant 288 : i32
    %2 = arith.muli %c0_i32, %c288_i32 : i32
    %cst = arith.constant 0.000000e+00 : f32
    %3 = vector.broadcast %cst : f32 to vector<288x128xf32>
    %c0_i32_3 = arith.constant 0 : i32
    %4 = arith.addi %2, %c0_i32_3 : i32
    %c0_i32_4 = arith.constant 0 : i32
    %5 = arith.addi %4, %c0_i32_4 : i32
    %c0_5 = arith.constant 0 : index
    %c0_6 = arith.constant 0 : index
    %6 = arith.index_cast %5 : i32 to index
    %c0_7 = arith.constant 0 : index
    %7 = vector.load %arg3[%c0_5, %c0_6, %6, %c0_7] : memref<1x1x332x4xbf16, #tpu.memory_space<vmem>>, vector<1x1x288x4xbf16>
    %8 = vector.shape_cast %7 : vector<1x1x288x4xbf16> to vector<288x4xbf16>
    %c0_8 = arith.constant 0 : index
    %c0_9 = arith.constant 0 : index
    %c0_10 = arith.constant 0 : index
    %9 = vector.load %arg4[%c0_8, %c0_9, %c0_10] : memref<9x4x128xbf16, #tpu.memory_space<vmem>>, vector<1x4x128xbf16>
    %10 = vector.shape_cast %9 : vector<1x4x128xbf16> to vector<4x128xbf16>
    %cst_11 = arith.constant dense<0.000000e+00> : vector<288x128xf32>
    %11 = tpu.matmul %8, %10, %cst_11 {dimension_numbers = #tpu.dot_dimension_numbers<[1], [0], [0], [1], [0, 0, 1, 1], [], []>} : vector<288x4xbf16>, vector<4x128xbf16>, vector<288x128xf32> -> vector<288x128xf32>
    %12 = arith.addf %3, %11 : vector<288x128xf32>
    %c0_i32_12 = arith.constant 0 : i32
    %13 = arith.addi %2, %c0_i32_12 : i32
    %c1_i32 = arith.constant 1 : i32
    %14 = arith.addi %13, %c1_i32 : i32
    %c0_13 = arith.constant 0 : index
    %c0_14 = arith.constant 0 : index
    %15 = arith.index_cast %14 : i32 to index
    %c0_15 = arith.constant 0 : index
    %16 = vector.load %arg3[%c0_13, %c0_14, %15, %c0_15] : memref<1x1x332x4xbf16, #tpu.memory_space<vmem>>, vector<1x1x288x4xbf16>
    %17 = vector.shape_cast %16 : vector<1x1x288x4xbf16> to vector<288x4xbf16>
    %c1 = arith.constant 1 : index
    %c0_16 = arith.constant 0 : index
    %c0_17 = arith.constant 0 : index
    %18 = vector.load %arg4[%c1, %c0_16, %c0_17] : memref<9x4x128xbf16, #tpu.memory_space<vmem>>, vector<1x4x128xbf16>
    %19 = vector.shape_cast %18 : vector<1x4x128xbf16> to vector<4x128xbf16>
    %cst_18 = arith.constant dense<0.000000e+00> : vector<288x128xf32>
    %20 = tpu.matmul %17, %19, %cst_18 {dimension_numbers = #tpu.dot_dimension_numbers<[1], [0], [0], [1], [0, 0, 1, 1], [], []>} : vector<288x4xbf16>, vector<4x128xbf16>, vector<288x128xf32> -> vector<288x128xf32>
    %21 = arith.addf %12, %20 : vector<288x128xf32>
    %c0_i32_19 = arith.constant 0 : i32
    %22 = arith.addi %2, %c0_i32_19 : i32
    %c2_i32 = arith.constant 2 : i32
    %23 = arith.addi %22, %c2_i32 : i32
    %c0_20 = arith.constant 0 : index
    %c0_21 = arith.constant 0 : index
    %24 = arith.index_cast %23 : i32 to index
    %c0_22 = arith.constant 0 : index
    %25 = vector.load %arg3[%c0_20, %c0_21, %24, %c0_22] : memref<1x1x332x4xbf16, #tpu.memory_space<vmem>>, vector<1x1x288x4xbf16>
    %26 = vector.shape_cast %25 : vector<1x1x288x4xbf16> to vector<288x4xbf16>
    %c2 = arith.constant 2 : index
    %c0_23 = arith.constant 0 : index
    %c0_24 = arith.constant 0 : index
    %27 = vector.load %arg4[%c2, %c0_23, %c0_24] : memref<9x4x128xbf16, #tpu.memory_space<vmem>>, vector<1x4x128xbf16>
    %28 = vector.shape_cast %27 : vector<1x4x128xbf16> to vector<4x128xbf16>
    %cst_25 = arith.constant dense<0.000000e+00> : vector<288x128xf32>
    %29 = tpu.matmul %26, %28, %cst_25 {dimension_numbers = #tpu.dot_dimension_numbers<[1], [0], [0], [1], [0, 0, 1, 1], [], []>} : vector<288x4xbf16>, vector<4x128xbf16>, vector<288x128xf32> -> vector<288x128xf32>
    %30 = arith.addf %21, %29 : vector<288x128xf32>
    %c18_i32 = arith.constant 18 : i32
    %31 = arith.addi %2, %c18_i32 : i32
    %c0_i32_26 = arith.constant 0 : i32
    %32 = arith.addi %31, %c0_i32_26 : i32
    %c0_27 = arith.constant 0 : index
    %c0_28 = arith.constant 0 : index
    %33 = arith.index_cast %32 : i32 to index
    %c0_29 = arith.constant 0 : index
    %34 = vector.load %arg3[%c0_27, %c0_28, %33, %c0_29] : memref<1x1x332x4xbf16, #tpu.memory_space<vmem>>, vector<1x1x288x4xbf16>
    %35 = vector.shape_cast %34 : vector<1x1x288x4xbf16> to vector<288x4xbf16>
    %c3 = arith.constant 3 : index
    %c0_30 = arith.constant 0 : index
    %c0_31 = arith.constant 0 : index
    %36 = vector.load %arg4[%c3, %c0_30, %c0_31] : memref<9x4x128xbf16, #tpu.memory_space<vmem>>, vector<1x4x128xbf16>
    %37 = vector.shape_cast %36 : vector<1x4x128xbf16> to vector<4x128xbf16>
    %cst_32 = arith.constant dense<0.000000e+00> : vector<288x128xf32>
    %38 = tpu.matmul %35, %37, %cst_32 {dimension_numbers = #tpu.dot_dimension_numbers<[1], [0], [0], [1], [0, 0, 1, 1], [], []>} : vector<288x4xbf16>, vector<4x128xbf16>, vector<288x128xf32> -> vector<288x128xf32>
    %39 = arith.addf %30, %38 : vector<288x128xf32>
    %c18_i32_33 = arith.constant 18 : i32
    %40 = arith.addi %2, %c18_i32_33 : i32
    %c1_i32_34 = arith.constant 1 : i32
    %41 = arith.addi %40, %c1_i32_34 : i32
    %c0_35 = arith.constant 0 : index
    %c0_36 = arith.constant 0 : index
    %42 = arith.index_cast %41 : i32 to index
    %c0_37 = arith.constant 0 : index
    %43 = vector.load %arg3[%c0_35, %c0_36, %42, %c0_37] : memref<1x1x332x4xbf16, #tpu.memory_space<vmem>>, vector<1x1x288x4xbf16>
    %44 = vector.shape_cast %43 : vector<1x1x288x4xbf16> to vector<288x4xbf16>
    %c4 = arith.constant 4 : index
    %c0_38 = arith.constant 0 : index
    %c0_39 = arith.constant 0 : index
    %45 = vector.load %arg4[%c4, %c0_38, %c0_39] : memref<9x4x128xbf16, #tpu.memory_space<vmem>>, vector<1x4x128xbf16>
    %46 = vector.shape_cast %45 : vector<1x4x128xbf16> to vector<4x128xbf16>
    %cst_40 = arith.constant dense<0.000000e+00> : vector<288x128xf32>
    %47 = tpu.matmul %44, %46, %cst_40 {dimension_numbers = #tpu.dot_dimension_numbers<[1], [0], [0], [1], [0, 0, 1, 1], [], []>} : vector<288x4xbf16>, vector<4x128xbf16>, vector<288x128xf32> -> vector<288x128xf32>
    %48 = arith.addf %39, %47 : vector<288x128xf32>
    %c18_i32_41 = arith.constant 18 : i32
    %49 = arith.addi %2, %c18_i32_41 : i32
    %c2_i32_42 = arith.constant 2 : i32
    %50 = arith.addi %49, %c2_i32_42 : i32
    %c0_43 = arith.constant 0 : index
    %c0_44 = arith.constant 0 : index
    %51 = arith.index_cast %50 : i32 to index
    %c0_45 = arith.constant 0 : index
    %52 = vector.load %arg3[%c0_43, %c0_44, %51, %c0_45] : memref<1x1x332x4xbf16, #tpu.memory_space<vmem>>, vector<1x1x288x4xbf16>
    %53 = vector.shape_cast %52 : vector<1x1x288x4xbf16> to vector<288x4xbf16>
    %c5 = arith.constant 5 : index
    %c0_46 = arith.constant 0 : index
    %c0_47 = arith.constant 0 : index
    %54 = vector.load %arg4[%c5, %c0_46, %c0_47] : memref<9x4x128xbf16, #tpu.memory_space<vmem>>, vector<1x4x128xbf16>
    %55 = vector.shape_cast %54 : vector<1x4x128xbf16> to vector<4x128xbf16>
    %cst_48 = arith.constant dense<0.000000e+00> : vector<288x128xf32>
    %56 = tpu.matmul %53, %55, %cst_48 {dimension_numbers = #tpu.dot_dimension_numbers<[1], [0], [0], [1], [0, 0, 1, 1], [], []>} : vector<288x4xbf16>, vector<4x128xbf16>, vector<288x128xf32> -> vector<288x128xf32>
    %57 = arith.addf %48, %56 : vector<288x128xf32>
    %c36_i32 = arith.constant 36 : i32
    %58 = arith.addi %2, %c36_i32 : i32
    %c0_i32_49 = arith.constant 0 : i32
    %59 = arith.addi %58, %c0_i32_49 : i32
    %c0_50 = arith.constant 0 : index
    %c0_51 = arith.constant 0 : index
    %60 = arith.index_cast %59 : i32 to index
    %c0_52 = arith.constant 0 : index
    %61 = vector.load %arg3[%c0_50, %c0_51, %60, %c0_52] : memref<1x1x332x4xbf16, #tpu.memory_space<vmem>>, vector<1x1x288x4xbf16>
    %62 = vector.shape_cast %61 : vector<1x1x288x4xbf16> to vector<288x4xbf16>
    %c6 = arith.constant 6 : index
    %c0_53 = arith.constant 0 : index
    %c0_54 = arith.constant 0 : index
    %63 = vector.load %arg4[%c6, %c0_53, %c0_54] : memref<9x4x128xbf16, #tpu.memory_space<vmem>>, vector<1x4x128xbf16>
    %64 = vector.shape_cast %63 : vector<1x4x128xbf16> to vector<4x128xbf16>
    %cst_55 = arith.constant dense<0.000000e+00> : vector<288x128xf32>
    %65 = tpu.matmul %62, %64, %cst_55 {dimension_numbers = #tpu.dot_dimension_numbers<[1], [0], [0], [1], [0, 0, 1, 1], [], []>} : vector<288x4xbf16>, vector<4x128xbf16>, vector<288x128xf32> -> vector<288x128xf32>
    %66 = arith.addf %57, %65 : vector<288x128xf32>
    %c36_i32_56 = arith.constant 36 : i32
    %67 = arith.addi %2, %c36_i32_56 : i32
    %c1_i32_57 = arith.constant 1 : i32
    %68 = arith.addi %67, %c1_i32_57 : i32
    %c0_58 = arith.constant 0 : index
    %c0_59 = arith.constant 0 : index
    %69 = arith.index_cast %68 : i32 to index
    %c0_60 = arith.constant 0 : index
    %70 = vector.load %arg3[%c0_58, %c0_59, %69, %c0_60] : memref<1x1x332x4xbf16, #tpu.memory_space<vmem>>, vector<1x1x288x4xbf16>
    %71 = vector.shape_cast %70 : vector<1x1x288x4xbf16> to vector<288x4xbf16>
    %c7 = arith.constant 7 : index
    %c0_61 = arith.constant 0 : index
    %c0_62 = arith.constant 0 : index
    %72 = vector.load %arg4[%c7, %c0_61, %c0_62] : memref<9x4x128xbf16, #tpu.memory_space<vmem>>, vector<1x4x128xbf16>
    %73 = vector.shape_cast %72 : vector<1x4x128xbf16> to vector<4x128xbf16>
    %cst_63 = arith.constant dense<0.000000e+00> : vector<288x128xf32>
    %74 = tpu.matmul %71, %73, %cst_63 {dimension_numbers = #tpu.dot_dimension_numbers<[1], [0], [0], [1], [0, 0, 1, 1], [], []>} : vector<288x4xbf16>, vector<4x128xbf16>, vector<288x128xf32> -> vector<288x128xf32>
    %75 = arith.addf %66, %74 : vector<288x128xf32>
    %c36_i32_64 = arith.constant 36 : i32
    %76 = arith.addi %2, %c36_i32_64 : i32
    %c2_i32_65 = arith.constant 2 : i32
    %77 = arith.addi %76, %c2_i32_65 : i32
    %c0_66 = arith.constant 0 : index
    %c0_67 = arith.constant 0 : index
    %78 = arith.index_cast %77 : i32 to index
    %c0_68 = arith.constant 0 : index
    %79 = vector.load %arg3[%c0_66, %c0_67, %78, %c0_68] : memref<1x1x332x4xbf16, #tpu.memory_space<vmem>>, vector<1x1x288x4xbf16>
    %80 = vector.shape_cast %79 : vector<1x1x288x4xbf16> to vector<288x4xbf16>
    %c8 = arith.constant 8 : index
    %c0_69 = arith.constant 0 : index
    %c0_70 = arith.constant 0 : index
    %81 = vector.load %arg4[%c8, %c0_69, %c0_70] : memref<9x4x128xbf16, #tpu.memory_space<vmem>>, vector<1x4x128xbf16>
    %82 = vector.shape_cast %81 : vector<1x4x128xbf16> to vector<4x128xbf16>
    %cst_71 = arith.constant dense<0.000000e+00> : vector<288x128xf32>
    %83 = tpu.matmul %80, %82, %cst_71 {dimension_numbers = #tpu.dot_dimension_numbers<[1], [0], [0], [1], [0, 0, 1, 1], [], []>} : vector<288x4xbf16>, vector<4x128xbf16>, vector<288x128xf32> -> vector<288x128xf32>
    %84 = arith.addf %75, %83 : vector<288x128xf32>
    %85 = vector.broadcast %0 : vector<1x128xf32> to vector<288x128xf32>
    %86 = arith.mulf %84, %85 : vector<288x128xf32>
    %87 = vector.broadcast %1 : vector<1x128xf32> to vector<288x128xf32>
    %88 = arith.addf %86, %87 : vector<288x128xf32>
    %cst_72 = arith.constant 0.000000e+00 : f32
    %89 = vector.broadcast %cst_72 : f32 to vector<288x128xf32>
    %90 = arith.subf %89, %88 : vector<288x128xf32>
    %91 = math.exp %90 : vector<288x128xf32>
    %cst_73 = arith.constant 1.000000e+00 : f32
    %92 = vector.broadcast %cst_73 : f32 to vector<288x128xf32>
    %93 = arith.addf %92, %91 : vector<288x128xf32>
    %94 = tpu.reciprocal %93 {approx = true} : vector<288x128xf32> -> vector<288x128xf32>
    %95 = arith.mulf %88, %94 : vector<288x128xf32>
    %c0_74 = arith.constant 0 : index
    %c0_75 = arith.constant 0 : index
    %96 = arith.index_cast %2 : i32 to index
    %c0_76 = arith.constant 0 : index
    %97 = vector.load %arg7[%c0_74, %c0_75, %96, %c0_76] : memref<1x1x288x128xf32, #tpu.memory_space<vmem>>, vector<1x1x288x128xf32>
    %98 = vector.shape_cast %97 : vector<1x1x288x128xf32> to vector<288x128xf32>
    %99 = vector.shape_cast %95 : vector<288x128xf32> to vector<1x1x288x128xf32>
    tpu.vector_store %arg7[%c0_74, %c0_75, %96, %c0_76], %99 {strides = array<i32>} : memref<1x1x288x128xf32, #tpu.memory_space<vmem>>, vector<1x1x288x128xf32>,
    %c1_i32_77 = arith.constant 1 : i32
    return
  }
  func.func @transform_0(%arg0: i32, %arg1: i32, %arg2: i32) -> (i32, i32, i32, i32) {
    %c0_i32 = arith.constant 0 : i32
    %c0_i32_0 = arith.constant 0 : i32
    %c0_i32_1 = arith.constant 0 : i32
    return %arg1, %arg2, %c0_i32, %c0_i32_0 : i32, i32, i32, i32
  }
  func.func @transform_1(%arg0: i32, %arg1: i32, %arg2: i32) -> (i32, i32, i32) {
    %c0_i32 = arith.constant 0 : i32
    %c0_i32_0 = arith.constant 0 : i32
    %c0_i32_1 = arith.constant 0 : i32
    return %c0_i32, %c0_i32_0, %arg0 : i32, i32, i32
  }
  func.func @transform_2(%arg0: i32, %arg1: i32, %arg2: i32) -> (i32, i32) {
    %c0_i32 = arith.constant 0 : i32
    %c0_i32_0 = arith.constant 0 : i32
    return %c0_i32, %arg0 : i32, i32
  }
  func.func @transform_3(%arg0: i32, %arg1: i32, %arg2: i32) -> (i32, i32) {
    %c0_i32 = arith.constant 0 : i32
    %c0_i32_0 = arith.constant 0 : i32
    return %c0_i32, %arg0 : i32, i32
  }
  func.func @transform_4(%arg0: i32, %arg1: i32, %arg2: i32) -> (i32, i32, i32, i32) {
    %c0_i32 = arith.constant 0 : i32
    %c0_i32_0 = arith.constant 0 : i32
    return %arg1, %arg2, %c0_i32, %arg0 : i32, i32, i32, i32
  }
}

</mosaic_0001>

<bundles_post_ra>
// kernel: tpu_custom_call.1
= control target key start
LH: loop header
LB: loop body
LE: loop exit
PB: predicated region body
PF: predicated region fallthrough
CT: control target
= control target key end

     0   :  { %9 = vsyncpa [#allocation3], 0  ;;  %s5695_s0 = inlined_call_operand.vmem [shape: bf16[2,1,332,4], index: 0, kind: input, shape index: {}]   ;;  %s5696_s1 = inlined_call_operand.vmem [shape: bf16[9,4,128], index: 1, kind: input, shape index: {}]   ;;  %s5697_s2 = inlined_call_operand.vmem [shape: f32[1,128], index: 2, kind: input, shape index: {}]   ;;  %s5698_s3 = inlined_call_operand.vmem [shape: f32[1,128], index: 3, kind: input, shape index: {}]   ;;  %s5699_s4 = inlined_call_operand.hbm [shape: f32[2,1,288,128], index: 4, kind: output, shape index: {}]  }
   0x1   :  { %11 = vsyncpa [#allocation3 + $0x1], 0  ;;  %s4283_s15 = smov 0   ;;  %s4285_s16 = smov 0  }
   0x2   :  { %s4287_s17 = smov 0   ;;  %s4289_s18 = smov 0  }
   0x3   :  { %s4291_s19 = smov 0   ;;  %s4293_s20 = smov 0  }
   0x4 LB: > { %s3501_s21 = sadd.s32 4294967295, %s4254_s20   ;;  %s3502_s22 = sadd.s32 4294967294, %s4254_s20   ;;  %s4254_s20 = sphi %s4293_s20, %s17_s20   ;;  %s4250_s19 = sphi %s4291_s19, %s5736_s19   ;;  %s4246_s18 = sphi %s4289_s18, %s5735_s18   ;;  %s4242_s17 = sphi %s4287_s17, %s5734_s17   ;;  %s4238_s16 = sphi %s4285_s16, %s5733_s16   ;;  %s4234_s15 = sphi %s4283_s15, %s5732_s15  }
   0x5   : > { %s32_s23 = sadd.s32 1, %s4250_s19  ;;  %s153_s24 = sadd.s32 1, %s4242_s17 }
   0x6   : > { %p34_p0 = scmp.ge.s32.totalorder %s32_s23, 2  ;;  %p163_p1 = scmp.ne.s32.totalorder %s4242_s17, %s4238_s16 }
   0x7   : > { %p164_p2 = scmp.eq.s32.totalorder %s3501_s21, 1  ;;  %p169_p3 = scmp.ne.s32.totalorder %s4238_s16, %s4234_s15 }
   0x8   : > { %s5738_s23 = smov (%p34_p0, %s32_s23), 0  ;;  %p170_p5 = scmp.eq.s32.totalorder %s3502_s22, 1 }
   0x9   : > { %p4323_p4 = por %p164_p2, %p163_p1  ;;  %s146_s26 = ssub.s32 %s4250_s19, %s5738_s23 }
   0xa   : > { %p3508_p6 = scmp.ge.s32.totalorder %s4254_s20, 1  ;;  %p151_p7 = scmp.eq.s32.totalorder %s146_s26, 0 }
   0xb   : > { %p4330_p8 = por %p170_p5, %p169_p3  ;;  %p219_p9 = scmp.lt.s32.totalorder %s4254_s20, 3 }
   0xc   : > { %s4336_s28 = scalar_select %p151_p7, %s4242_s17, %s153_s24  }
   0xd   : > { %p220_p10 = pnand %p3508_p6, %p219_p9 }
   0xf   : > { %223 = sbr.rel (%p220_p10) target bundleno = 852 (0x354), region = 36 }
  0x14   : > { %v3510_v0 = vld [vmem:[%s5696_s1 + $0x2] sm:$0x3]  ;;  %vm618_vm0 = vcmask 1041408   ;;  %p259_p11 = scmp.lt.s32.totalorder %s4246_s18, 1  ;;  %v3615_v2 = vld [vmem:[%s5696_s1 + $0x4] sm:$0x3] }
  0x15   : > { %v620_v1 = vsel %vm618_vm0, %v3510_v0, 0  ;;  %v317_v3 = vld [vmem:[%s5696_s1] sm:$0x3]  ;;  %v958_v4 = vsel %vm618_vm0, %v3615_v2, 0  ;;  %v3721_v6 = vld [vmem:[%s5696_s1 + $0x8] sm:$0x3] }
  0x16   : > { %3945 = vmatpush.bf16.msra.mxu1 %v620_v1  ;;  %3946 = vmatpush.bf16.msra.mxu2 %v620_v1  ;;  %s260_s9 = scalar_select %p259_p11, %s4246_s18, 1  ;;  %v758_v5 = vsel %vm618_vm0, %v317_v3, 0  ;;  %v1688_v7 = vsel %vm618_vm0, %v3721_v6, 0  ;;  %vm414_vm1 = vsmask.f32 7424  ;;  %vm563_vm2 = vcmask 31744  }
  0x17   : > { %629 = vmatpush.bf16.msra.mxu0 %v620_v1  ;;  %3947 = vmatpush.bf16.msra.mxu3 %v620_v1  ;;  %v3634_v45 = vld [vmem:[%s5696_s1 + $0x6] sm:$0x3]  ;;  %vm865_vm3 = vcmask 1046528   ;;  %vm1462_vm4 = vsmask.f32 6400  ;;  %vm1831_vm6 = vcmask 1045504  }
  0x18   : > { %s3949_s12 = smul.u32 168, %s260_s9  ;;  %v1319_v53 = vsel %vm618_vm0, %v3634_v45, 0  ;;  %vm2428_vm5 = vsmask.f32 5376  ;;  %vm2797_vm7 = vcmask 1044480   ;;  %s256_s14 = sand.u32 1, %s4238_s16  }
  0x19   : > { %s3948_s22 = smul.u32 288, %s256_s14 }
  0x1a   : > { %967 = vmatpush.bf16.msrb.mxu2 %v958_v4  ;;  %767 = vmatpush.bf16.msrb.mxu1 %v758_v5  ;;  %s4359_s21 = scalar_lea.vmem %s5695_s0, %s3949_s12  ;;  %s3950_s5 = smul.u32 288, %s4246_s18 }
  0x1b   : > { %1697 = vmatpush.bf16.msrb.mxu0 %v1688_v7  ;;  %v4362_v8 = vld [vmem:[%s4359_s21 + $0x28] sm:$0xff]  ;;  %v4365_v9 = vld [vmem:[%s4359_s21 + $0x30] sm:$0xff]  ;;  %v4371_v11 = vld [vmem:[%s4359_s21 + $0x58] sm:$0xff]  ;;  %1328 = vmatpush.bf16.msrb.mxu3 %v1319_v53  ;;  %s5198_s24 = scalar_lea.vmem [#allocation2], %s3948_s22  ;;  %s3358_s18 = scalar_lea.sflag [#allocation3], %s256_s14 }
  0x1c   : > { %v4368_v10 = vld [vmem:[%s4359_s21 + $0x50] sm:$0xff]  ;;  %v4374_v12 = vld [vmem:[%s4359_s21] sm:$0xff]   ;;  %v4377_v13 = vld [vmem:[%s4359_s21 + $0x8] sm:$0xff]  ;;  %v455_v14 = vshll.u32 %v4362_v8, 16  ;;  %v459_v15 = vshrl.u32 %v4362_v8, 16  ;;  %v463_v16 = vshll.u32 %v4365_v9, 16  ;;  %s3372_s8 = scalar_lea.hbm %s5699_s4, %s3950_s5 }
  0x1d   : > { %v495_v17 = vshll.u32 %v4368_v10, 16  ;;  %v499_v18 = vshrl.u32 %v4368_v10, 16  ;;  %v503_v19 = vshll.u32 %v4371_v11, 16  ;;  %v416_v20 = vshrl.u32 %v4374_v12, 16  ;;  %v4395_v31 = vld [vmem:[%s4359_s21 + $0x78] sm:$0xff]  ;;  %v3902_v32 = vld [vmem:[%s4359_s21 + $0x80] sm:$0xff] }
  0x1e   : > { %v418_v21 = vshll.u32 %v4374_v12, 16  ;;  %v4387_v22 = vrot.slane %v455_v14, 1  ;;  %v465_v23 = vrot.slane %v463_v16, 1  ;;  %v423_v25 = vshll.u32 %v4377_v13, 16  ;;  %v4404_v37 = vld [vmem:[%s4359_s21 + $0x38] sm:$0xff]  ;;  %v4408_v38 = vld [vmem:[%s4359_s21 + $0x60] sm:$0xff] }
  0x1f   : > { %v4389_v24 = vrot.slane %v495_v17, 1  ;;  %v505_v26 = vrot.slane %v503_v19, 1  ;;  %v535_v39 = vshll.u32 %v4395_v31, 16  ;;  %v539_v40 = vshrl.u32 %v4395_v31, 16  ;;  %v4413_v42 = vld [vmem:[%s4359_s21 + $0x10] sm:$0xff]  ;;  %v3903_v59 = vld [vmem:[%s4359_s21 + $0x88] sm:$0xff] }
  0x20   : > { %v420_v27 = vrot.slane %v418_v21, 1  ;;  %v461_v28 = vor.u32 %v459_v15, %v4387_v22  ;;  %v425_v30 = vrot.slane %v423_v25, 1  ;;  %v543_v41 = vshll.u32 %v3902_v32, 16  ;;  %v4432_v60 = vld [vmem:[%s4359_s21 + $0x48] sm:$0xff]  ;;  %v4441_v5 = vld [vmem:[%s4359_s21 + $0x40] sm:$0xff]  ;;  %v4449_v17 = vld [vmem:[%s4359_s21 + $0x18] sm:$0xff] }
  0x21   : > { %v501_v29 = vor.u32 %v499_v18, %v4389_v24  ;;  %v4415_v43 = vrot.slane %v535_v39, 1  ;;  %v467_v46 = vshrl.u32 %v4365_v9, 16  ;;  %v471_v47 = vshll.u32 %v4404_v37, 16  ;;  %v4444_v6 = vld [vmem:[%s4359_s21 + $0x68] sm:$0xff]  ;;  %v318_v18 = vld [vmem:[%s4359_s21 + $0x90] sm:$0x1] }
  0x22   : > { %v421_v33 = vor.u32 %v420_v27, %v416_v20  ;;  %v466_v34 = vsel %vm414_vm1, %v461_v28, %v465_v23  ;;  %v545_v44 = vrot.slane %v543_v41, 1  ;;  %v507_v48 = vshrl.u32 %v4371_v11, 16  ;;  %v4458_v27 = vld [vmem:[%s4359_s21 + $0x20] sm:$0xff]  ;;  %s3373_s9 = sshll.u32 %s5198_s24, 4  ;;  %s3375_s10 = sshll.u32 %s3372_s8, 4  ;;  %s3374_s9 = int_to_ptr.vmem [resolvable:$true] %s3373_s9  ;;  %s3376_s10 = int_to_ptr.hbm [resolvable:$true] %s3375_s10 }
  0x23   : > { %v506_v35 = vsel %vm414_vm1, %v501_v29, %v505_v26  ;;  %3584 = vmatmul.msk.bf16.vlgmr.msra.gmra.mxu1 %vm563_vm2, %v466_v34  ;;  %v511_v49 = vshll.u32 %v4408_v38, 16  ;;  %v541_v50 = vor.u32 %v539_v40, %v4415_v43  ;;  %v427_v51 = vshrl.u32 %v4377_v13, 16  ;;  %s4190_s11 = sshra.s32 %s3376_s10, 4  ;;  %s4191_s11 = int_to_ptr.hbm [resolvable:$true] %s4190_s11 }
  0x24   : > { %3589 = vmatmul.msk.bf16.vlgmr.msra.gmra.mxu2 %vm563_vm2, %v506_v35  ;;  %v426_v36 = vsel %vm414_vm1, %v421_v33, %v425_v30  ;;  %v431_v52 = vshll.u32 %v4413_v42, 16  ;;  %v469_v55 = vor.u32 %v467_v46, %v465_v23  ;;  %v473_v56 = vrot.slane %v471_v47, 1  ;;  %s4192_s12 = scalar_lea.hbm %s4191_s11, 288  ;;  %p4197_p1 = scmp.lt.s32.totalorder %s4191_s11, %s5699_s4 }
  0x25   : > { %3579 = vmatmul.msk.bf16.vlgmr.msra.gmra.mxu0 %vm563_vm2, %v426_v36  ;;  %v546_v54 = vsel %vm414_vm1, %v541_v50, %v545_v44  ;;  %v509_v57 = vor.u32 %v507_v48, %v505_v26  ;;  %v513_v58 = vrot.slane %v511_v49, 1  ;;  %v429_v61 = vor.u32 %v427_v51, %v425_v30  ;;  %p4193_p12 = scmp.ne.s32.totalorder %s4191_s11, %s4192_s12 }
  0x26   : > { %3594 = vmatmul.msk.bf16.vlgmr.msra.gmra.mxu3 %vm563_vm2, %v546_v54  ;;  %v433_v62 = vrot.slane %v431_v52, 1  ;;  %v474_v63 = vsel %vm414_vm1, %v469_v55, %v473_v56  ;;  %v547_v1 = vshrl.u32 %v3902_v32, 16  ;;  %v551_v2 = vshll.u32 %v3903_v59, 16  ;;  %v4479_v52 = vld [vmem:[%s4359_s21 + $0x70] sm:$0xff] }
  0x27   : > { %v514_v0 = vsel %vm414_vm1, %v509_v57, %v513_v58  ;;  %v487_v3 = vshll.u32 %v4432_v60, 16  ;;  %v491_v16 = vshrl.u32 %v4432_v60, 16  ;;  %v475_v20 = vshrl.u32 %v4404_v37, 16  ;;  %p4194_p13 = pnand %p4193_p12, %p4323_p4 }
  0x28   : > { %v434_v4 = vsel %vm414_vm1, %v429_v61, %v433_v62  ;;  %v549_v7 = vor.u32 %v547_v1, %v545_v44  ;;  %v553_v14 = vrot.slane %v551_v2, 1  ;;  %v479_v21 = vshll.u32 %v4441_v5, 16 }
  0x29   : > { %v489_v15 = vrot.slane %v487_v3, 1  ;;  %v515_v23 = vshrl.u32 %v4408_v38, 16  ;;  %v519_v25 = vshll.u32 %v4444_v6, 16  ;;  %v394_v28 = vunpack.c.l.b16 %v318_v18  ;;  %p4195_p0 = pneg %p4194_p13 }
  0x2a   : > { %v554_v26 = vsel %vm414_vm1, %v549_v7, %v553_v14  ;;  %v435_v30 = vshrl.u32 %v4413_v42, 16  ;;  %v439_v32 = vshll.u32 %v4449_v17, 16  ;;  %v477_v33 = vor.u32 %v475_v20, %v473_v56  ;;  %v3904_v7 = vld [vmem:[%s4359_s21 + $0x10] sm:$0xff] }
  0x2b   : > { %v493_v19 = vor.u32 %v491_v16, %v489_v15  ;;  %v481_v34 = vrot.slane %v479_v21, 1  ;;  %v517_v35 = vor.u32 %v515_v23, %v513_v58  ;;  %v521_v36 = vrot.slane %v519_v25, 1  ;;  %v3759_v21 = vld [vmem:[%s5696_s1 + $0xc] sm:$0x3]  ;;  %v3846_v25 = vld [vmem:[%s5696_s1 + $0xe] sm:$0x3] }
  0x2c   : > { %v447_v39 = vshll.u32 %v4458_v27, 16  ;;  %v4468_v40 = vpack.c.b16 %v394_v28, %v394_v28  ;;  %v437_v41 = vor.u32 %v435_v30, %v433_v62  ;;  %v441_v44 = vrot.slane %v439_v32, 1  ;;  %v1095_v62 = vld [vmem:[%s4359_s21 + $0x8] sm:$0xe]  ;;  %v3865_v32 = vld [vmem:[%s5696_s1 + $0x10] sm:$0x3] }
  0x2d   : > { %v4462_v29 = vsel %vm414_vm1, %v493_v19, %v4389_v24  ;;  %v482_v24 = vsel %vm414_vm1, %v477_v33, %v481_v34  ;;  %v522_v45 = vsel %vm414_vm1, %v517_v35, %v521_v36  ;;  %v555_v47 = vshrl.u32 %v3903_v59, 16 }
  0x2e   : > { %v449_v46 = vrot.slane %v447_v39, 1  ;;  %v559_v48 = vshll.u32 %v4468_v40, 16  ;;  %v451_v49 = vshrl.u32 %v4458_v27, 16  ;;  %v442_v50 = vsel %vm414_vm1, %v437_v41, %v441_v44  ;;  %v3905_v41 = vld [vmem:[%s4359_s21 + $0x18] sm:$0xff] }
  0x2f   : > { %v557_v53 = vor.u32 %v555_v47, %v553_v14  ;;  %v483_v56 = vshrl.u32 %v4441_v5, 16  ;;  %v523_v57 = vshrl.u32 %v4444_v6, 16  ;;  %v527_v58 = vshll.u32 %v4479_v52, 16 }
  0x30   : > { %v453_v51 = vor.u32 %v451_v49, %v449_v46  ;;  %v561_v54 = vrot.slane %v559_v48, 1  ;;  %v443_v61 = vshrl.u32 %v4449_v17, 16  ;;  %v1171_v3 = vunpack.c.l.b16 %v1095_v62 }
  0x31   : > { %v525_v1 = vor.u32 %v523_v57, %v521_v36  ;;  %v529_v2 = vrot.slane %v527_v58, 1  ;;  %v1228_v20 = vrot.slane %v3904_v7, 1  ;;  %v2654_v28 = vsel %vm618_vm0, %v3846_v25, 0 }
  0x32   : > { %v458_v55 = vsel %vm414_vm1, %v453_v51, %v4387_v22  ;;  %v562_v59 = vsel %vm414_vm1, %v557_v53, %v561_v54  ;;  %2663 = vmatpush.bf16.msra.mxu3 %v2654_v28  ;;  %v2890_v33 = vsel %vm618_vm0, %v3865_v32, 0  ;;  %v1472_v48 = vshrl.u32 %v3904_v7, 16 }
  0x33   : > { %3585 = vmatmul.msk.bf16.gmra.mxu1 %vm563_vm2, %v474_v63  ;;  %v4490_v63 = vld [vmem:[%s4359_s21 + $0xc] sm:$0xf]  ;;  %v530_v16 = vsel %vm414_vm1, %v525_v1, %v529_v2  ;;  %2899 = vmatpush.bf16.msra.mxu0 %v2890_v33  ;;  %v1475_v49 = vshll.u32 %v3904_v7, 16  ;;  %v1481_v1 = vshrl.u32 %v3905_v41, 16  ;;  %v871_v28 = vrot.slane %v4449_v17, 1  ;;  %v3908_v33 = vld [vmem:[%s4359_s21 + $0x30] sm:$0xff] }
  0x34   : > { %3590 = vmatmul.msk.bf16.gmra.mxu2 %vm563_vm2, %v514_v0  ;;  %v485_v0 = vor.u32 %v483_v56, %v481_v34  ;;  %v5700_v22 = vunpack.c.l.b16 %v4490_v63  ;;  %v531_v34 = vshrl.u32 %v4479_v52, 16  ;;  %v1474_v54 = vrot.slane %v1472_v48, 1 }
  0x35   : > { %3580 = vmatmul.msk.bf16.gmra.mxu0 %vm563_vm2, %v434_v4  ;;  %v445_v4 = vor.u32 %v443_v61, %v441_v44  ;;  %v3942_v44 = vld [vmem:[%s4359_s21] sm:$0xf0]  ;;  %v1477_v56 = vrot.slane %v1475_v49, 2 }
  0x36   : > { %3595 = vmatmul.msk.bf16.gmra.mxu3 %vm563_vm2, %v554_v26  ;;  %v490_v14 = vsel %vm414_vm1, %v485_v0, %v489_v15  ;;  %v1208_v18 = vpack.c.b16 %v5700_v22, %v1171_v3  ;;  %v2285_v15 = vsel %vm618_vm0, %v3759_v21, 0  ;;  %v3740_v26 = vld [vmem:[%s5696_s1 + $0xa] sm:$0x3]  ;;  %v533_v36 = vor.u32 %v531_v34, %v529_v2  ;;  %v3906_v61 = vld [vmem:[%s4359_s21 + $0x20] sm:$0xff] }
  0x37   : > { %v450_v19 = vsel %vm414_vm1, %v445_v4, %v449_v46  ;;  %2294 = vmatpush.bf16.msra.mxu2 %v2285_v15  ;;  %v1924_v30 = vsel %vm618_vm0, %v3740_v26, 0  ;;  %v1478_v58 = vor.u32 %v1477_v56, %v1474_v54  ;;  %v1232_v0 = vrot.slane %v3906_v61, 1  ;;  %v3914_v22 = vld [vmem:[%s4359_s21 + $0x60] sm:$0xff] }
  0x38   : > { %v1227_v23 = vrot.slane %v1208_v18, 1  ;;  %1933 = vmatpush.bf16.msra.mxu1 %v1924_v30  ;;  %v538_v39 = vsel %vm414_vm1, %v533_v36, %v4415_v43  ;;  %v1464_v46 = vshrl.u32 %v1208_v18, 16  ;;  %v1467_v47 = vshll.u32 %v1208_v18, 16 }
  0x39   : > { %v1484_v2 = vshll.u32 %v3905_v41, 16  ;;  %v1483_v4 = vrot.slane %v1481_v1, 1  ;;  %v1490_v21 = vshrl.u32 %v3906_v61, 16  ;;  %v1236_v34 = vrot.slane %v3908_v33, 1  ;;  %v3910_v1 = vld [vmem:[%s4359_s21 + $0x40] sm:$0xff] }
  0x3a   : > { %v1229_v35 = vsel %vm865_vm3, %v1227_v23, %v1228_v20  ;;  %v1466_v43 = vrot.slane %v1464_v46, 1  ;;  %v1469_v53 = vrot.slane %v1467_v47, 2  ;;  %v1493_v23 = vshll.u32 %v3906_v61, 16  ;;  %v3909_v47 = vld [vmem:[%s4359_s21 + $0x38] sm:$0xff] }
  0x3b   : > { %v1486_v7 = vrot.slane %v1484_v2, 2  ;;  %v1492_v25 = vrot.slane %v1490_v21, 1 }
  0x3c   : > { %v1470_v57 = vor.u32 %v1469_v53, %v1466_v43  ;;  %v1495_v26 = vrot.slane %v1493_v23, 2  ;;  %v1511_v43 = vshll.u32 %v3908_v33, 16  ;;  %v877_v23 = vrot.slane %v4365_v9, 1 }
  0x3e   : > { %v1479_v62 = vsel %vm1462_vm4, %v1470_v57, %v1478_v58  ;;  %v1496_v30 = vor.u32 %v1495_v26, %v1492_v25  ;;  %v1513_v57 = vrot.slane %v1511_v43, 2 }
  0x43   : > { %3586 = vmatmul.msk.bf16.gmra.mxu1 %vm563_vm2, %v482_v24  ;;  %v1230_v24 = vrot.slane %v3905_v41, 1 }
  0x44   : > { %3591 = vmatmul.msk.bf16.gmra.mxu2 %vm563_vm2, %v522_v45  ;;  %v3943_v45 = vld [vmem:[%s4359_s21] sm:$0xe] }
  0x45   : > { %3581 = vmatmul.msk.bf16.gmra.mxu0 %vm563_vm2, %v442_v50  ;;  %v3944_v50 = vor.u32 %v3943_v45, %v3942_v44  ;;  %v1231_v51 = vsel %vm865_vm3, %v1228_v20, %v1230_v24  ;;  %v1233_v3 = vsel %vm865_vm3, %v1230_v24, %v1232_v0  ;;  %v873_v24 = vrot.slane %v4458_v27, 1 }
  0x46   : > { %3596 = vmatmul.msk.bf16.gmra.mxu3 %vm563_vm2, %v562_v59 }
  0x53   : > { %3587 = vmatmul.msk.bf16.gmra.mxu1 %vm563_vm2, %v490_v14  ;;  %v869_v14 = vrot.slane %v4413_v42, 1 }
  0x54   : > { %3592 = vmatmul.msk.bf16.gmra.mxu2 %vm563_vm2, %v530_v16  ;;  %v1487_v16 = vor.u32 %v1486_v7, %v1483_v4  ;;  %v1240_v4 = vrot.slane %v3910_v1, 1  ;;  %v1517_v7 = vshrl.u32 %v3909_v47, 16 }
  0x55   : > { %3582 = vmatmul.msk.bf16.gmra.mxu0 %vm563_vm2, %v450_v19  ;;  %v872_v32 = vsel %vm865_vm3, %v869_v14, %v871_v28 }
  0x56   : > { %3703 = vmatmul.msk.bf16.vlgmr.msrb.gmra.mxu3 %vm563_vm2, %v1229_v35  ;;  %v1488_v19 = vsel %vm1462_vm4, %v1478_v58, %v1487_v16  ;;  %v1519_v21 = vrot.slane %v1517_v7, 1 }
  0x63   : > { %3588 = vmatmul.msk.bf16.gmra.mxu1 %vm563_vm2, %v4462_v29  ;;  %v866_v29 = vrot.slane %v3944_v50, 1  ;;  %v1238_v50 = vrot.slane %v3909_v47, 1 }
  0x64   : > { %3593 = vmatmul.msk.bf16.gmra.mxu2 %vm563_vm2, %v538_v39 }
  0x65   : > { %3583 = vmatmul.msk.bf16.gmra.mxu0 %vm563_vm2, %v458_v55  ;;  %v867_v55 = vrot.slane %v4377_v13, 1  ;;  %v1239_v56 = vsel %vm865_vm3, %v1236_v34, %v1238_v50 }
  0x66   : > { %3704 = vmatmul.msk.bf16.gmra.mxu3 %vm563_vm2, %v1231_v51  ;;  %v1508_v51 = vshrl.u32 %v3908_v33, 16 }
  0x67   : > { %v868_v59 = vsel %vm865_vm3, %v866_v29, %v867_v55  ;;  %v870_v18 = vsel %vm865_vm3, %v867_v55, %v869_v14  ;;  %v1520_v14 = vshll.u32 %v3909_v47, 16  ;;  %v879_v47 = vrot.slane %v4404_v37, 1 }
  0x68   : > { %v1510_v55 = vrot.slane %v1508_v51, 1 }
  0x6a   : > { %v1514_v58 = vor.u32 %v1513_v57, %v1510_v55  ;;  %v3912_v55 = vld [vmem:[%s4359_s21 + $0x50] sm:$0xff] }
  0x73   : > { %3597 = vmatmul.msk.bf16.vlgmr.msrb.gmra.mxu1 %vm563_vm2, %v4374_v12  ;;  %v3907_v12 = vld [vmem:[%s4359_s21 + $0x28] sm:$0xff] }
  0x74   : > { %3616 = vmatmul.msk.bf16.vlgmr.msrb.gmra.mxu2 %vm563_vm2, %v868_v59  ;;  %v1234_v20 = vrot.slane %v3907_v12, 1  ;;  %v1499_v35 = vshrl.u32 %v3907_v12, 16  ;;  %v1502_v36 = vshll.u32 %v3907_v12, 16 }
  0x75   : > { %3722 = vmatmul.msk.bf16.vlgmr.msrb.gmra.mxu0 %vm563_vm2, %v1479_v62 }
  0x76   : > { %3705 = vmatmul.msk.bf16.gmra.mxu3 %vm563_vm2, %v1233_v3  ;;  %v1235_v15 = vsel %vm865_vm3, %v1232_v0, %v1234_v20  ;;  %v1237_v39 = vsel %vm865_vm3, %v1234_v20, %v1236_v34  ;;  %v1501_v41 = vrot.slane %v1499_v35, 1  ;;  %v1504_v44 = vrot.slane %v1502_v36, 2 }
  0x77   : > { %v1526_v35 = vshrl.u32 %v3910_v1, 16  ;;  %v1529_v36 = vshll.u32 %v3910_v1, 16 }
  0x78   : > { %v1505_v45 = vor.u32 %v1504_v44, %v1501_v41 }
  0x7a   : > { %v1506_v49 = vsel %vm1462_vm4, %v1496_v30, %v1505_v45  ;;  %v1515_v3 = vsel %vm1462_vm4, %v1505_v45, %v1514_v58 }
  0x83   : > { %3598 = vmatmul.msk.bf16.gmra.mxu1 %vm563_vm2, %v4377_v13  ;;  %v1497_v13 = vsel %vm1462_vm4, %v1487_v16, %v1496_v30 }
  0x84   : > { %3617 = vmatmul.msk.bf16.gmra.mxu2 %vm563_vm2, %v870_v18 }
  0x85   : > { %3723 = vmatmul.msk.bf16.gmra.mxu0 %vm563_vm2, %v1488_v19  ;;  %v1241_v19 = vsel %vm865_vm3, %v1238_v50, %v1240_v4 }
  0x86   : > { %3706 = vmatmul.msk.bf16.gmra.mxu3 %vm563_vm2, %v1235_v15 }
  0x93   : > { %3599 = vmatmul.msk.bf16.gmra.mxu1 %vm563_vm2, %v4413_v42  ;;  %v874_v42 = vsel %vm865_vm3, %v871_v28, %v873_v24 }
  0x94   : > { %3618 = vmatmul.msk.bf16.gmra.mxu2 %vm563_vm2, %v872_v32  ;;  %v3911_v32 = vld [vmem:[%s4359_s21 + $0x48] sm:$0xff] }
  0x95   : > { %3724 = vmatmul.msk.bf16.gmra.mxu0 %vm563_vm2, %v1497_v13  ;;  %v1242_v34 = vrot.slane %v3911_v32, 1  ;;  %v1538_v1 = vshll.u32 %v3911_v32, 16 }
  0x96   : > { %3707 = vmatmul.msk.bf16.gmra.mxu3 %vm563_vm2, %v1237_v39 }
  0xa0   : > { %v4564_v46 = vpop.f32.mrf.mxu1 }
  0xa2   : > { %v4568_v48 = vpop.f32.mrf.mxu0 }
  0xa3   : > { %3600 = vmatmul.msk.bf16.gmra.mxu1 %vm563_vm2, %v4449_v17  ;;  %v875_v17 = vrot.slane %v4362_v8, 1 }
  0xa4   : > { %3619 = vmatmul.msk.bf16.gmra.mxu2 %vm563_vm2, %v874_v42  ;;  %v1528_v42 = vrot.slane %v1526_v35, 1  ;;  %v3913_v35 = vld [vmem:[%s4359_s21 + $0x58] sm:$0xff] }
  0xa5   : > { %3725 = vmatmul.msk.bf16.gmra.mxu0 %vm563_vm2, %v1506_v49  ;;  %v876_v0 = vsel %vm865_vm3, %v873_v24, %v875_v17  ;;  %v878_v30 = vsel %vm865_vm3, %v875_v17, %v877_v23  ;;  %v1243_v24 = vsel %vm865_vm3, %v1240_v4, %v1242_v34 }
  0xa6   : > { %3708 = vmatmul.msk.bf16.gmra.mxu3 %vm563_vm2, %v1239_v56  ;;  %v880_v56 = vsel %vm865_vm3, %v877_v23, %v879_v47 }
  0xa7   : > { %v4575_v53 = vpop.f32.mrf.mxu2 }
  0xa8   : > { %v4577_v54 = vpop.f32.mrf.mxu1 }
  0xa9   : > { %v4586_v61 = vpop.f32.mrf.mxu3 }
  0xaa   : > { %v4580_v29 = vpop.f32.mrf.mxu0  ;;  %5704 = vst [vmem:[#allocation5_spill] sm:$0xff] %v4586_v61 }
  0xaf   : > { %v4584_v59 = vpop.f32.mrf.mxu2 }
  0xb0   : > { %v4588_v62 = vpop.f32.mrf.mxu1 }
  0xb1   : > { %v4601_v18 = vpop.f32.mrf.mxu3 }
  0xb2   : > { %v4592_v2 = vpop.f32.mrf.mxu0  ;;  %5705 = vst [vmem:[#allocation6_spill] sm:$0xff] %v4601_v18 }
  0xb3   : > { %3601 = vmatmul.msk.bf16.gmra.mxu1 %vm563_vm2, %v4458_v27  ;;  %v1522_v27 = vrot.slane %v1520_v14, 2 }
  0xb4   : > { %3620 = vmatmul.msk.bf16.gmra.mxu2 %vm563_vm2, %v876_v0  ;;  %v1535_v0 = vshrl.u32 %v3911_v32, 16 }
  0xb5   : > { %3726 = vmatmul.msk.bf16.gmra.mxu0 %vm563_vm2, %v1515_v3  ;;  %v1523_v15 = vor.u32 %v1522_v27, %v1519_v21  ;;  %v881_v27 = vrot.slane %v4441_v5, 1 }
  0xb6   : > { %3709 = vmatmul.msk.bf16.gmra.mxu3 %vm563_vm2, %v1241_v19  ;;  %v1537_v21 = vrot.slane %v1535_v0, 1 }
  0xb7   : > { %v4599_v16 = vpop.f32.mrf.mxu2  ;;  %v1524_v13 = vsel %vm1462_vm4, %v1514_v58, %v1523_v15  ;;  %v1244_v58 = vrot.slane %v3912_v55, 1 }
  0xb8   : > { %v4603_v12 = vpop.f32.mrf.mxu1 }
  0xb9   : > { %v4612_v26 = vpop.f32.mrf.mxu3  ;;  %v1245_v14 = vsel %vm865_vm3, %v1242_v34, %v1244_v58 }
  0xba   : > { %v4606_v20 = vpop.f32.mrf.mxu0  ;;  %5706 = vst [vmem:[#allocation7_spill] sm:$0xff] %v4612_v26 }
  0xbf   : > { %v4610_v25 = vpop.f32.mrf.mxu2 }
  0xc0   : > { %v4614_v28 = vpop.f32.mrf.mxu1 }
  0xc1   : > { %v4627_v41 = vpop.f32.mrf.mxu3 }
  0xc2   : > { %v4618_v33 = vpop.f32.mrf.mxu0  ;;  %5707 = vst [vmem:[#allocation8_spill] sm:$0xff] %v4627_v41 }
  0xc3   : > { %3602 = vmatmul.msk.bf16.gmra.mxu1 %vm563_vm2, %v4362_v8  ;;  %v1531_v8 = vrot.slane %v1529_v36, 2 }
  0xc4   : > { %3621 = vmatmul.msk.bf16.gmra.mxu2 %vm563_vm2, %v878_v30 }
  0xc5   : > { %3727 = vmatmul.msk.bf16.gmra.mxu0 %vm563_vm2, %v1524_v13  ;;  %v1532_v49 = vor.u32 %v1531_v8, %v1528_v42  ;;  %v882_v13 = vsel %vm865_vm3, %v879_v47, %v881_v27  ;;  %v1544_v42 = vshrl.u32 %v3912_v55, 16  ;;  %v1547_v8 = vshll.u32 %v3912_v55, 16 }
  0xc6   : > { %3710 = vmatmul.msk.bf16.gmra.mxu3 %vm563_vm2, %v1243_v24  ;;  %v1246_v24 = vrot.slane %v3913_v35, 1 }
  0xc7   : > { %v4625_v39 = vpop.f32.mrf.mxu2  ;;  %v1533_v17 = vsel %vm1462_vm4, %v1523_v15, %v1532_v49 }
  0xc8   : > { %v4629_v44 = vpop.f32.mrf.mxu1  ;;  %v1247_v0 = vsel %vm865_vm3, %v1244_v58, %v1246_v24  ;;  %v1248_v58 = vrot.slane %v3914_v22, 1 }
  0xc9   : > { %v4638_v51 = vpop.f32.mrf.mxu3 }
  0xca   : > { %v4632_v45 = vpop.f32.mrf.mxu0  ;;  %5708 = vst [vmem:[#allocation9_spill] sm:$0xff] %v4638_v51  ;;  %v1249_v26 = vsel %vm865_vm3, %v1246_v24, %v1248_v58  ;;  %v3915_v24 = vld [vmem:[%s4359_s21 + $0x68] sm:$0xff] }
  0xcf   : > { %v4636_v50 = vpop.f32.mrf.mxu2 }
  0xd0   : > { %v4640_v43 = vpop.f32.mrf.mxu1 }
  0xd1   : > { %v4653_v4 = vpop.f32.mrf.mxu3 }
  0xd2   : > { %v4644_v57 = vpop.f32.mrf.mxu0  ;;  %5709 = vst [vmem:[#allocation10_spill] sm:$0xff] %v4653_v4 }
  0xd3   : > { %3603 = vmatmul.msk.bf16.gmra.mxu1 %vm563_vm2, %v4365_v9  ;;  %v1540_v9 = vrot.slane %v1538_v1, 2 }
  0xd4   : > { %3622 = vmatmul.msk.bf16.gmra.mxu2 %vm563_vm2, %v880_v56 }
  0xd5   : > { %3728 = vmatmul.msk.bf16.gmra.mxu0 %vm563_vm2, %v1533_v17  ;;  %v1541_v23 = vor.u32 %v1540_v9, %v1537_v21 }
  0xd6   : > { %3711 = vmatmul.msk.bf16.gmra.mxu3 %vm563_vm2, %v1245_v14  ;;  %v1549_v14 = vrot.slane %v1547_v8, 2  ;;  %v1553_v8 = vshrl.u32 %v3913_v35, 16 }
  0xd7   : > { %v4651_v3 = vpop.f32.mrf.mxu2  ;;  %v1542_v34 = vsel %vm1462_vm4, %v1532_v49, %v1541_v23  ;;  %v1546_v49 = vrot.slane %v1544_v42, 1 }
  0xd8   : > { %v4655_v7 = vpop.f32.mrf.mxu1  ;;  %v1555_v61 = vrot.slane %v1553_v8, 1 }
  0xd9   : > { %v1330_v30 = vpop.f32.mrf.mxu3  ;;  %v1550_v21 = vor.u32 %v1549_v14, %v1546_v49 }
  0xda   : > { %v4658_v19 = vpop.f32.mrf.mxu0 }
  0xdb   : > { %v1551_v51 = vsel %vm1462_vm4, %v1541_v23, %v1550_v21 }
  0xdf   : > { %v4662_v15 = vpop.f32.mrf.mxu2 }
  0xe0   : > { %v4664_v32 = vpop.f32.mrf.mxu1 }
  0xe1   : > { %v1332_v17 = vpop.f32.mrf.mxu3 }
  0xe2   : > { %v4668_v36 = vpop.f32.mrf.mxu0 }
  0xe3   : > { %3604 = vmatmul.msk.bf16.gmra.mxu1 %vm563_vm2, %v4404_v37  ;;  %v883_v37 = vrot.slane %v4432_v60, 1 }
  0xe4   : > { %3623 = vmatmul.msk.bf16.gmra.mxu2 %vm563_vm2, %v882_v13 }
  0xe5   : > { %3729 = vmatmul.msk.bf16.gmra.mxu0 %vm563_vm2, %v1542_v34  ;;  %v884_v34 = vsel %vm865_vm3, %v881_v27, %v883_v37 }
  0xe6   : > { %3712 = vmatmul.msk.bf16.gmra.mxu3 %vm563_vm2, %v1247_v0  ;;  %v1556_v0 = vshll.u32 %v3913_v35, 16 }
  0xe7   : > { %v4675_v56 = vpop.f32.mrf.mxu2 }
  0xe8   : > { %5710 = vst [vmem:[#allocation11_spill] sm:$0xff] %v4675_v56  ;;  %v4677_v47 = vpop.f32.mrf.mxu1 }
  0xe9   : > { %v1335_v13 = vpop.f32.mrf.mxu3 }
  0xea   : > { %v4680_v1 = vpop.f32.mrf.mxu0 }
  0xef   : > { %v4684_v9 = vpop.f32.mrf.mxu2 }
  0xf0   : > { %5711 = vst [vmem:[#allocation12_spill] sm:$0xff] %v4684_v9  ;;  %v769_v55 = vpop.f32.mrf.mxu1 }
  0xf1   : > { %v770_v42 = vadd.f32 %v769_v55, %v4568_v48  ;;  %v1337_v14 = vpop.f32.mrf.mxu3 }
  0xf2   : > { %v1699_v4 = vpop.f32.mrf.mxu0 }
  0xf3   : > { %3605 = vmatmul.msk.bf16.gmra.mxu1 %vm563_vm2, %v4441_v5  ;;  %v1558_v5 = vrot.slane %v1556_v0, 2  ;;  %v1565_v0 = vshll.u32 %v3914_v22, 16 }
  0xf4   : > { %3624 = vmatmul.msk.bf16.gmra.mxu2 %vm563_vm2, %v884_v34 }
  0xf5   : > { %3730 = vmatmul.msk.bf16.gmra.mxu0 %vm563_vm2, %v1551_v51  ;;  %v885_v51 = vrot.slane %v4368_v10, 1  ;;  %v1559_v35 = vor.u32 %v1558_v5, %v1555_v61 }
  0xf6   : > { %3713 = vmatmul.msk.bf16.gmra.mxu3 %vm563_vm2, %v1249_v26 }
  0xf7   : > { %v969_v49 = vpop.f32.mrf.mxu2  ;;  %v886_v56 = vsel %vm865_vm3, %v883_v37, %v885_v51  ;;  %v1560_v8 = vsel %vm1462_vm4, %v1550_v21, %v1559_v35 }
  0xf8   : > { %v1059_v41 = vadd.f32 %v969_v49, %v770_v42  ;;  %v771_v27 = vpop.f32.mrf.mxu1 }
  0xf9   : > { %v772_v48 = vadd.f32 %v771_v27, %v4580_v29  ;;  %v1340_v9 = vpop.f32.mrf.mxu3  ;;  %v1250_v29 = vrot.slane %v3915_v24, 1 }
  0xfa   : > { %v1420_v23 = vadd.f32 %v1330_v30, %v1059_v41  ;;  %v1701_v18 = vpop.f32.mrf.mxu0 }
  0xfb   : > { %v1251_v21 = vsel %vm865_vm3, %v1248_v58, %v1250_v29  ;;  %v3916_v58 = vld [vmem:[%s4359_s21 + $0x70] sm:$0xff] }
  0xfc   : > { %v4696_v34 = vadd.f32 %v1699_v4, %v1420_v23  ;;  %v1562_v4 = vshrl.u32 %v3914_v22, 16 }
  0xff   : > { %v971_v55 = vpop.f32.mrf.mxu2 }
 0x100   : > { %v1060_v42 = vadd.f32 %v971_v55, %v772_v48  ;;  %v774_v49 = vpop.f32.mrf.mxu1  ;;  %v1564_v48 = vrot.slane %v1562_v4, 1  ;;  %v887_v55 = vrot.slane %v4371_v11, 1 }
 0x101   : > { %v775_v61 = vadd.f32 %v774_v49, %v4592_v2  ;;  %v1342_v27 = vpop.f32.mrf.mxu3 }
 0x102   : > { %v1421_v41 = vadd.f32 %v1332_v17, %v1060_v42  ;;  %v1704_v30 = vpop.f32.mrf.mxu0 }
 0x103   : > { %3606 = vmatmul.msk.bf16.gmra.mxu1 %vm563_vm2, %v4432_v60 }
 0x104   : > { %3625 = vmatmul.msk.bf16.gmra.mxu2 %vm563_vm2, %v886_v56  ;;  %v4706_v26 = vadd.f32 %v1701_v18, %v1421_v41  ;;  %v1567_v56 = vrot.slane %v1565_v0, 2 }
 0x105   : > { %3731 = vmatmul.msk.bf16.gmra.mxu0 %vm563_vm2, %v1560_v8 }
 0x106   : > { %3714 = vmatmul.msk.bf16.gmra.mxu3 %vm563_vm2, %v1251_v21  ;;  %v1568_v22 = vor.u32 %v1567_v56, %v1564_v48 }
 0x107   : > { %v974_v37 = vpop.f32.mrf.mxu2 }
 0x108   : > { %v1061_v17 = vadd.f32 %v974_v37, %v775_v61  ;;  %v776_v23 = vpop.f32.mrf.mxu1  ;;  %v888_v61 = vsel %vm865_vm3, %v885_v51, %v887_v55  ;;  %v1569_v4 = vsel %vm1462_vm4, %v1559_v35, %v1568_v22 }
 0x109   : > { %v777_v2 = vadd.f32 %v776_v23, %v4606_v20  ;;  %v1345_v49 = vpop.f32.mrf.mxu3  ;;  %v1252_v20 = vrot.slane %v3916_v58, 1  ;;  %v1574_v23 = vshll.u32 %v3915_v24, 16 }
 0x10a   : > { %v1422_v5 = vadd.f32 %v1335_v13, %v1061_v17  ;;  %v1706_v60 = vpop.f32.mrf.mxu0  ;;  %v1571_v17 = vshrl.u32 %v3915_v24, 16 }
 0x10b   : > { %v1253_v35 = vsel %vm865_vm3, %v1250_v29, %v1252_v20  ;;  %v3917_v29 = vld [vmem:[%s4359_s21 + $0x78] sm:$0xff] }
 0x10c   : > { %v4712_v18 = vadd.f32 %v1704_v30, %v1422_v5  ;;  %v1573_v56 = vrot.slane %v1571_v17, 1 }
 0x10f   : > { %v976_v42 = vpop.f32.mrf.mxu2 }
 0x110   : > { %v1062_v41 = vadd.f32 %v976_v42, %v777_v2  ;;  %v779_v8 = vpop.f32.mrf.mxu1  ;;  %v1576_v2 = vrot.slane %v1574_v23, 2  ;;  %v889_v42 = vrot.slane %v4408_v38, 1 }
 0x111   : > { %v780_v0 = vadd.f32 %v779_v8, %v4618_v33  ;;  %v1347_v21 = vpop.f32.mrf.mxu3 }
 0x112   : > { %v1423_v13 = vadd.f32 %v1337_v14, %v1062_v41  ;;  %v1709_v37 = vpop.f32.mrf.mxu0  ;;  %v1577_v24 = vor.u32 %v1576_v2, %v1573_v56 }
 0x113   : > { %3607 = vmatmul.msk.bf16.gmra.mxu1 %vm563_vm2, %v4368_v10 }
 0x114   : > { %3626 = vmatmul.msk.bf16.gmra.mxu2 %vm563_vm2, %v888_v61  ;;  %v4722_v30 = vadd.f32 %v1706_v60, %v1423_v13  ;;  %v1578_v17 = vsel %vm1462_vm4, %v1568_v22, %v1577_v24 }
 0x115   : > { %3732 = vmatmul.msk.bf16.gmra.mxu0 %vm563_vm2, %v1569_v4  ;;  %v890_v4 = vsel %vm865_vm3, %v887_v55, %v889_v42 }
 0x116   : > { %3715 = vmatmul.msk.bf16.gmra.mxu3 %vm563_vm2, %v1253_v35 }
 0x117   : > { %v979_v51 = vpop.f32.mrf.mxu2 }
 0x118   : > { %v1063_v14 = vadd.f32 %v979_v51, %v780_v0  ;;  %v781_v5 = vpop.f32.mrf.mxu1  ;;  %v1580_v51 = vshrl.u32 %v3916_v58, 16 }
 0x119   : > { %v782_v33 = vadd.f32 %v781_v5, %v4632_v45  ;;  %v1350_v8 = vpop.f32.mrf.mxu3  ;;  %v1254_v45 = vrot.slane %v3917_v29, 1 }
 0x11a   : > { %v1424_v48 = vadd.f32 %v1340_v9, %v1063_v14  ;;  %v1711_v10 = vpop.f32.mrf.mxu0  ;;  %v1583_v14 = vshll.u32 %v3916_v58, 16  ;;  %v1582_v56 = vrot.slane %v1580_v51, 1 }
 0x11b   : > { %v1255_v22 = vsel %vm865_vm3, %v1252_v20, %v1254_v45  ;;  %v3918_v20 = vld [vmem:[%s4359_s21 + $0x80] sm:$0xff] }
 0x11c   : > { %v4728_v60 = vadd.f32 %v1709_v37, %v1424_v48  ;;  %v1585_v2 = vrot.slane %v1583_v14, 2  ;;  %v1589_v14 = vshrl.u32 %v3917_v29, 16 }
 0x11e   : > { %v1586_v58 = vor.u32 %v1585_v2, %v1582_v56  ;;  %v893_v2 = vrot.slane %v4479_v52, 1 }
 0x11f   : > { %v981_v41 = vpop.f32.mrf.mxu2 }
 0x120   : > { %v1064_v61 = vadd.f32 %v981_v41, %v782_v33  ;;  %v784_v13 = vpop.f32.mrf.mxu1  ;;  %v891_v33 = vrot.slane %v4444_v6, 1 }
 0x121   : > { %v785_v23 = vadd.f32 %v784_v13, %v4644_v57  ;;  %v1352_v5 = vpop.f32.mrf.mxu3 }
 0x122   : > { %v1425_v9 = vadd.f32 %v1342_v27, %v1064_v61  ;;  %v1714_v0 = vpop.f32.mrf.mxu0 }
 0x123   : > { %3608 = vmatmul.msk.bf16.gmra.mxu1 %vm563_vm2, %v4371_v11 }
 0x124   : > { %3627 = vmatmul.msk.bf16.gmra.mxu2 %vm563_vm2, %v890_v4  ;;  %v4738_v37 = vadd.f32 %v1711_v10, %v1425_v9  ;;  %v892_v9 = vsel %vm865_vm3, %v889_v42, %v891_v33 }
 0x125   : > { %3733 = vmatmul.msk.bf16.gmra.mxu0 %vm563_vm2, %v1578_v17 }
 0x126   : > { %3716 = vmatmul.msk.bf16.gmra.mxu3 %vm563_vm2, %v1255_v22 }
 0x127   : > { %v984_v55 = vpop.f32.mrf.mxu2 }
 0x128   : > { %v1065_v27 = vadd.f32 %v984_v55, %v785_v23  ;;  %v786_v35 = vpop.f32.mrf.mxu1  ;;  %v1587_v23 = vsel %vm1462_vm4, %v1577_v24, %v1586_v58  ;;  %v1592_v55 = vshll.u32 %v3917_v29, 16 }
 0x129   : > { %v787_v57 = vadd.f32 %v786_v35, %v4658_v19  ;;  %v1355_v61 = vpop.f32.mrf.mxu3  ;;  %v1256_v19 = vrot.slane %v3918_v20, 1 }
 0x12a   : > { %v1426_v48 = vadd.f32 %v1345_v49, %v1065_v27  ;;  %v1716_v11 = vpop.f32.mrf.mxu0  ;;  %v1594_v56 = vrot.slane %v1592_v55, 2  ;;  %v1601_v55 = vshll.u32 %v3918_v20, 16 }
 0x12b   : > { %v1257_v24 = vsel %vm865_vm3, %v1254_v45, %v1256_v19  ;;  %v3919_v45 = vld [vmem:[%s4359_s21 + $0x88] sm:$0xff] }
 0x12c   : > { %v4744_v10 = vadd.f32 %v1714_v0, %v1426_v48  ;;  %v1591_v48 = vrot.slane %v1589_v14, 1  ;;  %v1598_v14 = vshrl.u32 %v3918_v20, 16 }
 0x12e   : > { %v1595_v29 = vor.u32 %v1594_v56, %v1591_v48  ;;  %v895_v48 = vrot.slane %v4395_v31, 1 }
 0x12f   : > { %v986_v41 = vpop.f32.mrf.mxu2 }
 0x130   : > { %v1066_v13 = vadd.f32 %v986_v41, %v787_v57  ;;  %v789_v4 = vpop.f32.mrf.mxu1 }
 0x131   : > { %v790_v51 = vadd.f32 %v789_v4, %v4668_v36  ;;  %v1357_v27 = vpop.f32.mrf.mxu3 }
 0x132   : > { %v1427_v49 = vadd.f32 %v1347_v21, %v1066_v13  ;;  %v1719_v17 = vpop.f32.mrf.mxu0 }
 0x133   : > { %3609 = vmatmul.msk.bf16.gmra.mxu1 %vm563_vm2, %v4408_v38 }
 0x134   : > { %3628 = vmatmul.msk.bf16.gmra.mxu2 %vm563_vm2, %v892_v9  ;;  %v4754_v0 = vadd.f32 %v1716_v11, %v1427_v49  ;;  %v894_v9 = vsel %vm865_vm3, %v891_v33, %v893_v2 }
 0x135   : > { %3734 = vmatmul.msk.bf16.gmra.mxu0 %vm563_vm2, %v1587_v23  ;;  %v1596_v23 = vsel %vm1462_vm4, %v1586_v58, %v1595_v29 }
 0x136   : > { %3717 = vmatmul.msk.bf16.gmra.mxu3 %vm563_vm2, %v1257_v24  ;;  %v1600_v24 = vrot.slane %v1598_v14, 1 }
 0x137   : > { %v989_v42 = vpop.f32.mrf.mxu2 }
 0x138   : > { %v1067_v21 = vadd.f32 %v989_v42, %v790_v51  ;;  %v791_v35 = vpop.f32.mrf.mxu1 }
 0x139   : > { %v792_v36 = vadd.f32 %v791_v35, %v4680_v1  ;;  %v1360_v41 = vpop.f32.mrf.mxu3  ;;  %v1258_v1 = vrot.slane %v3919_v45, 1 }
 0x13a   : > { %v1428_v22 = vadd.f32 %v1350_v8, %v1067_v21  ;;  %v1721_v38 = vpop.f32.mrf.mxu0 }
 0x13b   : > { %v1259_v58 = vsel %vm865_vm3, %v1256_v19, %v1258_v1  ;;  %v3920_v19 = vld [vmem:[%s4359_s21 + $0x90] sm:$0xff] }
 0x13c   : > { %v4760_v11 = vadd.f32 %v1719_v17, %v1428_v22  ;;  %v1603_v22 = vrot.slane %v1601_v55, 2 }
 0x13e   : > { %v1604_v20 = vor.u32 %v1603_v22, %v1600_v24 }
 0x13f   : > { %v991_v57 = vpop.f32.mrf.mxu2 }
 0x140   : > { %v1068_v13 = vadd.f32 %v991_v57, %v792_v36  ;;  %v794_v4 = vpop.f32.mrf.mxu1 }
 0x141   : > { %v795_v51 = vadd.f32 %v794_v4, %v4564_v46  ;;  %v1362_v42 = vpop.f32.mrf.mxu3  ;;  %v896_v4 = vsel %vm865_vm3, %v893_v2, %v895_v48  ;;  %v1607_v2 = vshrl.u32 %v3919_v45, 16 }
 0x142   : > { %v1429_v8 = vadd.f32 %v1352_v5, %v1068_v13  ;;  %v1724_v49 = vpop.f32.mrf.mxu0 }
 0x143   : > { %3610 = vmatmul.msk.bf16.gmra.mxu1 %vm563_vm2, %v4444_v6 }
 0x144   : > { %3629 = vmatmul.msk.bf16.gmra.mxu2 %vm563_vm2, %v894_v9  ;;  %v4770_v17 = vadd.f32 %v1721_v38, %v1429_v8  ;;  %v1605_v8 = vsel %vm1462_vm4, %v1595_v29, %v1604_v20 }
 0x145   : > { %3735 = vmatmul.msk.bf16.gmra.mxu0 %vm563_vm2, %v1596_v23  ;;  %v1610_v23 = vshll.u32 %v3919_v45, 16 }
 0x146   : > { %3718 = vmatmul.msk.bf16.gmra.mxu3 %vm563_vm2, %v1259_v58  ;;  %v1131_v58 = vld [vmem:[%s4359_s21 + $0x98] sm:$0x1] }
 0x147   : > { %v994_v33 = vpop.f32.mrf.mxu2 }
 0x148   : > { %v1069_v5 = vadd.f32 %v994_v33, %v795_v51  ;;  %v796_v21 = vpop.f32.mrf.mxu1 }
 0x149   : > { %v797_v46 = vadd.f32 %v796_v21, %v4577_v54  ;;  %v1365_v36 = vpop.f32.mrf.mxu3  ;;  %v1260_v54 = vrot.slane %v3920_v19, 1  ;;  %v1612_v21 = vrot.slane %v1610_v23, 2 }
 0x14a   : > { %v1430_v35 = vadd.f32 %v1355_v61, %v1069_v5  ;;  %v1726_v6 = vpop.f32.mrf.mxu0  ;;  %v1609_v5 = vrot.slane %v1607_v2, 1  ;;  %v4155_v2 = vld [vmem:[%s4359_s21 + $0x78] sm:$0xff] }
 0x14c   : > { %v4776_v38 = vadd.f32 %v1724_v49, %v1430_v35 }
 0x14f   : > { %v996_v56 = vpop.f32.mrf.mxu2 }
 0x150   : > { %v1070_v57 = vadd.f32 %v996_v56, %v797_v46  ;;  %v799_v13 = vpop.f32.mrf.mxu1 }
 0x151   : > { %v800_v49 = vadd.f32 %v799_v13, %v4588_v62  ;;  %v4790_v51 = vpop.f32.mrf.mxu3  ;;  %v4798_v62 = vld [vmem:[%s4359_s21 + $0x80] sm:$0xff] }
 0x152   : > { %v1431_v61 = vadd.f32 %v1357_v27, %v1070_v57  ;;  %v1729_v9 = vpop.f32.mrf.mxu0  ;;  %v897_v45 = vrot.slane %v4798_v62, 1 }
 0x153   : > { %3611 = vmatmul.msk.bf16.gmra.mxu1 %vm563_vm2, %v4479_v52  ;;  %v1261_v52 = vsel %vm865_vm3, %v1258_v1, %v1260_v54  ;;  %v1613_v1 = vor.u32 %v1612_v21, %v1609_v5  ;;  %v4822_v21 = vld [vmem:[%s4359_s21 + $0x18] sm:$0xff] }
 0x154   : > { %3630 = vmatmul.msk.bf16.gmra.mxu2 %vm563_vm2, %v896_v4  ;;  %v4786_v31 = vadd.f32 %v1726_v6, %v1431_v61  ;;  %v1207_v6 = vunpack.c.l.b16 %v1131_v58  ;;  %v898_v57 = vsel %vm865_vm3, %v895_v48, %v897_v45 }
 0x155   : > { %3736 = vmatmul.msk.bf16.gmra.mxu0 %vm563_vm2, %v1605_v8  ;;  %v2061_v8 = vld [vmem:[%s4359_s21 + $0x10] sm:$0xc] }
 0x156   : > { %3719 = vmatmul.msk.bf16.gmra.mxu3 %vm563_vm2, %v1261_v52  ;;  %v1226_v13 = vpack.c.b16 %v1207_v6, %v1207_v6  ;;  %v2137_v48 = vunpack.c.l.b16 %v2061_v8 }
 0x157   : > { %v999_v27 = vpop.f32.mrf.mxu2 }
 0x158   : > { %v1071_v29 = vadd.f32 %v999_v27, %v800_v49  ;;  %v801_v14 = vpop.f32.mrf.mxu1  ;;  %v4808_v49 = vld [vmem:[%s4359_s21 + $0x14] sm:$0xf]  ;;  %v1262_v23 = vrot.slane %v1226_v13, 1  ;;  %v1616_v27 = vshrl.u32 %v3920_v19, 16 }
 0x159   : > { %v802_v24 = vadd.f32 %v801_v14, %v4603_v12  ;;  %v4802_v22 = vpop.f32.mrf.mxu3 }
 0x15a   : > { %v1432_v55 = vadd.f32 %v1360_v41, %v1071_v29  ;;  %v1731_v33 = vpop.f32.mrf.mxu0  ;;  %v1619_v29 = vshll.u32 %v3920_v19, 16 }
 0x15c   : > { %v4795_v35 = vadd.f32 %v1729_v9, %v1432_v55  ;;  %v1614_v9 = vsel %vm1462_vm4, %v1604_v20, %v1613_v1 }
 0x15f   : > { %v1001_v41 = vpop.f32.mrf.mxu2 }
 0x160   : > { %v1072_v46 = vadd.f32 %v1001_v41, %v802_v24  ;;  %v804_v56 = vpop.f32.mrf.mxu1  ;;  %v1618_v41 = vrot.slane %v1616_v27, 1 }
 0x161   : > { %v805_v20 = vadd.f32 %v804_v56, %v4614_v28  ;;  %v4818_v52 = vpop.f32.mrf.mxu3  ;;  %v1456_v28 = vld [vmem:[%s4359_s21 + $0x98] sm:$0x3]  ;;  %v4830_v56 = vld [vmem:[%s4359_s21 + $0x88] sm:$0xff] }
 0x162   : > { %v1433_v4 = vadd.f32 %v1362_v42, %v1072_v46  ;;  %v1734_v61 = vpop.f32.mrf.mxu0  ;;  %v5701_v42 = vunpack.c.l.b16 %v4808_v49  ;;  %v1621_v46 = vrot.slane %v1619_v29, 2  ;;  %v899_v19 = vrot.slane %v4830_v56, 1 }
 0x163   : > { %3612 = vmatmul.msk.bf16.gmra.mxu1 %vm563_vm2, %v4155_v2  ;;  %v1460_v2 = vunpack.c.l.b16 %v1456_v28 }
 0x164   : > { %3631 = vmatmul.msk.bf16.gmra.mxu2 %vm563_vm2, %v898_v57  ;;  %v4813_v12 = vadd.f32 %v1731_v33, %v1433_v4  ;;  %v1263_v33 = vsel %vm865_vm3, %v1260_v54, %v1262_v23  ;;  %v4826_v58 = vpack.c.b16 %v5701_v42, %v2137_v48  ;;  %v2438_v4 = vshrl.u32 %v4822_v21, 16 }
 0x165   : > { %3737 = vmatmul.msk.bf16.gmra.mxu0 %vm563_vm2, %v1614_v9  ;;  %v1622_v8 = vor.u32 %v1621_v46, %v1618_v41  ;;  %v900_v27 = vsel %vm865_vm3, %v897_v45, %v899_v19 }
 0x166   : > { %5712 = vst [vmem:[#allocation13_spill] sm:$0xff] %v4813_v12  ;;  %3720 = vmatmul.msk.bf16.gmra.mxu3 %vm563_vm2, %v1263_v33  ;;  %v2430_v54 = vshrl.u32 %v4826_v58, 16  ;;  %v2433_v13 = vshll.u32 %v4826_v58, 16  ;;  %v4846_v12 = vpack.c.b16 %v1460_v2, %v1460_v2  ;;  %v901_v2 = vrot.slane %v4468_v40, 1 }
 0x167   : > { %v1004_v14 = vpop.f32.mrf.mxu2 }
 0x168   : > { %v1073_v55 = vadd.f32 %v1004_v14, %v805_v20  ;;  %v806_v5 = vpop.f32.mrf.mxu1  ;;  %v2432_v29 = vrot.slane %v2430_v54, 2  ;;  %v2435_v14 = vrot.slane %v2433_v13, 3 }
 0x169   : > { %v807_v9 = vadd.f32 %v806_v5, %v4629_v44  ;;  %v4841_v48 = vpop.f32.mrf.mxu3 }
 0x16a   : > { %v1434_v6 = vadd.f32 %v1365_v36, %v1073_v55  ;;  %v1736_v24 = vpop.f32.mrf.mxu0  ;;  %v2441_v36 = vshll.u32 %v4822_v21, 16  ;;  %v2440_v55 = vrot.slane %v2438_v4, 2  ;;  %v2436_v45 = vor.u32 %v2435_v14, %v2432_v29 }
 0x16c   : > { %v4834_v57 = vadd.f32 %v1734_v61, %v1434_v6  ;;  %v2443_v33 = vrot.slane %v2441_v36, 3 }
 0x16e   : > { %5713 = vst [vmem:[#allocation14_spill] sm:$0xff] %v4834_v57  ;;  %v1623_v57 = vsel %vm1462_vm4, %v1613_v1, %v1622_v8  ;;  %v2444_v5 = vor.u32 %v2443_v33, %v2440_v55  ;;  %v1628_v1 = vshll.u32 %v4846_v12, 16  ;;  %v902_v33 = vsel %vm865_vm3, %v899_v19, %v901_v2  ;;  %v4891_v2 = vld [vmem:[%s4359_s21 + $0x28] sm:$0xff] }
 0x16f   : > { %v1006_v23 = vpop.f32.mrf.mxu2 }
 0x170   : > { %v1074_v20 = vadd.f32 %v1006_v23, %v807_v9  ;;  %v809_v61 = vpop.f32.mrf.mxu1  ;;  %v2445_v13 = vsel %vm2428_vm5, %v2436_v45, %v2444_v5 }
 0x171   : > { %v810_v41 = vadd.f32 %v809_v61, %v4640_v43  ;;  %v4857_v28 = vpop.f32.mrf.mxu3  ;;  %v1630_v43 = vrot.slane %v1628_v1, 2  ;;  %v2791_v1 = vld [vmem:[%s4359_s21 + $0x10] sm:$0x8] }
 0x172   : > { %v1435_v6 = vadd.f32 %v4790_v51, %v1074_v20  ;;  %v1739_v42 = vpop.f32.mrf.mxu0  ;;  %v1625_v51 = vshrl.u32 %v4846_v12, 16 }
 0x173   : > { %3613 = vmatmul.msk.bf16.gmra.mxu1 %vm563_vm2, %v4798_v62 }
 0x174   : > { %3632 = vmatmul.msk.bf16.gmra.mxu2 %vm563_vm2, %v900_v27  ;;  %v4851_v44 = vadd.f32 %v1736_v24, %v1435_v6  ;;  %v4861_v24 = vld [vmem:[%s4359_s21 + $0x20] sm:$0xff]  ;;  %v1627_v36 = vrot.slane %v1625_v51, 1  ;;  %v1825_v6 = vld [vmem:[%s4359_s21 + $0x8] sm:$0xc] }
 0x175   : > { %3738 = vmatmul.msk.bf16.gmra.mxu0 %vm563_vm2, %v1623_v57  ;;  %v2447_v23 = vshrl.u32 %v4861_v24, 16  ;;  %v2450_v20 = vshll.u32 %v4861_v24, 16 }
 0x176   : > { %3847 = vmatmul.msk.bf16.vlgmr.msra.gmra.mxu3 %vm563_vm2, %v2445_v13  ;;  %v1631_v61 = vor.u32 %v1630_v43, %v1627_v36 }
 0x177   : > { %v1009_v46 = vpop.f32.mrf.mxu2  ;;  %v2452_v45 = vrot.slane %v2450_v20, 3  ;;  %v5715_v20 = vunpack.c.l.b16 %v4808_v49 }
 0x178   : > { %v1075_v54 = vadd.f32 %v1009_v46, %v810_v41  ;;  %v811_v62 = vpop.f32.mrf.mxu1  ;;  %v1632_v51 = vsel %vm1462_vm4, %v1622_v8, %v1631_v61  ;;  %v4157_v61 = vld [vmem:[%s4359_s21 + $0x10] sm:$0xff] }
 0x179   : > { %v812_v27 = vadd.f32 %v811_v62, %v4655_v7  ;;  %v1829_v7 = vunpack.c.l.b16 %v1825_v6  ;;  %v2799_v6 = vrot.slane %v4822_v21, 3 }
 0x17a   : > { %v1436_v57 = vadd.f32 %v4802_v22, %v1075_v54  ;;  %v1741_v4 = vpop.f32.mrf.mxu0  ;;  %v4871_v22 = vpop.f32.mrf.mxu3 }
 0x17c   : > { %v4865_v9 = vadd.f32 %v1739_v42, %v1436_v57  ;;  %v2449_v42 = vrot.slane %v2447_v23, 2  ;;  %v5714_v57 = vunpack.c.l.b16 %v4490_v63  ;;  %v2193_v63 = vrot.slane %v4826_v58, 2 }
 0x17e   : > { %v2453_v19 = vor.u32 %v2452_v45, %v2449_v42  ;;  %v1830_v36 = vpack.c.b16 %v5714_v57, %v1829_v7 }
 0x17f   : > { %v1011_v29 = vpop.f32.mrf.mxu2 }
 0x180   : > { %v1076_v14 = vadd.f32 %v1011_v29, %v812_v27  ;;  %v814_v55 = vpop.f32.mrf.mxu1  ;;  %v2454_v43 = vsel %vm2428_vm5, %v2444_v5, %v2453_v19  ;;  %v1833_v29 = vrot.slane %v4157_v61, 2  ;;  %v2456_v5 = vshrl.u32 %v4891_v2, 16 }
 0x181   : > { %v815_v54 = vadd.f32 %v814_v55, %v4664_v32  ;;  %v1832_v32 = vrot.slane %v1830_v36, 2  ;;  %v2194_v55 = vrot.slane %v4822_v21, 2 }
 0x182   : > { %v1437_v40 = vadd.f32 %v4818_v52, %v1076_v14  ;;  %v1744_v41 = vpop.f32.mrf.mxu0  ;;  %v2795_v52 = vunpack.c.l.b16 %v2791_v1  ;;  %v4885_v13 = vpop.f32.mrf.mxu3  ;;  %v2458_v1 = vrot.slane %v2456_v5, 2 }
 0x183   : > { %3614 = vmatmul.msk.bf16.gmra.mxu1 %vm563_vm2, %v4830_v56  ;;  %v2195_v58 = vsel %vm1831_vm6, %v2193_v63, %v2194_v55  ;;  %v2196_v63 = vrot.slane %v4861_v24, 2 }
 0x184   : > { %3633 = vmatmul.msk.bf16.gmra.mxu2 %vm563_vm2, %v902_v33  ;;  %v4881_v46 = vadd.f32 %v1741_v4, %v1437_v40  ;;  %v2796_v27 = vpack.c.b16 %v5715_v20, %v2795_v52  ;;  %v2459_v33 = vshll.u32 %v4891_v2, 16 }
 0x185   : > { %3739 = vmatmul.msk.bf16.gmra.mxu0 %vm563_vm2, %v1632_v51  ;;  %v1834_v51 = vsel %vm1831_vm6, %v1832_v32, %v1833_v29  ;;  %v4158_v32 = vld [vmem:[%s4359_s21 + $0x18] sm:$0xff] }
 0x186   : > { %3848 = vmatmul.msk.bf16.gmra.mxu3 %vm563_vm2, %v2454_v43  ;;  %v2798_v49 = vrot.slane %v2796_v27, 3  ;;  %v2461_v7 = vrot.slane %v2459_v33, 3  ;;  %v1835_v61 = vrot.slane %v4158_v32, 2 }
 0x187   : > { %v1014_v62 = vpop.f32.mrf.mxu2 }
 0x188   : > { %v1077_v8 = vadd.f32 %v1014_v62, %v815_v54  ;;  %v816_v56 = vpop.f32.mrf.mxu1  ;;  %v2462_v62 = vor.u32 %v2461_v7, %v2458_v1 }
 0x18a   : > { %v1438_v4 = vadd.f32 %v4841_v48, %v1077_v8  ;;  %v1746_v23 = vpop.f32.mrf.mxu0  ;;  %v817_v48 = vadd.f32 %v816_v56, %v4677_v47  ;;  %v1385_v45 = vpop.f32.mrf.mxu3  ;;  %v2800_v47 = vsel %vm2797_vm7, %v2798_v49, %v2799_v6 }
 0x18c   : > { %v4898_v14 = vadd.f32 %v1744_v41, %v1438_v4  ;;  %v4918_v4 = vld [vmem:[%s4359_s21 + $0x30] sm:$0xff] }
 0x18d   : > { %v2468_v5 = vshll.u32 %v4918_v4, 16 }
 0x18f   : > { %v1016_v42 = vpop.f32.mrf.mxu2 }
 0x190   : > { %v1078_v40 = vadd.f32 %v1016_v42, %v817_v48  ;;  %v819_v41 = vpop.f32.mrf.mxu1 }
 0x191   : > { %v820_v8 = vadd.f32 %v819_v41, %v4575_v53  ;;  %v2465_v53 = vshrl.u32 %v4918_v4, 16  ;;  %v2197_v41 = vsel %vm1831_vm6, %v2194_v55, %v2196_v63 }
 0x192   : > { %v1439_v54 = vadd.f32 %v4857_v28, %v1078_v40  ;;  %v1749_v52 = vpop.f32.mrf.mxu0  ;;  %v1387_v36 = vpop.f32.mrf.mxu3  ;;  %v2463_v28 = vsel %vm2428_vm5, %v2453_v19, %v2462_v62  ;;  %v2801_v19 = vrot.slane %v4861_v24, 3  ;;  %v1836_v40 = vsel %vm1831_vm6, %v1833_v29, %v1835_v61 }
 0x193   : > { %3741 = vmatmul.msk.bf16.vlgmr.msra.gmra.mxu1 %vm563_vm2, %v1834_v51  ;;  %v2467_v51 = vrot.slane %v2465_v53, 2 }
 0x194   : > { %3828 = vmatmul.msk.bf16.vlgmr.msra.gmra.mxu2 %vm563_vm2, %v2195_v58  ;;  %v4912_v21 = vadd.f32 %v1746_v23, %v1439_v54  ;;  %v2470_v58 = vrot.slane %v2468_v5, 3  ;;  %v2802_v54 = vsel %vm2797_vm7, %v2799_v6, %v2801_v19 }
 0x195   : > { %3866 = vmatmul.msk.bf16.vlgmr.msra.gmra.mxu0 %vm563_vm2, %v2800_v47 }
 0x196   : > { %3849 = vmatmul.msk.bf16.gmra.mxu3 %vm563_vm2, %v2463_v28  ;;  %v2471_v24 = vor.u32 %v2470_v58, %v2467_v51  ;;  %v4159_v28 = vld [vmem:[%s4359_s21 + $0x20] sm:$0xff] }
 0x197   : > { %v1019_v57 = vpop.f32.mrf.mxu2 }
 0x198   : > { %v1079_v56 = vadd.f32 %v1019_v57, %v820_v8  ;;  %v821_v43 = vpop.f32.mrf.mxu1  ;;  %v4942_v57 = vld [vmem:[%s4359_s21 + $0x38] sm:$0xff] }
 0x199   : > { %v822_v33 = vadd.f32 %v821_v43, %v4584_v59  ;;  %v2477_v32 = vshll.u32 %v4942_v57, 16 }
 0x19a   : > { %v1440_v20 = vadd.f32 %v4871_v22, %v1079_v56  ;;  %v1751_v27 = vpop.f32.mrf.mxu0  ;;  %v1390_v49 = vpop.f32.mrf.mxu3 }
 0x19c   : > { %v4922_v23 = vadd.f32 %v1749_v52, %v1440_v20  ;;  %v1837_v20 = vrot.slane %v4159_v28, 2 }
 0x19f   : > { %v1021_v48 = vpop.f32.mrf.mxu2 }
 0x1a0   : > { %v1080_v22 = vadd.f32 %v1021_v48, %v822_v33  ;;  %v824_v42 = vpop.f32.mrf.mxu1 }
 0x1a1   : > { %v825_v29 = vadd.f32 %v824_v42, %v4599_v16  ;;  %v2474_v16 = vshrl.u32 %v4942_v57, 16 }
 0x1a2   : > { %v1441_v1 = vadd.f32 %v4885_v13, %v1080_v22  ;;  %v1754_v7 = vpop.f32.mrf.mxu0  ;;  %v1392_v52 = vpop.f32.mrf.mxu3  ;;  %v2472_v13 = vsel %vm2428_vm5, %v2462_v62, %v2471_v24  ;;  %v2803_v62 = vrot.slane %v4891_v2, 3  ;;  %v1838_v22 = vsel %vm1831_vm6, %v1835_v61, %v1837_v20 }
 0x1a3   : > { %3742 = vmatmul.msk.bf16.gmra.mxu1 %vm563_vm2, %v1836_v40  ;;  %v2476_v40 = vrot.slane %v2474_v16, 2 }
 0x1a4   : > { %3829 = vmatmul.msk.bf16.gmra.mxu2 %vm563_vm2, %v2197_v41  ;;  %v4936_v59 = vadd.f32 %v1751_v27, %v1441_v1  ;;  %v2198_v27 = vrot.slane %v4891_v2, 2  ;;  %v2479_v41 = vrot.slane %v2477_v32, 3  ;;  %v2804_v1 = vsel %vm2797_vm7, %v2801_v19, %v2803_v62 }
 0x1a5   : > { %3867 = vmatmul.msk.bf16.gmra.mxu0 %vm563_vm2, %v2802_v54 }
 0x1a6   : > { %3850 = vmatmul.msk.bf16.gmra.mxu3 %vm563_vm2, %v2472_v13  ;;  %v2199_v42 = vsel %vm1831_vm6, %v2196_v63, %v2198_v27  ;;  %v2480_v2 = vor.u32 %v2479_v41, %v2476_v40  ;;  %v4160_v13 = vld [vmem:[%s4359_s21 + $0x28] sm:$0xff] }
 0x1a7   : > { %v1024_v55 = vpop.f32.mrf.mxu2 }
 0x1a8   : > { %v1081_v47 = vadd.f32 %v1024_v55, %v825_v29  ;;  %v826_v8 = vpop.f32.mrf.mxu1  ;;  %v4964_v55 = vld [vmem:[%s4359_s21 + $0x40] sm:$0xff] }
 0x1a9   : > { %v827_v53 = vadd.f32 %v826_v8, %v4610_v25  ;;  %v2486_v28 = vshll.u32 %v4964_v55, 16 }
 0x1aa   : > { %v1442_v6 = vadd.f32 %v1385_v45, %v1081_v47  ;;  %v1756_v56 = vpop.f32.mrf.mxu0  ;;  %v1395_v33 = vpop.f32.mrf.mxu3 }
 0x1ac   : > { %v4945_v43 = vadd.f32 %v1754_v7, %v1442_v6  ;;  %v1839_v6 = vrot.slane %v4160_v13, 2 }
 0x1af   : > { %v1026_v5 = vpop.f32.mrf.mxu2 }
 0x1b0   : > { %v1082_v45 = vadd.f32 %v1026_v5, %v827_v53  ;;  %v829_v48 = vpop.f32.mrf.mxu1 }
 0x1b1   : > { %v830_v61 = vadd.f32 %v829_v48, %v4625_v39  ;;  %v2483_v39 = vshrl.u32 %v4964_v55, 16 }
 0x1b2   : > { %v1443_v51 = vadd.f32 %v1387_v36, %v1082_v45  ;;  %v1759_v58 = vpop.f32.mrf.mxu0  ;;  %v1397_v7 = vpop.f32.mrf.mxu3  ;;  %v2481_v36 = vsel %vm2428_vm5, %v2471_v24, %v2480_v2  ;;  %v2805_v24 = vrot.slane %v4918_v4, 3  ;;  %v1840_v45 = vsel %vm1831_vm6, %v1837_v20, %v1839_v6 }
 0x1b3   : > { %3743 = vmatmul.msk.bf16.gmra.mxu1 %vm563_vm2, %v1838_v22  ;;  %v2485_v22 = vrot.slane %v2483_v39, 2 }
 0x1b4   : > { %3830 = vmatmul.msk.bf16.gmra.mxu2 %vm563_vm2, %v2199_v42  ;;  %v4958_v25 = vadd.f32 %v1756_v56, %v1443_v51  ;;  %v2200_v56 = vrot.slane %v4918_v4, 2  ;;  %v2488_v42 = vrot.slane %v2486_v28, 3  ;;  %v2806_v51 = vsel %vm2797_vm7, %v2803_v62, %v2805_v24 }
 0x1b5   : > { %3868 = vmatmul.msk.bf16.gmra.mxu0 %vm563_vm2, %v2804_v1 }
 0x1b6   : > { %3851 = vmatmul.msk.bf16.gmra.mxu3 %vm563_vm2, %v2481_v36  ;;  %v2201_v48 = vsel %vm1831_vm6, %v2198_v27, %v2200_v56  ;;  %v2489_v4 = vor.u32 %v2488_v42, %v2485_v22  ;;  %v4161_v36 = vld [vmem:[%s4359_s21 + $0x30] sm:$0xff] }
 0x1b7   : > { %v1029_v63 = vpop.f32.mrf.mxu2 }
 0x1b8   : > { %v1083_v54 = vadd.f32 %v1029_v63, %v830_v61  ;;  %v831_v29 = vpop.f32.mrf.mxu1  ;;  %v4986_v63 = vld [vmem:[%s4359_s21 + $0x48] sm:$0xff] }
 0x1b9   : > { %v832_v16 = vadd.f32 %v831_v29, %v4636_v50  ;;  %v2495_v13 = vshll.u32 %v4986_v63, 16 }
 0x1ba   : > { %v1444_v19 = vadd.f32 %v1390_v49, %v1083_v54  ;;  %v1761_v47 = vpop.f32.mrf.mxu0  ;;  %v1400_v53 = vpop.f32.mrf.mxu3 }
 0x1bc   : > { %v4967_v8 = vadd.f32 %v1759_v58, %v1444_v19  ;;  %v1841_v19 = vrot.slane %v4161_v36, 2  ;;  %v2204_v36 = vrot.slane %v4964_v55, 2 }
 0x1bf   : > { %v1031_v32 = vpop.f32.mrf.mxu2 }
 0x1c0   : > { %v1084_v49 = vadd.f32 %v1031_v32, %v832_v16  ;;  %v834_v5 = vpop.f32.mrf.mxu1 }
 0x1c1   : > { %v835_v20 = vadd.f32 %v834_v5, %v4651_v3  ;;  %v2492_v3 = vshrl.u32 %v4986_v63, 16 }
 0x1c2   : > { %v1445_v40 = vadd.f32 %v1392_v52, %v1084_v49  ;;  %v1764_v41 = vpop.f32.mrf.mxu0  ;;  %v1402_v58 = vpop.f32.mrf.mxu3  ;;  %v2490_v52 = vsel %vm2428_vm5, %v2480_v2, %v2489_v4  ;;  %v2807_v2 = vrot.slane %v4942_v57, 3  ;;  %v1842_v49 = vsel %vm1831_vm6, %v1839_v6, %v1841_v19  ;;  %v5716_v6 = vld [vmem:[#allocation11_spill] sm:$0xff] }
 0x1c3   : > { %3744 = vmatmul.msk.bf16.gmra.mxu1 %vm563_vm2, %v1840_v45  ;;  %v2494_v45 = vrot.slane %v2492_v3, 2 }
 0x1c4   : > { %3831 = vmatmul.msk.bf16.gmra.mxu2 %vm563_vm2, %v2201_v48  ;;  %v4980_v50 = vadd.f32 %v1761_v47, %v1445_v40  ;;  %v2202_v47 = vrot.slane %v4942_v57, 2  ;;  %v2497_v48 = vrot.slane %v2495_v13, 3  ;;  %v2808_v40 = vsel %vm2797_vm7, %v2805_v24, %v2807_v2 }
 0x1c5   : > { %3869 = vmatmul.msk.bf16.gmra.mxu0 %vm563_vm2, %v2806_v51 }
 0x1c6   : > { %3852 = vmatmul.msk.bf16.gmra.mxu3 %vm563_vm2, %v2490_v52  ;;  %v2203_v5 = vsel %vm1831_vm6, %v2200_v56, %v2202_v47  ;;  %v2498_v57 = vor.u32 %v2497_v48, %v2494_v45  ;;  %v2205_v45 = vsel %vm1831_vm6, %v2202_v47, %v2204_v36 }
 0x1c7   : > { %v1034_v27 = vpop.f32.mrf.mxu2 }
 0x1c8   : > { %v1085_v1 = vadd.f32 %v1034_v27, %v835_v20  ;;  %v836_v61 = vpop.f32.mrf.mxu1 }
 0x1c9   : > { %v837_v39 = vadd.f32 %v836_v61, %v4662_v15 }
 0x1ca   : > { %v1446_v62 = vadd.f32 %v1395_v33, %v1085_v1  ;;  %v1766_v54 = vpop.f32.mrf.mxu0  ;;  %v1405_v16 = vpop.f32.mrf.mxu3  ;;  %v5008_v1 = vld [vmem:[%s4359_s21 + $0x50] sm:$0xff] }
 0x1cb   : > { %v2501_v3 = vshrl.u32 %v5008_v1, 16  ;;  %v2504_v13 = vshll.u32 %v5008_v1, 16 }
 0x1cc   : > { %v4989_v29 = vadd.f32 %v1764_v41, %v1446_v62  ;;  %v4162_v62 = vld [vmem:[%s4359_s21 + $0x38] sm:$0xff] }
 0x1cd   : > { %v2503_v48 = vrot.slane %v2501_v3, 2 }
 0x1cf   : > { %v1036_v28 = vpop.f32.mrf.mxu2 }
 0x1d0   : > { %v1086_v33 = vadd.f32 %v1036_v28, %v837_v39  ;;  %v839_v32 = vpop.f32.mrf.mxu1  ;;  %v5717_v39 = vld [vmem:[#allocation12_spill] sm:$0xff] }
 0x1d1   : > { %v840_v41 = vadd.f32 %v839_v32, %v5716_v6 }
 0x1d2   : > { %v1447_v22 = vadd.f32 %v1397_v7, %v1086_v33  ;;  %v1769_v42 = vpop.f32.mrf.mxu0  ;;  %v1407_v51 = vpop.f32.mrf.mxu3  ;;  %v2499_v7 = vsel %vm2428_vm5, %v2489_v4, %v2498_v57  ;;  %v2809_v4 = vrot.slane %v4964_v55, 3 }
 0x1d3   : > { %3745 = vmatmul.msk.bf16.gmra.mxu1 %vm563_vm2, %v1842_v49 }
 0x1d4   : > { %3832 = vmatmul.msk.bf16.gmra.mxu2 %vm563_vm2, %v2203_v5  ;;  %v5002_v15 = vadd.f32 %v1766_v54, %v1447_v22  ;;  %v1843_v54 = vrot.slane %v4162_v62, 2  ;;  %v2506_v22 = vrot.slane %v2504_v13, 3  ;;  %v2810_v6 = vsel %vm2797_vm7, %v2807_v2, %v2809_v4 }
 0x1d5   : > { %3870 = vmatmul.msk.bf16.gmra.mxu0 %vm563_vm2, %v2808_v40 }
 0x1d6   : > { %3853 = vmatmul.msk.bf16.gmra.mxu3 %vm563_vm2, %v2499_v7  ;;  %v1844_v5 = vsel %vm1831_vm6, %v1841_v19, %v1843_v54  ;;  %v5718_v19 = vld [vmem:[#allocation5_spill] sm:$0xff] }
 0x1d7   : > { %v1039_v56 = vpop.f32.mrf.mxu2 }
 0x1d8   : > { %v1087_v20 = vadd.f32 %v1039_v56, %v840_v41  ;;  %v841_v27 = vpop.f32.mrf.mxu1  ;;  %v2507_v41 = vor.u32 %v2506_v22, %v2503_v48 }
 0x1d9   : > { %v842_v28 = vadd.f32 %v841_v27, %v5717_v39  ;;  %v2206_v39 = vrot.slane %v4986_v63, 2 }
 0x1da   : > { %v1448_v24 = vadd.f32 %v1400_v53, %v1087_v20  ;;  %v1771_v61 = vpop.f32.mrf.mxu0  ;;  %v1410_v32 = vpop.f32.mrf.mxu3 }
 0x1dc   : > { %v5011_v52 = vadd.f32 %v1769_v42, %v1448_v24  ;;  %v5030_v24 = vld [vmem:[%s4359_s21 + $0x58] sm:$0xff] }
 0x1df   : > { %v1041_v33 = vpop.f32.mrf.mxu2 }
 0x1e0   : > { %v1088_v53 = vadd.f32 %v1041_v33, %v842_v28  ;;  %v844_v49 = vpop.f32.mrf.mxu1  ;;  %v2510_v28 = vshrl.u32 %v5030_v24, 16  ;;  %v2513_v33 = vshll.u32 %v5030_v24, 16 }
 0x1e1   : > { %v845_v56 = vadd.f32 %v844_v49, %v5718_v19 }
 0x1e2   : > { %v1449_v42 = vadd.f32 %v1402_v58, %v1088_v53  ;;  %v1774_v40 = vpop.f32.mrf.mxu0  ;;  %v1412_v20 = vpop.f32.mrf.mxu3  ;;  %v2508_v58 = vsel %vm2428_vm5, %v2498_v57, %v2507_v41  ;;  %v5719_v53 = vld [vmem:[#allocation6_spill] sm:$0xff]  ;;  %v2811_v57 = vrot.slane %v4986_v63, 3 }
 0x1e3   : > { %3746 = vmatmul.msk.bf16.gmra.mxu1 %vm563_vm2, %v1844_v5 }
 0x1e4   : > { %3833 = vmatmul.msk.bf16.gmra.mxu2 %vm563_vm2, %v2205_v45  ;;  %v5024_v55 = vadd.f32 %v1771_v61, %v1449_v42  ;;  %v4163_v61 = vld [vmem:[%s4359_s21 + $0x40] sm:$0xff]  ;;  %v2207_v42 = vsel %vm1831_vm6, %v2204_v36, %v2206_v39 }
 0x1e5   : > { %3871 = vmatmul.msk.bf16.gmra.mxu0 %vm563_vm2, %v2810_v6  ;;  %v1845_v13 = vrot.slane %v4163_v61, 2  ;;  %v2515_v6 = vrot.slane %v2513_v33, 3 }
 0x1e6   : > { %3854 = vmatmul.msk.bf16.gmra.mxu3 %vm563_vm2, %v2508_v58 }
 0x1e7   : > { %v1044_v47 = vpop.f32.mrf.mxu2  ;;  %v1846_v22 = vsel %vm1831_vm6, %v1843_v54, %v1845_v13  ;;  %v5720_v54 = vld [vmem:[#allocation7_spill] sm:$0xff] }
 0x1e8   : > { %v1089_v27 = vadd.f32 %v1044_v47, %v845_v56  ;;  %v846_v7 = vpop.f32.mrf.mxu1  ;;  %v2812_v47 = vsel %vm2797_vm7, %v2809_v4, %v2811_v57 }
 0x1e9   : > { %v847_v49 = vadd.f32 %v846_v7, %v5719_v53 }
 0x1ea   : > { %v1450_v2 = vadd.f32 %v1405_v16, %v1089_v27  ;;  %v1776_v62 = vpop.f32.mrf.mxu0  ;;  %v1415_v45 = vpop.f32.mrf.mxu3 }
 0x1ec   : > { %v5033_v3 = vadd.f32 %v1774_v40, %v1450_v2  ;;  %v2512_v40 = vrot.slane %v2510_v28, 2  ;;  %v5052_v28 = vld [vmem:[%s4359_s21 + $0x60] sm:$0xff] }
 0x1ee   : > { %v2516_v27 = vor.u32 %v2515_v6, %v2512_v40 }
 0x1ef   : > { %v1046_v5 = vpop.f32.mrf.mxu2 }
 0x1f0   : > { %v1090_v16 = vadd.f32 %v1046_v5, %v847_v49  ;;  %v849_v48 = vpop.f32.mrf.mxu1  ;;  %v2208_v5 = vrot.slane %v5008_v1, 2 }
 0x1f1   : > { %v850_v7 = vadd.f32 %v849_v48, %v5720_v54  ;;  %v2522_v48 = vshll.u32 %v5052_v28, 16 }
 0x1f2   : > { %v1451_v19 = vadd.f32 %v1407_v51, %v1090_v16  ;;  %v1779_v56 = vpop.f32.mrf.mxu0  ;;  %v1417_v58 = vpop.f32.mrf.mxu3  ;;  %v2517_v51 = vsel %vm2428_vm5, %v2507_v41, %v2516_v27  ;;  %v2519_v16 = vshrl.u32 %v5052_v28, 16  ;;  %v2813_v41 = vrot.slane %v5008_v1, 3 }
 0x1f3   : > { %3747 = vmatmul.msk.bf16.gmra.mxu1 %vm563_vm2, %v1846_v22  ;;  %v5721_v22 = vld [vmem:[#allocation8_spill] sm:$0xff] }
 0x1f4   : > { %3834 = vmatmul.msk.bf16.gmra.mxu2 %vm563_vm2, %v2207_v42  ;;  %v5046_v63 = vadd.f32 %v1776_v62, %v1451_v19  ;;  %v4164_v62 = vld [vmem:[%s4359_s21 + $0x48] sm:$0xff]  ;;  %v2521_v54 = vrot.slane %v2519_v16, 2 }
 0x1f5   : > { %3872 = vmatmul.msk.bf16.gmra.mxu0 %vm563_vm2, %v2812_v47  ;;  %v1847_v49 = vrot.slane %v4164_v62, 2 }
 0x1f6   : > { %3855 = vmatmul.msk.bf16.gmra.mxu3 %vm563_vm2, %v2517_v51  ;;  %v2814_v51 = vsel %vm2797_vm7, %v2811_v57, %v2813_v41  ;;  %v5076_v57 = vld [vmem:[%s4359_s21 + $0x68] sm:$0xff] }
 0x1f7   : > { %v1049_v36 = vpop.f32.mrf.mxu2  ;;  %v1848_v47 = vsel %vm1831_vm6, %v1845_v13, %v1847_v49  ;;  %v5723_v13 = vld [vmem:[#allocation9_spill] sm:$0xff] }
 0x1f8   : > { %v1091_v2 = vadd.f32 %v1049_v36, %v850_v7  ;;  %v851_v61 = vpop.f32.mrf.mxu1  ;;  %v2524_v7 = vrot.slane %v2522_v48, 3 }
 0x1f9   : > { %v852_v42 = vadd.f32 %v851_v61, %v5721_v22 }
 0x1fa   : > { %v1452_v4 = vadd.f32 %v1410_v32, %v1091_v2  ;;  %v1781_v33 = vpop.f32.mrf.mxu0  ;;  %v2665_v6 = vpop.f32.mrf.mxu3  ;;  %v2525_v61 = vor.u32 %v2524_v7, %v2521_v54  ;;  %v5725_v54 = vld [vmem:[#allocation10_spill] sm:$0xff] }
 0x1fc   : > { %v5055_v53 = vadd.f32 %v1779_v56, %v1452_v4  ;;  %v2209_v56 = vsel %vm1831_vm6, %v2206_v39, %v2208_v5  ;;  %v2526_v48 = vsel %vm2428_vm5, %v2516_v27, %v2525_v61  ;;  %v2815_v27 = vrot.slane %v5030_v24, 3 }
 0x1ff   : > { %v1051_v40 = vpop.f32.mrf.mxu2 }
 0x200   : > { %v1092_v32 = vadd.f32 %v1051_v40, %v852_v42  ;;  %v854_v19 = vpop.f32.mrf.mxu1  ;;  %v4165_v40 = vld [vmem:[%s4359_s21 + $0x50] sm:$0xff] }
 0x201   : > { %v855_v4 = vadd.f32 %v854_v19, %v5723_v13  ;;  %v2528_v19 = vshrl.u32 %v5076_v57, 16 }
 0x202   : > { %v1453_v36 = vadd.f32 %v1412_v20, %v1092_v32  ;;  %v1784_v2 = vpop.f32.mrf.mxu0  ;;  %v5072_v62 = vpop.f32.mrf.mxu3  ;;  %v1849_v32 = vrot.slane %v4165_v40, 2  ;;  %v2816_v40 = vsel %vm2797_vm7, %v2813_v41, %v2815_v27  ;;  %v5102_v41 = vld [vmem:[%s4359_s21 + $0x70] sm:$0xff] }
 0x203   : > { %3748 = vmatmul.msk.bf16.gmra.mxu1 %vm563_vm2, %v1848_v47  ;;  %v2210_v47 = vrot.slane %v5030_v24, 2 }
 0x204   : > { %3835 = vmatmul.msk.bf16.gmra.mxu2 %vm563_vm2, %v2209_v56  ;;  %v5068_v1 = vadd.f32 %v1781_v33, %v1453_v36  ;;  %v2531_v56 = vshll.u32 %v5076_v57, 16 }
 0x205   : > { %3873 = vmatmul.msk.bf16.gmra.mxu0 %vm563_vm2, %v2814_v51 }
 0x206   : > { %5722 = vst [vmem:[#allocation11_spill] sm:$0xff] %v5068_v1  ;;  %3856 = vmatmul.msk.bf16.gmra.mxu3 %vm563_vm2, %v2526_v48 }
 0x207   : > { %v1054_v39 = vpop.f32.mrf.mxu2 }
 0x208   : > { %v1093_v16 = vadd.f32 %v1054_v39, %v855_v4  ;;  %v856_v20 = vpop.f32.mrf.mxu1  ;;  %v2211_v4 = vsel %vm1831_vm6, %v2208_v5, %v2210_v47  ;;  %v2530_v39 = vrot.slane %v2528_v19, 2 }
 0x209   : > { %v857_v7 = vadd.f32 %v856_v20, %v5725_v54 }
 0x20a   : > { %v1454_v22 = vadd.f32 %v1415_v45, %v1093_v16  ;;  %v1786_v42 = vpop.f32.mrf.mxu0  ;;  %v5087_v51 = vpop.f32.mrf.mxu3  ;;  %v2533_v16 = vrot.slane %v2531_v56, 3 }
 0x20c   : > { %v5079_v33 = vadd.f32 %v1784_v2, %v1454_v22  ;;  %v1850_v2 = vsel %vm1831_vm6, %v1847_v49, %v1849_v32  ;;  %v2534_v20 = vor.u32 %v2533_v16, %v2530_v39 }
 0x20e   : > { %5724 = vst [vmem:[#allocation12_spill] sm:$0xff] %v5079_v33  ;;  %v2535_v54 = vsel %vm2428_vm5, %v2525_v61, %v2534_v20 }
 0x20f   : > { %v1056_v36 = vpop.f32.mrf.mxu2 }
 0x210   : > { %v1094_v45 = vadd.f32 %v1056_v36, %v857_v7  ;;  %v1935_v13 = vpop.f32.mrf.mxu1 }
 0x211   : > { %v2025_v49 = vadd.f32 %v1935_v13, %v4696_v34  ;;  %v5112_v34 = vld [vmem:[%s5698_s3] ss:$0 sm:$0xff]  ;;  %v5116_v13 = vld [vmem:[%s4359_s21 + $0x58] sm:$0xff] }
 0x212   : > { %v1455_v48 = vadd.f32 %v1417_v58, %v1094_v45  ;;  %v2901_v22 = vpop.f32.mrf.mxu0  ;;  %v5098_v19 = vpop.f32.mrf.mxu3  ;;  %v1851_v61 = vrot.slane %v5116_v13, 2 }
 0x213   : > { %3749 = vmatmul.msk.bf16.gmra.mxu1 %vm563_vm2, %v1850_v2  ;;  %v2537_v2 = vshrl.u32 %v5102_v41, 16 }
 0x214   : > { %3836 = vmatmul.msk.bf16.gmra.mxu2 %vm563_vm2, %v2211_v4  ;;  %v5094_v24 = vadd.f32 %v1786_v42, %v1455_v48  ;;  %v5107_v42 = vld [vmem:[%s5697_s2] ss:$0 sm:$0xff]  ;;  %v2540_v4 = vshll.u32 %v5102_v41, 16  ;;  %v2817_v48 = vrot.slane %v5052_v28, 3 }
 0x215   : > { %3874 = vmatmul.msk.bf16.gmra.mxu0 %vm563_vm2, %v2816_v40  ;;  %v2539_v13 = vrot.slane %v2537_v2, 2 }
 0x216   : > { %5726 = vst [vmem:[#allocation5_spill] sm:$0xff] %v5094_v24  ;;  %3857 = vmatmul.msk.bf16.gmra.mxu3 %vm563_vm2, %v2535_v54  ;;  %v1852_v54 = vsel %vm1831_vm6, %v1849_v32, %v1851_v61  ;;  %v2542_v24 = vrot.slane %v2540_v4, 3  ;;  %v2818_v33 = vsel %vm2797_vm7, %v2815_v27, %v2817_v48 }
 0x217   : > { %v2296_v5 = vpop.f32.mrf.mxu2 }
 0x218   : > { %v2386_v56 = vadd.f32 %v2296_v5, %v2025_v49  ;;  %v1937_v58 = vpop.f32.mrf.mxu1  ;;  %v5140_v32 = vor.u32 %v2542_v24, %v2539_v13  ;;  %v5152_v24 = vld [vmem:[%s4359_s21 + $0x78] sm:$0xff] }
 0x219   : > { %v2026_v16 = vadd.f32 %v1937_v58, %v4706_v26 }
 0x21a   : > { %v2755_v7 = vadd.f32 %v2665_v6, %v2386_v56  ;;  %v2903_v36 = vpop.f32.mrf.mxu0  ;;  %v2212_v6 = vrot.slane %v5052_v28, 2  ;;  %v5125_v40 = vpop.f32.mrf.mxu3 }
 0x21c   : > { %v2991_v45 = vadd.f32 %v2901_v22, %v2755_v7  ;;  %v2213_v7 = vsel %vm1831_vm6, %v2210_v47, %v2212_v6 }
 0x21e   : > { %v3030_v39 = vmul.f32 %v5107_v42, %v2991_v45 }
 0x21f   : > { %v2298_v22 = vpop.f32.mrf.mxu2 }
 0x220   : > { %v5128_v49 = vadd.f32 %v5112_v34, %v3030_v39  ;;  %v2387_v5 = vadd.f32 %v2298_v22, %v2026_v16  ;;  %v1940_v56 = vpop.f32.mrf.mxu1 }
 0x221   : > { %v2027_v47 = vadd.f32 %v1940_v56, %v4712_v18 }
 0x222   : > { %v3105_v45 = vsub.f32 0.0, %v5128_v49  ;;  %v2756_v26 = vadd.f32 %v5072_v62, %v2387_v5  ;;  %v2906_v58 = vpop.f32.mrf.mxu0  ;;  %v5144_v4 = vpop.f32.mrf.mxu3 }
 0x223   : > { %3750 = vmatmul.msk.bf16.gmra.mxu1 %vm563_vm2, %v1852_v54 }
 0x224   : > { %v3141_v39 = vmul.f32 1.442695, %v3105_v45  ;;  %v2992_v1 = vadd.f32 %v2903_v36, %v2756_v26  ;;  %3837 = vmatmul.msk.bf16.gmra.mxu2 %vm563_vm2, %v2213_v7  ;;  %v5157_v7 = vld [vmem:[%s4359_s21 + $0x60] sm:$0xff]  ;;  %v2546_v26 = vshrl.u32 %v5152_v24, 16 }
 0x225   : > { %3875 = vmatmul.msk.bf16.gmra.mxu0 %vm563_vm2, %v2818_v33  ;;  %v2544_v33 = vsel %vm2428_vm5, %v2534_v20, %v5140_v32  ;;  %v1853_v13 = vrot.slane %v5157_v7, 2  ;;  %v2214_v20 = vrot.slane %v5076_v57, 2 }
 0x226   : > { %4010 = vpow2.f32 %v3141_v39  ;;  %v3031_v62 = vmul.f32 %v5107_v42, %v2992_v1  ;;  %3858 = vmatmul.msk.bf16.gmra.mxu3 %vm563_vm2, %v2544_v33  ;;  %v2549_v39 = vshll.u32 %v5152_v24, 16 }
 0x227   : > { %v2301_v2 = vpop.f32.mrf.mxu2 }
 0x228   : > { %v5147_v27 = vadd.f32 %v5112_v34, %v3031_v62  ;;  %v2388_v36 = vadd.f32 %v2301_v2, %v2027_v47  ;;  %v1942_v16 = vpop.f32.mrf.mxu1  ;;  %v2819_v62 = vrot.slane %v5076_v57, 3 }
 0x22a   : > { %v3106_v22 = vsub.f32 0.0, %v5147_v27  ;;  %v2757_v1 = vadd.f32 %v5087_v51, %v2388_v36  ;;  %v2908_v5 = vpop.f32.mrf.mxu0  ;;  %v5168_v2 = vpop.f32.mrf.mxu3 }
 0x22c   : > { %v4011_v18 = vpop.eup %4010  ;;  %v3143_v56 = vmul.f32 1.442695, %v3106_v22  ;;  %v2993_v54 = vadd.f32 %v2906_v58, %v2757_v1  ;;  %v2028_v58 = vadd.f32 %v1942_v16, %v4722_v30  ;;  %v1854_v1 = vsel %vm1831_vm6, %v1851_v61, %v1853_v13 }
 0x22d   : > { %v3213_v45 = vadd.f32 1.0, %v4011_v18  ;;  %v2215_v30 = vsel %vm1831_vm6, %v2212_v6, %v2214_v20  ;;  %v2548_v16 = vrot.slane %v2546_v26, 2  ;;  %v2551_v18 = vrot.slane %v2549_v39, 3 }
 0x22e   : > { %4012 = vpow2.f32 %v3143_v56  ;;  %v3032_v51 = vmul.f32 %v5107_v42, %v2993_v54 }
 0x22f   : > { %4014 = vrcp.f32 %v3213_v45  ;;  %v2303_v47 = vpop.f32.mrf.mxu2 }
 0x230   : > { %v5171_v36 = vadd.f32 %v5112_v34, %v3032_v51  ;;  %v2389_v33 = vadd.f32 %v2303_v47, %v2028_v58  ;;  %v1945_v22 = vpop.f32.mrf.mxu1  ;;  %v2820_v51 = vsel %vm2797_vm7, %v2817_v48, %v2819_v62 }
 0x231   : > { %v2029_v48 = vadd.f32 %v1945_v22, %v4728_v60 }
 0x232   : > { %v3107_v56 = vsub.f32 0.0, %v5171_v36  ;;  %v2758_v54 = vadd.f32 %v5098_v19, %v2389_v33  ;;  %v2911_v45 = vpop.f32.mrf.mxu0  ;;  %v5191_v19 = vor.u32 %v2551_v18, %v2548_v16  ;;  %v5196_v33 = vpop.f32.mrf.mxu3  ;;  %v5208_v18 = vld [vmem:[%s4359_s21 + $0x80] sm:$0xff] }
 0x233   : > { %3751 = vmatmul.msk.bf16.gmra.mxu1 %vm563_vm2, %v1854_v1 }
 0x234   : > { %v4013_v58 = vpop.eup %4012  ;;  %v3145_v47 = vmul.f32 1.442695, %v3107_v56  ;;  %v2994_v61 = vadd.f32 %v2908_v5, %v2758_v54  ;;  %3838 = vmatmul.msk.bf16.gmra.mxu2 %vm563_vm2, %v2215_v30 }
 0x235   : > { %v4015_v6 = vpop.eup %4014  ;;  %v3214_v26 = vadd.f32 1.0, %v4013_v58  ;;  %3876 = vmatmul.msk.bf16.gmra.mxu0 %vm563_vm2, %v2820_v51 }
 0x236   : > { %v3285_v39 = vmul.f32 %v4015_v6, %v5128_v49  ;;  %4016 = vpow2.f32 %v3145_v47  ;;  %v3033_v28 = vmul.f32 %v5107_v42, %v2994_v61  ;;  %v2553_v49 = vsel %vm2428_vm5, %v5140_v32, %v5191_v19  ;;  %v5213_v47 = vld [vmem:[%s4359_s21 + $0x68] sm:$0xff] }
 0x237   : > { %4018 = vrcp.f32 %v3214_v26  ;;  %v2306_v5 = vpop.f32.mrf.mxu2  ;;  %v1855_v61 = vrot.slane %v5213_v47, 2  ;;  %v2216_v6 = vrot.slane %v5102_v41, 2  ;;  %3859 = vmatmul.msk.bf16.gmra.mxu3 %vm563_vm2, %v2553_v49 }
 0x238   : > { %3321 = vst [vmem:[%s5198_s24] sm:$0xff] %v3285_v39  ;;  %v5202_v1 = vadd.f32 %v5112_v34, %v3033_v28  ;;  %v2390_v30 = vadd.f32 %v2306_v5, %v2029_v48  ;;  %v1947_v16 = vpop.f32.mrf.mxu1  ;;  %v2821_v39 = vrot.slane %v5102_v41, 3  ;;  %v2555_v28 = vshrl.u32 %v5208_v18, 16 }
 0x239   : > { %v2030_v5 = vadd.f32 %v1947_v16, %v4738_v37  ;;  %v2217_v37 = vsel %vm1831_vm6, %v2214_v20, %v2216_v6 }
 0x23a   : > { %v3108_v60 = vsub.f32 0.0, %v5202_v1  ;;  %v2759_v22 = vadd.f32 %v5125_v40, %v2390_v30  ;;  %v2913_v56 = vpop.f32.mrf.mxu0  ;;  %v2558_v40 = vshll.u32 %v5208_v18, 16  ;;  %v2557_v16 = vrot.slane %v2555_v28, 2 }
 0x23b   : > { %v2822_v7 = vsel %vm2797_vm7, %v2819_v62, %v2821_v39 }
 0x23c   : > { %v4017_v54 = vpop.eup %4016  ;;  %v3147_v51 = vmul.f32 1.442695, %v3108_v60  ;;  %v2995_v58 = vadd.f32 %v2911_v45, %v2759_v22  ;;  %v5224_v60 = vpop.f32.mrf.mxu3 }
 0x23d   : > { %v4019_v32 = vpop.eup %4018  ;;  %v3215_v26 = vadd.f32 1.0, %v4017_v54 }
 0x23e   : > { %v3286_v48 = vmul.f32 %v4019_v32, %v5147_v27  ;;  %4020 = vpow2.f32 %v3147_v51  ;;  %v3034_v45 = vmul.f32 %v5107_v42, %v2995_v58  ;;  %v1856_v27 = vsel %vm1831_vm6, %v1853_v13, %v1855_v61 }
 0x23f   : > { %4022 = vrcp.f32 %v3215_v26  ;;  %v2308_v30 = vpop.f32.mrf.mxu2  ;;  %v2560_v51 = vrot.slane %v2558_v40, 3 }
 0x240   : > { %3322 = vst [vmem:[%s5198_s24 + $0x8] sm:$0xff] %v3286_v48  ;;  %v5228_v49 = vadd.f32 %v5112_v34, %v3034_v45  ;;  %v2391_v22 = vadd.f32 %v2308_v30, %v2030_v5  ;;  %v1950_v54 = vpop.f32.mrf.mxu1 }
 0x241   : > { %v2031_v62 = vadd.f32 %v1950_v54, %v4744_v10 }
 0x242   : > { %v3109_v58 = vsub.f32 0.0, %v5228_v49  ;;  %v2760_v32 = vadd.f32 %v5144_v4, %v2391_v22  ;;  %v2916_v26 = vpop.f32.mrf.mxu0  ;;  %v5250_v4 = vor.u32 %v2560_v51, %v2557_v16 }
 0x243   : > { %3752 = vmatmul.msk.bf16.gmra.mxu1 %vm563_vm2, %v1856_v27 }
 0x244   : > { %v4021_v13 = vpop.eup %4020  ;;  %v3149_v48 = vmul.f32 1.442695, %v3109_v58  ;;  %v2996_v45 = vadd.f32 %v2913_v56, %v2760_v32  ;;  %3839 = vmatmul.msk.bf16.gmra.mxu2 %vm563_vm2, %v2217_v37  ;;  %v5255_v5 = vpop.f32.mrf.mxu3  ;;  %v5265_v37 = vld [vmem:[%s4359_s21 + $0x88] sm:$0xff] }
 0x245   : > { %v4023_v20 = vpop.eup %4022  ;;  %v3216_v28 = vadd.f32 1.0, %v4021_v13  ;;  %3877 = vmatmul.msk.bf16.gmra.mxu0 %vm563_vm2, %v2822_v7  ;;  %v5270_v7 = vld [vmem:[%s4359_s21 + $0x70] sm:$0xff] }
 0x246   : > { %v3287_v40 = vmul.f32 %v4023_v20, %v5171_v36  ;;  %4024 = vpow2.f32 %v3149_v48  ;;  %v3035_v57 = vmul.f32 %v5107_v42, %v2996_v45  ;;  %v2562_v36 = vsel %vm2428_vm5, %v5191_v19, %v5250_v4 }
 0x247   : > { %4026 = vrcp.f32 %v3216_v28  ;;  %v2311_v56 = vpop.f32.mrf.mxu2  ;;  %v1857_v13 = vrot.slane %v5270_v7, 2  ;;  %v2218_v48 = vrot.slane %v5152_v24, 2  ;;  %3860 = vmatmul.msk.bf16.gmra.mxu3 %vm563_vm2, %v2562_v36  ;;  %v2823_v20 = vrot.slane %v5152_v24, 3 }
 0x248   : > { %3323 = vst [vmem:[%s5198_s24 + $0x10] sm:$0xff] %v3287_v40  ;;  %v5259_v30 = vadd.f32 %v5112_v34, %v3035_v57  ;;  %v2392_v22 = vadd.f32 %v2311_v56, %v2031_v62  ;;  %v1952_v27 = vpop.f32.mrf.mxu1  ;;  %v2564_v28 = vshrl.u32 %v5265_v37, 16 }
 0x249   : > { %v2032_v57 = vadd.f32 %v1952_v27, %v4754_v0  ;;  %v2219_v0 = vsel %vm1831_vm6, %v2216_v6, %v2218_v48  ;;  %v2824_v47 = vsel %vm2797_vm7, %v2821_v39, %v2823_v20 }
 0x24a   : > { %v3110_v16 = vsub.f32 0.0, %v5259_v30  ;;  %v2761_v10 = vadd.f32 %v5168_v2, %v2392_v22  ;;  %v2918_v54 = vpop.f32.mrf.mxu0  ;;  %v2567_v2 = vshll.u32 %v5265_v37, 16  ;;  %v2566_v27 = vrot.slane %v2564_v28, 2 }
 0x24c   : > { %v4025_v51 = vpop.eup %4024  ;;  %v3151_v58 = vmul.f32 1.442695, %v3110_v16  ;;  %v2997_v32 = vadd.f32 %v2916_v26, %v2761_v10  ;;  %v5281_v56 = vpop.f32.mrf.mxu3  ;;  %v2569_v10 = vrot.slane %v2567_v2, 3 }
 0x24d   : > { %v4027_v19 = vpop.eup %4026  ;;  %v3217_v45 = vadd.f32 1.0, %v4025_v51 }
 0x24e   : > { %v3288_v40 = vmul.f32 %v4027_v19, %v5202_v1  ;;  %4028 = vpow2.f32 %v3151_v58  ;;  %v3036_v26 = vmul.f32 %v5107_v42, %v2997_v32  ;;  %v1858_v1 = vsel %vm1831_vm6, %v1855_v61, %v1857_v13 }
 0x24f   : > { %4030 = vrcp.f32 %v3217_v45  ;;  %v2313_v62 = vpop.f32.mrf.mxu2 }
 0x250   : > { %3324 = vst [vmem:[%s5198_s24 + $0x18] sm:$0xff] %v3288_v40  ;;  %v5285_v22 = vadd.f32 %v5112_v34, %v3036_v26  ;;  %v2393_v36 = vadd.f32 %v2313_v62, %v2032_v57  ;;  %v1955_v16 = vpop.f32.mrf.mxu1 }
 0x251   : > { %v2033_v39 = vadd.f32 %v1955_v16, %v4760_v11 }
 0x252   : > { %v3111_v51 = vsub.f32 0.0, %v5285_v22  ;;  %v2762_v58 = vadd.f32 %v5196_v33, %v2393_v36  ;;  %v2921_v32 = vpop.f32.mrf.mxu0  ;;  %v5307_v33 = vor.u32 %v2569_v10, %v2566_v27  ;;  %v5322_v36 = vld [vmem:[%s4359_s21 + $0x90] sm:$0xff] }
 0x253   : > { %3753 = vmatmul.msk.bf16.gmra.mxu1 %vm563_vm2, %v1858_v1 }
 0x254   : > { %v4029_v61 = vpop.eup %4028  ;;  %v3153_v19 = vmul.f32 1.442695, %v3111_v51  ;;  %v2998_v45 = vadd.f32 %v2918_v54, %v2762_v58  ;;  %3840 = vmatmul.msk.bf16.gmra.mxu2 %vm563_vm2, %v2219_v0  ;;  %v5312_v40 = vpop.f32.mrf.mxu3  ;;  %v5327_v51 = vld [vmem:[%s4359_s21 + $0x78] sm:$0xff] }
 0x255   : > { %v4031_v6 = vpop.eup %4030  ;;  %v3218_v28 = vadd.f32 1.0, %v4029_v61  ;;  %3878 = vmatmul.msk.bf16.gmra.mxu0 %vm563_vm2, %v2824_v47  ;;  %v1859_v58 = vrot.slane %v5327_v51, 2  ;;  %v2220_v47 = vrot.slane %v5208_v18, 2 }
 0x256   : > { %v3289_v2 = vmul.f32 %v4031_v6, %v5228_v49  ;;  %4032 = vpow2.f32 %v3153_v19  ;;  %v3037_v41 = vmul.f32 %v5107_v42, %v2998_v45  ;;  %v2571_v49 = vsel %vm2428_vm5, %v5250_v4, %v5307_v33 }
 0x257   : > { %4034 = vrcp.f32 %v3218_v28  ;;  %v2316_v54 = vpop.f32.mrf.mxu2  ;;  %3861 = vmatmul.msk.bf16.gmra.mxu3 %vm563_vm2, %v2571_v49  ;;  %v2825_v19 = vrot.slane %v5208_v18, 3  ;;  %v2573_v45 = vshrl.u32 %v5322_v36, 16 }
 0x258   : > { %3325 = vst [vmem:[%s5198_s24 + $0x20] sm:$0xff] %v3289_v2  ;;  %v5316_v26 = vadd.f32 %v5112_v34, %v3037_v41  ;;  %v2394_v57 = vadd.f32 %v2316_v54, %v2033_v39  ;;  %v1957_v62 = vpop.f32.mrf.mxu1 }
 0x259   : > { %v2034_v28 = vadd.f32 %v1957_v62, %v4770_v17  ;;  %v2221_v17 = vsel %vm1831_vm6, %v2218_v48, %v2220_v47  ;;  %v2575_v62 = vrot.slane %v2573_v45, 2  ;;  %v2826_v7 = vsel %vm2797_vm7, %v2823_v20, %v2825_v19 }
 0x25a   : > { %v3112_v1 = vsub.f32 0.0, %v5316_v26  ;;  %v2763_v11 = vadd.f32 %v5224_v60, %v2394_v57  ;;  %v2923_v16 = vpop.f32.mrf.mxu0  ;;  %v2576_v60 = vshll.u32 %v5322_v36, 16 }
 0x25c   : > { %v4033_v0 = vpop.eup %4032  ;;  %v3155_v27 = vmul.f32 1.442695, %v3112_v1  ;;  %v2999_v10 = vadd.f32 %v2921_v32, %v2763_v11  ;;  %v5338_v41 = vpop.f32.mrf.mxu3  ;;  %v2578_v49 = vrot.slane %v2576_v60, 3 }
 0x25d   : > { %v4035_v4 = vpop.eup %4034  ;;  %v3219_v61 = vadd.f32 1.0, %v4033_v0 }
 0x25e   : > { %v3290_v6 = vmul.f32 %v4035_v4, %v5259_v30  ;;  %4036 = vpow2.f32 %v3155_v27  ;;  %v3038_v32 = vmul.f32 %v5107_v42, %v2999_v10  ;;  %v1860_v30 = vsel %vm1831_vm6, %v1857_v13, %v1859_v58 }
 0x25f   : > { %4038 = vrcp.f32 %v3219_v61  ;;  %v2318_v2 = vpop.f32.mrf.mxu2 }
 0x260   : > { %3326 = vst [vmem:[%s5198_s24 + $0x28] sm:$0xff] %v3290_v6  ;;  %v5342_v39 = vadd.f32 %v5112_v34, %v3038_v32  ;;  %v2395_v54 = vadd.f32 %v2318_v2, %v2034_v28  ;;  %v1960_v57 = vpop.f32.mrf.mxu1  ;;  %v5379_v28 = vld [vmem:[%s4359_s21 + $0x98] sm:$0xff] }
 0x261   : > { %v2035_v20 = vadd.f32 %v1960_v57, %v4776_v38 }
 0x262   : > { %v3113_v1 = vsub.f32 0.0, %v5342_v39  ;;  %v2764_v11 = vadd.f32 %v5255_v5, %v2395_v54  ;;  %v2926_v0 = vpop.f32.mrf.mxu0  ;;  %v5364_v5 = vor.u32 %v2578_v49, %v2575_v62  ;;  %v5384_v62 = vld [vmem:[%s4359_s21 + $0x80] sm:$0xff] }
 0x263   : > { %3754 = vmatmul.msk.bf16.gmra.mxu1 %vm563_vm2, %v1860_v30  ;;  %v1861_v49 = vrot.slane %v5384_v62, 2 }
 0x264   : > { %v4037_v13 = vpop.eup %4036  ;;  %v3157_v27 = vmul.f32 1.442695, %v3113_v1  ;;  %v3000_v10 = vadd.f32 %v2923_v16, %v2764_v11  ;;  %3841 = vmatmul.msk.bf16.gmra.mxu2 %vm563_vm2, %v2221_v17  ;;  %v5369_v45 = vpop.f32.mrf.mxu3  ;;  %v2222_v1 = vrot.slane %v5265_v37, 2 }
 0x265   : > { %v4039_v48 = vpop.eup %4038  ;;  %v3220_v4 = vadd.f32 1.0, %v4037_v13  ;;  %3879 = vmatmul.msk.bf16.gmra.mxu0 %vm563_vm2, %v2826_v7  ;;  %v2827_v7 = vrot.slane %v5265_v37, 3  ;;  %v2582_v13 = vshrl.u32 %v5379_v28, 16 }
 0x266   : > { %v3291_v61 = vmul.f32 %v4039_v48, %v5285_v22  ;;  %4040 = vpow2.f32 %v3157_v27  ;;  %v3039_v24 = vmul.f32 %v5107_v42, %v3000_v10  ;;  %v2580_v22 = vsel %vm2428_vm5, %v5307_v33, %v5364_v5 }
 0x267   : > { %4042 = vrcp.f32 %v3220_v4  ;;  %v2321_v16 = vpop.f32.mrf.mxu2  ;;  %3862 = vmatmul.msk.bf16.gmra.mxu3 %vm563_vm2, %v2580_v22  ;;  %v2828_v51 = vsel %vm2797_vm7, %v2825_v19, %v2827_v7 }
 0x268   : > { %3327 = vst [vmem:[%s5198_s24 + $0x30] sm:$0xff] %v3291_v61  ;;  %v5373_v60 = vadd.f32 %v5112_v34, %v3039_v24  ;;  %v2396_v6 = vadd.f32 %v2321_v16, %v2035_v20  ;;  %v1962_v32 = vpop.f32.mrf.mxu1  ;;  %v2584_v16 = vrot.slane %v2582_v13, 2 }
 0x269   : > { %v2036_v10 = vadd.f32 %v1962_v32, %v4786_v31  ;;  %v2223_v31 = vsel %vm1831_vm6, %v2220_v47, %v2222_v1 }
 0x26a   : > { %v3114_v2 = vsub.f32 0.0, %v5373_v60  ;;  %v2765_v38 = vadd.f32 %v5281_v56, %v2396_v6  ;;  %v2928_v54 = vpop.f32.mrf.mxu0  ;;  %v2585_v56 = vshll.u32 %v5379_v28, 16 }
 0x26c   : > { %v4041_v57 = vpop.eup %4040  ;;  %v3159_v30 = vmul.f32 1.442695, %v3114_v2  ;;  %v3001_v17 = vadd.f32 %v2926_v0, %v2765_v38  ;;  %v5395_v4 = vpop.f32.mrf.mxu3  ;;  %v2587_v6 = vrot.slane %v2585_v56, 3 }
 0x26d   : > { %v4043_v33 = vpop.eup %4042  ;;  %v3221_v11 = vadd.f32 1.0, %v4041_v57 }
 0x26e   : > { %v3292_v27 = vmul.f32 %v4043_v33, %v5316_v26  ;;  %4044 = vpow2.f32 %v3159_v30  ;;  %v3040_v0 = vmul.f32 %v5107_v42, %v3001_v17  ;;  %v1862_v26 = vsel %vm1831_vm6, %v1859_v58, %v1861_v49  ;;  %v2422_v58 = vld [vmem:[%s4359_s21 + $0xa0] sm:$0x7] }
 0x26f   : > { %4046 = vrcp.f32 %v3221_v11  ;;  %v2323_v48 = vpop.f32.mrf.mxu2  ;;  %v2426_v33 = vunpack.c.l.b16 %v2422_v58 }
 0x270   : > { %3328 = vst [vmem:[%s5198_s24 + $0x38] sm:$0xff] %v3292_v27  ;;  %v5399_v61 = vadd.f32 %v5112_v34, %v3040_v0  ;;  %v2397_v24 = vadd.f32 %v2323_v48, %v2036_v10  ;;  %v1965_v20 = vpop.f32.mrf.mxu1 }
 0x271   : > { %v2037_v11 = vadd.f32 %v1965_v20, %v4795_v35  ;;  %v5436_v10 = vpack.c.b16 %v2426_v33, %v2426_v33 }
 0x272   : > { %v3115_v32 = vsub.f32 0.0, %v5399_v61  ;;  %v2766_v22 = vadd.f32 %v5312_v40, %v2397_v24  ;;  %v2931_v2 = vpop.f32.mrf.mxu0  ;;  %v5422_v40 = vor.u32 %v2587_v6, %v2584_v16  ;;  %v5441_v16 = vld [vmem:[%s4359_s21 + $0x88] sm:$0xff] }
 0x273   : > { %3755 = vmatmul.msk.bf16.gmra.mxu1 %vm563_vm2, %v1862_v26  ;;  %v1863_v6 = vrot.slane %v5441_v16, 2  ;;  %v2591_v58 = vshrl.u32 %v5436_v10, 16  ;;  %v2097_v16 = vld [vmem:[%s4359_s21 + $0xa0] sm:$0x3] }
 0x274   : > { %v4045_v38 = vpop.eup %4044  ;;  %v3161_v57 = vmul.f32 1.442695, %v3115_v32  ;;  %v3002_v30 = vadd.f32 %v2928_v54, %v2766_v22  ;;  %3842 = vmatmul.msk.bf16.gmra.mxu2 %vm563_vm2, %v2223_v31  ;;  %v5427_v13 = vpop.f32.mrf.mxu3  ;;  %v2224_v32 = vrot.slane %v5322_v36, 2 }
 0x275   : > { %v4047_v47 = vpop.eup %4046  ;;  %v3222_v17 = vadd.f32 1.0, %v4045_v38  ;;  %3880 = vmatmul.msk.bf16.gmra.mxu0 %vm563_vm2, %v2828_v51  ;;  %v2829_v51 = vrot.slane %v5322_v36, 3 }
 0x276   : > { %v3293_v18 = vmul.f32 %v4047_v47, %v5342_v39  ;;  %4048 = vpow2.f32 %v3161_v57  ;;  %v3041_v19 = vmul.f32 %v5107_v42, %v3002_v30  ;;  %v2589_v39 = vsel %vm2428_vm5, %v5364_v5, %v5422_v40  ;;  %v5727_v57 = vld [vmem:[#allocation13_spill] sm:$0xff] }
 0x277   : > { %4050 = vrcp.f32 %v3222_v17  ;;  %v2326_v54 = vpop.f32.mrf.mxu2  ;;  %3863 = vmatmul.msk.bf16.gmra.mxu3 %vm563_vm2, %v2589_v39  ;;  %v2830_v62 = vsel %vm2797_vm7, %v2827_v7, %v2829_v51 }
 0x278   : > { %3329 = vst [vmem:[%s5198_s24 + $0x40] sm:$0xff] %v3293_v18  ;;  %v5431_v56 = vadd.f32 %v5112_v34, %v3041_v19  ;;  %v2398_v27 = vadd.f32 %v2326_v54, %v2037_v11  ;;  %v1967_v0 = vpop.f32.mrf.mxu1  ;;  %v2225_v11 = vsel %vm1831_vm6, %v2222_v1, %v2224_v32  ;;  %v2593_v54 = vrot.slane %v2591_v58, 2 }
 0x279   : > { %v2038_v30 = vadd.f32 %v1967_v0, %v5727_v57 }
 0x27a   : > { %v3116_v48 = vsub.f32 0.0, %v5431_v56  ;;  %v2767_v35 = vadd.f32 %v5338_v41, %v2398_v27  ;;  %v2933_v24 = vpop.f32.mrf.mxu0  ;;  %v2594_v41 = vshll.u32 %v5436_v10, 16 }
 0x27c   : > { %v4049_v20 = vpop.eup %4048  ;;  %v3163_v26 = vmul.f32 1.442695, %v3116_v48  ;;  %v3003_v31 = vadd.f32 %v2931_v2, %v2767_v35  ;;  %v5452_v17 = vpop.f32.mrf.mxu3  ;;  %v2596_v27 = vrot.slane %v2594_v41, 3 }
 0x27d   : > { %v4051_v5 = vpop.eup %4050  ;;  %v3223_v22 = vadd.f32 1.0, %v4049_v20 }
 0x27e   : > { %v3294_v38 = vmul.f32 %v4051_v5, %v5373_v60  ;;  %4052 = vpow2.f32 %v3163_v26  ;;  %v3042_v2 = vmul.f32 %v5107_v42, %v3003_v31  ;;  %v1864_v60 = vsel %vm1831_vm6, %v1861_v49, %v1863_v6  ;;  %v5728_v5 = vld [vmem:[#allocation14_spill] sm:$0xff] }
 0x27f   : > { %4054 = vrcp.f32 %v3223_v22  ;;  %v2328_v47 = vpop.f32.mrf.mxu2 }
 0x280   : > { %3330 = vst [vmem:[%s5198_s24 + $0x48] sm:$0xff] %v3294_v38  ;;  %v5456_v33 = vadd.f32 %v5112_v34, %v3042_v2  ;;  %v2399_v18 = vadd.f32 %v2328_v47, %v2038_v30  ;;  %v1970_v19 = vpop.f32.mrf.mxu1 }
 0x281   : > { %v2039_v7 = vadd.f32 %v1970_v19, %v5728_v5 }
 0x282   : > { %v3117_v0 = vsub.f32 0.0, %v5456_v33  ;;  %v2768_v39 = vadd.f32 %v5369_v45, %v2399_v18  ;;  %v2936_v48 = vpop.f32.mrf.mxu0  ;;  %v2597_v45 = vor.u32 %v2596_v27, %v2593_v54  ;;  %v5493_v54 = vld [vmem:[%s4359_s21 + $0x90] sm:$0xff]  ;;  %s4196_s21 = scalar_lea.hbm %s5699_s4, 576 }
 0x283   : > { %3756 = vmatmul.msk.bf16.gmra.mxu1 %vm563_vm2, %v1864_v60  ;;  %v1865_v27 = vrot.slane %v5493_v54, 2  ;;  %p4198_p2 = scmp.lt.s32.totalorder %s4196_s21, %s4192_s12 }
 0x284   : > { %v4053_v49 = vpop.eup %4052  ;;  %v3165_v35 = vmul.f32 1.442695, %v3117_v0  ;;  %v3004_v20 = vadd.f32 %v2933_v24, %v2768_v39  ;;  %3843 = vmatmul.msk.bf16.gmra.mxu2 %vm563_vm2, %v2225_v11  ;;  %v5481_v24 = vpop.f32.mrf.mxu3  ;;  %v2598_v2 = vsel %vm2428_vm5, %v5422_v40, %v2597_v45  ;;  %v2226_v0 = vrot.slane %v5379_v28, 2 }
 0x285   : > { %v4055_v1 = vpop.eup %4054  ;;  %v3224_v26 = vadd.f32 1.0, %v4053_v49  ;;  %3881 = vmatmul.msk.bf16.gmra.mxu0 %vm563_vm2, %v2830_v62  ;;  %v2831_v40 = vrot.slane %v5379_v28, 3  ;;  %p4199_p3 = por %p4198_p2, %p4197_p1 }
 0x286   : > { %v3295_v31 = vmul.f32 %v4055_v1, %v5399_v61  ;;  %4056 = vpow2.f32 %v3165_v35  ;;  %v3043_v37 = vmul.f32 %v5107_v42, %v3004_v20 }
 0x287   : > { %4058 = vrcp.f32 %v3224_v26  ;;  %v2331_v22 = vpop.f32.mrf.mxu2  ;;  %3864 = vmatmul.msk.bf16.gmra.mxu3 %vm563_vm2, %v2598_v2  ;;  %p4200_p5 = pnand %p4199_p3, %p4195_p0 }
 0x288   : > { %3331 = vst [vmem:[%s5198_s24 + $0x50] sm:$0xff] %v3295_v31  ;;  %v5485_v58 = vadd.f32 %v5112_v34, %v3043_v37  ;;  %v2400_v41 = vadd.f32 %v2331_v22, %v2039_v7  ;;  %v1972_v38 = vpop.f32.mrf.mxu1  ;;  %v2832_v37 = vsel %vm2797_vm7, %v2829_v51, %v2831_v40 }
 0x28a   : > { %v3118_v61 = vsub.f32 0.0, %v5485_v58  ;;  %v2769_v57 = vadd.f32 %v5395_v4, %v2400_v41  ;;  %v2938_v30 = vpop.f32.mrf.mxu0 }
 0x28c   : > { %v4057_v47 = vpop.eup %4056  ;;  %v3167_v18 = vmul.f32 1.442695, %v3118_v61  ;;  %v3005_v19 = vadd.f32 %v2936_v48, %v2769_v57  ;;  %v2040_v48 = vadd.f32 %v1972_v38, %v4851_v44  ;;  %v5501_v49 = vpop.f32.mrf.mxu3  ;;  %v2227_v44 = vsel %vm1831_vm6, %v2224_v32, %v2226_v0 }
 0x28d   : > { %v4059_v60 = vpop.eup %4058  ;;  %v3225_v11 = vadd.f32 1.0, %v4057_v47 }
 0x28e   : > { %v3296_v39 = vmul.f32 %v4059_v60, %v5431_v56  ;;  %4060 = vpow2.f32 %v3167_v18  ;;  %v3044_v4 = vmul.f32 %v5107_v42, %v3005_v19  ;;  %v1866_v56 = vsel %vm1831_vm6, %v1863_v6, %v1865_v27 }
 0x28f   : > { %4062 = vrcp.f32 %v3225_v11  ;;  %v2333_v62 = vpop.f32.mrf.mxu2 }
 0x290   : > { %3332 = vst [vmem:[%s5198_s24 + $0x58] sm:$0xff] %v3296_v39  ;;  %v5505_v35 = vadd.f32 %v5112_v34, %v3044_v4  ;;  %v2401_v20 = vadd.f32 %v2333_v62, %v2040_v48  ;;  %v1975_v1 = vpop.f32.mrf.mxu1  ;;  %v1867_v48 = vrot.slane %v4846_v12, 2 }
 0x291   : > { %v2041_v51 = vadd.f32 %v1975_v1, %v4865_v9 }
 0x292   : > { %v3119_v26 = vsub.f32 0.0, %v5505_v35  ;;  %v2770_v45 = vadd.f32 %v5427_v13, %v2401_v20  ;;  %v2941_v31 = vpop.f32.mrf.mxu0  ;;  %v2173_v13 = vunpack.c.l.b16 %v2097_v16  ;;  %v2833_v20 = vrot.slane %v5436_v10, 3 }
 0x293   : > { %3757 = vmatmul.msk.bf16.gmra.mxu1 %vm563_vm2, %v1866_v56  ;;  %v1868_v12 = vsel %vm1831_vm6, %v1865_v27, %v1867_v48 }
 0x294   : > { %v4061_v5 = vpop.eup %4060  ;;  %v3169_v6 = vmul.f32 1.442695, %v3119_v26  ;;  %v3006_v7 = vadd.f32 %v2938_v30, %v2770_v45  ;;  %3844 = vmatmul.msk.bf16.gmra.mxu2 %vm563_vm2, %v2227_v44  ;;  %v5531_v2 = vpop.f32.mrf.mxu3  ;;  %v2192_v47 = vpack.c.b16 %v2173_v13, %v2173_v13 }
 0x295   : > { %v4063_v32 = vpop.eup %4062  ;;  %v3226_v22 = vadd.f32 1.0, %v4061_v5  ;;  %3882 = vmatmul.msk.bf16.gmra.mxu0 %vm563_vm2, %v2832_v37  ;;  %v2834_v5 = vsel %vm2797_vm7, %v2831_v40, %v2833_v20 }
 0x296   : > { %v3297_v41 = vmul.f32 %v4063_v32, %v5456_v33  ;;  %4064 = vpow2.f32 %v3169_v6  ;;  %v3045_v36 = vmul.f32 %v5107_v42, %v3006_v7  ;;  %v2228_v62 = vrot.slane %v2192_v47, 2 }
 0x297   : > { %4066 = vrcp.f32 %v3226_v22  ;;  %v2336_v38 = vpop.f32.mrf.mxu2 }
 0x298   : > { %3333 = vst [vmem:[%s5198_s24 + $0x60] sm:$0xff] %v3297_v41  ;;  %v3084_v61 = vadd.f32 %v5112_v34, %v3045_v36  ;;  %v2402_v57 = vadd.f32 %v2336_v38, %v2041_v51  ;;  %v1977_v30 = vpop.f32.mrf.mxu1  ;;  %v2229_v10 = vsel %vm1831_vm6, %v2226_v0, %v2228_v62 }
 0x299   : > { %v2042_v44 = vadd.f32 %v1977_v30, %v4881_v46 }
 0x29a   : > { %v3120_v18 = vsub.f32 0.0, %v3084_v61  ;;  %v2771_v19 = vadd.f32 %v5452_v17, %v2402_v57  ;;  %v2943_v60 = vpop.f32.mrf.mxu0 }
 0x29c   : > { %v4065_v33 = vpop.eup %4064  ;;  %v3171_v11 = vmul.f32 1.442695, %v3120_v18  ;;  %v3007_v39 = vadd.f32 %v2941_v31, %v2771_v19  ;;  %v5541_v26 = vpop.f32.mrf.mxu3 }
 0x29d   : > { %v4067_v4 = vpop.eup %4066  ;;  %v3227_v9 = vadd.f32 1.0, %v4065_v33 }
 0x29e   : > { %v3298_v1 = vmul.f32 %v4067_v4, %v5485_v58  ;;  %4068 = vpow2.f32 %v3171_v11  ;;  %v3046_v56 = vmul.f32 %v5107_v42, %v3007_v39 }
 0x29f   : > { %4070 = vrcp.f32 %v3227_v9  ;;  %v2338_v17 = vpop.f32.mrf.mxu2 }
 0x2a0   : > { %3334 = vst [vmem:[%s5198_s24 + $0x68] sm:$0xff] %v3298_v1  ;;  %v3085_v45 = vadd.f32 %v5112_v34, %v3046_v56  ;;  %v2403_v31 = vadd.f32 %v2338_v17, %v2042_v44  ;;  %v1980_v37 = vpop.f32.mrf.mxu1 }
 0x2a1   : > { %v2043_v28 = vadd.f32 %v1980_v37, %v4898_v14 }
 0x2a2   : > { %v3121_v58 = vsub.f32 0.0, %v3085_v45  ;;  %v2772_v46 = vadd.f32 %v5481_v24, %v2403_v31  ;;  %v2946_v16 = vpop.f32.mrf.mxu0 }
 0x2a3   : > { %3758 = vmatmul.msk.bf16.gmra.mxu1 %vm563_vm2, %v1868_v12 }
 0x2a4   : > { %v4069_v6 = vpop.eup %4068  ;;  %v3173_v7 = vmul.f32 1.442695, %v3121_v58  ;;  %v3008_v32 = vadd.f32 %v2943_v60, %v2772_v46  ;;  %3845 = vmatmul.msk.bf16.gmra.mxu2 %vm563_vm2, %v2229_v10  ;;  %v5561_v22 = vpop.f32.mrf.mxu3 }
 0x2a5   : > { %v4071_v54 = vpop.eup %4070  ;;  %v3228_v27 = vadd.f32 1.0, %v4069_v6  ;;  %3883 = vmatmul.msk.bf16.gmra.mxu0 %vm563_vm2, %v2834_v5 }
 0x2a6   : > { %v3299_v0 = vmul.f32 %v4071_v54, %v5505_v35  ;;  %4072 = vpow2.f32 %v3173_v7  ;;  %v3047_v24 = vmul.f32 %v5107_v42, %v3008_v32 }
 0x2a7   : > { %4074 = vrcp.f32 %v3228_v27  ;;  %v2341_v40 = vpop.f32.mrf.mxu2 }
 0x2a8   : > { %3335 = vst [vmem:[%s5198_s24 + $0x70] sm:$0xff] %v3299_v0  ;;  %v3086_v13 = vadd.f32 %v5112_v34, %v3047_v24  ;;  %v2404_v41 = vadd.f32 %v2341_v40, %v2043_v28  ;;  %v1982_v36 = vpop.f32.mrf.mxu1 }
 0x2a9   : > { %v2044_v33 = vadd.f32 %v1982_v36, %v4912_v21 }
 0x2aa   : > { %v3122_v51 = vsub.f32 0.0, %v3086_v13  ;;  %v2773_v38 = vadd.f32 %v5501_v49, %v2404_v41  ;;  %v2948_v57 = vpop.f32.mrf.mxu0 }
 0x2ac   : > { %v4073_v35 = vpop.eup %4072  ;;  %v3175_v30 = vmul.f32 1.442695, %v3122_v51  ;;  %v3009_v47 = vadd.f32 %v2946_v16, %v2773_v38  ;;  %v5568_v39 = vpop.f32.mrf.mxu3 }
 0x2ad   : > { %v4075_v18 = vpop.eup %4074  ;;  %v3229_v19 = vadd.f32 1.0, %v4073_v35 }
 0x2ae   : > { %v3300_v14 = vmul.f32 %v4075_v18, %v3084_v61  ;;  %4076 = vpow2.f32 %v3175_v30  ;;  %v3048_v60 = vmul.f32 %v5107_v42, %v3009_v47 }
 0x2af   : > { %4078 = vrcp.f32 %v3229_v19  ;;  %v2343_v11 = vpop.f32.mrf.mxu2 }
 0x2b0   : > { %3336 = vst [vmem:[%s5198_s24 + $0x78] sm:$0xff] %v3300_v14  ;;  %v3087_v4 = vadd.f32 %v5112_v34, %v3048_v60  ;;  %v2405_v49 = vadd.f32 %v2343_v11, %v2044_v33  ;;  %v1985_v9 = vpop.f32.mrf.mxu1 }
 0x2b1   : > { %v2045_v37 = vadd.f32 %v1985_v9, %v4922_v23  ;;  %v5581_v23 = vld [vmem:[%s5697_s2] ss:$0 sm:$0xff] }
 0x2b2   : > { %v3123_v48 = vsub.f32 0.0, %v3087_v4  ;;  %v2774_v62 = vadd.f32 %v5531_v2, %v2405_v49  ;;  %v2951_v20 = vpop.f32.mrf.mxu0 }
 0x2b4   : > { %v4077_v61 = vpop.eup %4076  ;;  %v3177_v1 = vmul.f32 1.442695, %v3123_v48  ;;  %v3010_v56 = vadd.f32 %v2948_v57, %v2774_v62  ;;  %v2722_v2 = vpop.f32.mrf.mxu3 }
 0x2b5   : > { %v4079_v44 = vpop.eup %4078  ;;  %v3230_v17 = vadd.f32 1.0, %v4077_v61 }
 0x2b6   : > { %v3301_v21 = vmul.f32 %v4079_v44, %v3085_v45  ;;  %4080 = vpow2.f32 %v3177_v1  ;;  %v3049_v31 = vmul.f32 %v5107_v42, %v3010_v56 }
 0x2b7   : > { %4082 = vrcp.f32 %v3230_v17  ;;  %v2346_v12 = vpop.f32.mrf.mxu2 }
 0x2b8   : > { %3337 = vst [vmem:[%s5198_s24 + $0x80] sm:$0xff] %v3301_v21  ;;  %v3088_v10 = vadd.f32 %v5112_v34, %v3049_v31  ;;  %v2406_v58 = vadd.f32 %v2346_v12, %v2045_v37  ;;  %v1987_v46 = vpop.f32.mrf.mxu1 }
 0x2b9   : > { %v2046_v0 = vadd.f32 %v1987_v46, %v4936_v59 }
 0x2ba   : > { %v3124_v16 = vsub.f32 0.0, %v3088_v10  ;;  %v2775_v5 = vadd.f32 %v5541_v26, %v2406_v58  ;;  %v2953_v6 = vpop.f32.mrf.mxu0  ;;  %v5589_v26 = vld [vmem:[%s5698_s3] ss:$0 sm:$0xff] }
 0x2bc   : > { %v4081_v7 = vpop.eup %4080  ;;  %v3179_v45 = vmul.f32 1.442695, %v3124_v16  ;;  %v3011_v32 = vadd.f32 %v2951_v20, %v2775_v5  ;;  %v2725_v38 = vpop.f32.mrf.mxu3 }
 0x2bd   : > { %v4083_v54 = vpop.eup %4082  ;;  %v3231_v42 = vadd.f32 1.0, %v4081_v7 }
 0x2be   : > { %v3302_v27 = vmul.f32 %v4083_v54, %v3086_v13  ;;  %4084 = vpow2.f32 %v3179_v45  ;;  %v3050_v34 = vmul.f32 %v5581_v23, %v3011_v32 }
 0x2bf   : > { %4086 = vrcp.f32 %v3231_v42  ;;  %v2348_v24 = vpop.f32.mrf.mxu2 }
 0x2c0   : > { %3338 = vst [vmem:[%s5198_s24 + $0x88] sm:$0xff] %v3302_v27  ;;  %v3089_v28 = vadd.f32 %v5589_v26, %v3050_v34  ;;  %v2407_v40 = vadd.f32 %v2348_v24, %v2046_v0  ;;  %v1990_v13 = vpop.f32.mrf.mxu1 }
 0x2c1   : > { %v2047_v14 = vadd.f32 %v1990_v13, %v4945_v43 }
 0x2c2   : > { %v3125_v41 = vsub.f32 0.0, %v3089_v28  ;;  %v2776_v36 = vadd.f32 %v5561_v22, %v2407_v40  ;;  %v2956_v51 = vpop.f32.mrf.mxu0 }
 0x2c4   : > { %v4085_v57 = vpop.eup %4084  ;;  %v3181_v59 = vmul.f32 1.442695, %v3125_v41  ;;  %v3012_v35 = vadd.f32 %v2953_v6, %v2776_v36  ;;  %v2727_v56 = vpop.f32.mrf.mxu3 }
 0x2c5   : > { %v4087_v30 = vpop.eup %4086  ;;  %v3232_v47 = vadd.f32 1.0, %v4085_v57 }
 0x2c6   : > { %v3303_v18 = vmul.f32 %v4087_v30, %v3087_v4  ;;  %4088 = vpow2.f32 %v3181_v59  ;;  %v3051_v19 = vmul.f32 %v5581_v23, %v3012_v35 }
 0x2c7   : > { %4090 = vrcp.f32 %v3232_v47  ;;  %v2351_v60 = vpop.f32.mrf.mxu2 }
 0x2c8   : > { %3339 = vst [vmem:[%s5198_s24 + $0x90] sm:$0xff] %v3303_v18  ;;  %v3090_v33 = vadd.f32 %v5589_v26, %v3051_v19  ;;  %v2408_v11 = vadd.f32 %v2351_v60, %v2047_v14  ;;  %v1992_v22 = vpop.f32.mrf.mxu1 }
 0x2c9   : > { %v2048_v17 = vadd.f32 %v1992_v22, %v4958_v25 }
 0x2ca   : > { %v3126_v49 = vsub.f32 0.0, %v3090_v33  ;;  %v2777_v9 = vadd.f32 %v5568_v39, %v2408_v11  ;;  %v2958_v48 = vpop.f32.mrf.mxu0 }
 0x2cc   : > { %v4089_v62 = vpop.eup %4088  ;;  %v3183_v20 = vmul.f32 1.442695, %v3126_v49  ;;  %v3013_v4 = vadd.f32 %v2956_v51, %v2777_v9  ;;  %v2730_v42 = vpop.f32.mrf.mxu3 }
 0x2cd   : > { %v4091_v61 = vpop.eup %4090  ;;  %v3233_v1 = vadd.f32 1.0, %v4089_v62 }
 0x2ce   : > { %v3304_v44 = vmul.f32 %v4091_v61, %v3088_v10  ;;  %4092 = vpow2.f32 %v3183_v20  ;;  %v3052_v43 = vmul.f32 %v5581_v23, %v3013_v4 }
 0x2cf   : > { %4094 = vrcp.f32 %v3233_v1  ;;  %v2353_v21 = vpop.f32.mrf.mxu2 }
 0x2d0   : > { %3340 = vst [vmem:[%s5198_s24 + $0x98] sm:$0xff] %v3304_v44  ;;  %v3091_v31 = vadd.f32 %v5589_v26, %v3052_v43  ;;  %v2409_v37 = vadd.f32 %v2353_v21, %v2048_v17  ;;  %v1995_v39 = vpop.f32.mrf.mxu1 }
 0x2d1   : > { %v2049_v32 = vadd.f32 %v1995_v39, %v4967_v8 }
 0x2d2   : > { %v3127_v12 = vsub.f32 0.0, %v3091_v31  ;;  %v2778_v58 = vadd.f32 %v2722_v2, %v2409_v37  ;;  %v2961_v46 = vpop.f32.mrf.mxu0 }
 0x2d4   : > { %v4093_v16 = vpop.eup %4092  ;;  %v3185_v5 = vmul.f32 1.442695, %v3127_v12  ;;  %v3014_v6 = vadd.f32 %v2958_v48, %v2778_v58 }
 0x2d5   : > { %v4095_v10 = vpop.eup %4094  ;;  %v3234_v7 = vadd.f32 1.0, %v4093_v16 }
 0x2d6   : > { %v3305_v45 = vmul.f32 %v4095_v10, %v3089_v28  ;;  %4096 = vpow2.f32 %v3185_v5  ;;  %v3053_v25 = vmul.f32 %v5581_v23, %v3014_v6 }
 0x2d7   : > { %4098 = vrcp.f32 %v3234_v7  ;;  %v2356_v54 = vpop.f32.mrf.mxu2 }
 0x2d8   : > { %3341 = vst [vmem:[%s5198_s24 + $0xa0] sm:$0xff] %v3305_v45  ;;  %v3092_v27 = vadd.f32 %v5589_v26, %v3053_v25  ;;  %v2410_v34 = vadd.f32 %v2356_v54, %v2049_v32  ;;  %v1997_v2 = vpop.f32.mrf.mxu1 }
 0x2d9   : > { %v2050_v59 = vadd.f32 %v1997_v2, %v4980_v50 }
 0x2da   : > { %v3128_v0 = vsub.f32 0.0, %v3092_v27  ;;  %v2779_v24 = vadd.f32 %v2725_v38, %v2410_v34  ;;  %v2963_v40 = vpop.f32.mrf.mxu0  ;;  %v2732_v38 = vpop.f32.mrf.mxu3 }
 0x2dc   : > { %v4097_v13 = vpop.eup %4096  ;;  %v3187_v41 = vmul.f32 1.442695, %v3128_v0  ;;  %v3015_v28 = vadd.f32 %v2961_v46, %v2779_v24 }
 0x2dd   : > { %v4099_v36 = vpop.eup %4098  ;;  %v3235_v51 = vadd.f32 1.0, %v4097_v13 }
 0x2de   : > { %v3306_v57 = vmul.f32 %v4099_v36, %v3090_v33  ;;  %4100 = vpow2.f32 %v3187_v41  ;;  %v3054_v8 = vmul.f32 %v5581_v23, %v3015_v28 }
 0x2df   : > { %4102 = vrcp.f32 %v3235_v51  ;;  %v2358_v35 = vpop.f32.mrf.mxu2 }
 0x2e0   : > { %3342 = vst [vmem:[%s5198_s24 + $0xa8] sm:$0xff] %v3306_v57  ;;  %v3093_v30 = vadd.f32 %v5589_v26, %v3054_v8  ;;  %v2411_v47 = vadd.f32 %v2358_v35, %v2050_v59  ;;  %v2000_v18 = vpop.f32.mrf.mxu1 }
 0x2e1   : > { %v2051_v62 = vadd.f32 %v2000_v18, %v4989_v29 }
 0x2e2   : > { %v3129_v19 = vsub.f32 0.0, %v3093_v30  ;;  %v2780_v14 = vadd.f32 %v2727_v56, %v2411_v47  ;;  %v2966_v60 = vpop.f32.mrf.mxu0  ;;  %v2735_v17 = vpop.f32.mrf.mxu3 }
 0x2e4   : > { %v4101_v11 = vpop.eup %4100  ;;  %v3189_v22 = vmul.f32 1.442695, %v3129_v19  ;;  %v3016_v33 = vadd.f32 %v2963_v40, %v2780_v14 }
 0x2e5   : > { %v4103_v49 = vpop.eup %4102  ;;  %v3236_v9 = vadd.f32 1.0, %v4101_v11 }
 0x2e6   : > { %v3307_v48 = vmul.f32 %v4103_v49, %v3091_v31  ;;  %4104 = vpow2.f32 %v3189_v22  ;;  %v3055_v50 = vmul.f32 %v5581_v23, %v3016_v33 }
 0x2e7   : > { %4106 = vrcp.f32 %v3236_v9  ;;  %v2361_v20 = vpop.f32.mrf.mxu2 }
 0x2e8   : > { %3343 = vst [vmem:[%s5198_s24 + $0xb0] sm:$0xff] %v3307_v48  ;;  %v3094_v4 = vadd.f32 %v5589_v26, %v3055_v50  ;;  %v2412_v61 = vadd.f32 %v2361_v20, %v2051_v62  ;;  %v2002_v1 = vpop.f32.mrf.mxu1 }
 0x2e9   : > { %v2052_v46 = vadd.f32 %v2002_v1, %v5002_v15 }
 0x2ea   : > { %v3130_v56 = vsub.f32 0.0, %v3094_v4  ;;  %v2781_v44 = vadd.f32 %v2730_v42, %v2412_v61  ;;  %v2968_v43 = vpop.f32.mrf.mxu0  ;;  %v2737_v2 = vpop.f32.mrf.mxu3 }
 0x2ec   : > { %v4105_v21 = vpop.eup %4104  ;;  %v3191_v37 = vmul.f32 1.442695, %v3130_v56  ;;  %v3017_v31 = vadd.f32 %v2966_v60, %v2781_v44 }
 0x2ed   : > { %v4107_v39 = vpop.eup %4106  ;;  %v3237_v12 = vadd.f32 1.0, %v4105_v21 }
 0x2ee   : > { %v3308_v58 = vmul.f32 %v4107_v39, %v3092_v27  ;;  %4108 = vpow2.f32 %v3191_v37  ;;  %v3056_v29 = vmul.f32 %v5581_v23, %v3017_v31 }
 0x2ef   : > { %4110 = vrcp.f32 %v3237_v12  ;;  %v2363_v16 = vpop.f32.mrf.mxu2 }
 0x2f0   : > { %3344 = vst [vmem:[%s5198_s24 + $0xb8] sm:$0xff] %v3308_v58  ;;  %v3095_v5 = vadd.f32 %v5589_v26, %v3056_v29  ;;  %v2413_v6 = vadd.f32 %v2363_v16, %v2052_v46  ;;  %v2005_v10 = vpop.f32.mrf.mxu1 }
 0x2f1   : > { %v2053_v24 = vadd.f32 %v2005_v10, %v5011_v52 }
 0x2f2   : > { %v3131_v7 = vsub.f32 0.0, %v3095_v5  ;;  %v2782_v45 = vadd.f32 %v2732_v38, %v2413_v6  ;;  %v2971_v25 = vpop.f32.mrf.mxu0  ;;  %v2740_v14 = vpop.f32.mrf.mxu3 }
 0x2f4   : > { %v4109_v32 = vpop.eup %4108  ;;  %v3193_v54 = vmul.f32 1.442695, %v3131_v7  ;;  %v3018_v42 = vadd.f32 %v2968_v43, %v2782_v45 }
 0x2f5   : > { %v4111_v27 = vpop.eup %4110  ;;  %v3238_v34 = vadd.f32 1.0, %v4109_v32 }
 0x2f6   : > { %v3309_v0 = vmul.f32 %v4111_v27, %v3093_v30  ;;  %4112 = vpow2.f32 %v3193_v54  ;;  %v3057_v15 = vmul.f32 %v5581_v23, %v3018_v42 }
 0x2f7   : > { %4114 = vrcp.f32 %v3238_v34  ;;  %v2366_v40 = vpop.f32.mrf.mxu2 }
 0x2f8   : > { %3345 = vst [vmem:[%s5198_s24 + $0xc0] sm:$0xff] %v3309_v0  ;;  %v3096_v13 = vadd.f32 %v5589_v26, %v3057_v15  ;;  %v2414_v41 = vadd.f32 %v2366_v40, %v2053_v24  ;;  %v2007_v28 = vpop.f32.mrf.mxu1 }
 0x2f9   : > { %v2054_v38 = vadd.f32 %v2007_v28, %v5024_v55 }
 0x2fa   : > { %v3132_v36 = vsub.f32 0.0, %v3096_v13  ;;  %v2783_v51 = vadd.f32 %v2735_v17, %v2414_v41  ;;  %v2973_v57 = vpop.f32.mrf.mxu0  ;;  %v2742_v21 = vpop.f32.mrf.mxu3 }
 0x2fc   : > { %v4113_v8 = vpop.eup %4112  ;;  %v3195_v59 = vmul.f32 1.442695, %v3132_v36  ;;  %v3019_v35 = vadd.f32 %v2971_v25, %v2783_v51 }
 0x2fd   : > { %v4115_v30 = vpop.eup %4114  ;;  %v3239_v47 = vadd.f32 1.0, %v4113_v8 }
 0x2fe   : > { %v3310_v18 = vmul.f32 %v4115_v30, %v3094_v4  ;;  %4116 = vpow2.f32 %v3195_v59  ;;  %v3058_v52 = vmul.f32 %v5581_v23, %v3019_v35 }
 0x2ff   : > { %4118 = vrcp.f32 %v3239_v47  ;;  %v2368_v19 = vpop.f32.mrf.mxu2 }
 0x300   : > { %3346 = vst [vmem:[%s5198_s24 + $0xc8] sm:$0xff] %v3310_v18  ;;  %v3097_v60 = vadd.f32 %v5589_v26, %v3058_v52  ;;  %v2415_v11 = vadd.f32 %v2368_v19, %v2054_v38  ;;  %v2010_v22 = vpop.f32.mrf.mxu1  ;;  %v5729_v19 = vld [vmem:[#allocation11_spill] sm:$0xff] }
 0x301   : > { %v2055_v1 = vadd.f32 %v2010_v22, %v5033_v3 }
 0x302   : > { %v3133_v33 = vsub.f32 0.0, %v3097_v60  ;;  %v2784_v49 = vadd.f32 %v2737_v2, %v2415_v11  ;;  %v2976_v9 = vpop.f32.mrf.mxu0  ;;  %v2745_v42 = vpop.f32.mrf.mxu3 }
 0x304   : > { %v4117_v48 = vpop.eup %4116  ;;  %v3197_v50 = vmul.f32 1.442695, %v3133_v33  ;;  %v3020_v62 = vadd.f32 %v2973_v57, %v2784_v49 }
 0x305   : > { %v4119_v20 = vpop.eup %4118  ;;  %v3240_v4 = vadd.f32 1.0, %v4117_v48 }
 0x306   : > { %v3311_v61 = vmul.f32 %v4119_v20, %v3095_v5  ;;  %4120 = vpow2.f32 %v3197_v50  ;;  %v3059_v55 = vmul.f32 %v5581_v23, %v3020_v62 }
 0x307   : > { %4122 = vrcp.f32 %v3240_v4  ;;  %v2371_v56 = vpop.f32.mrf.mxu2 }
 0x308   : > { %3347 = vst [vmem:[%s5198_s24 + $0xd0] sm:$0xff] %v3311_v61  ;;  %v3098_v44 = vadd.f32 %v5589_v26, %v3059_v55  ;;  %v2416_v43 = vadd.f32 %v2371_v56, %v2055_v1  ;;  %v2012_v17 = vpop.f32.mrf.mxu1  ;;  %v5730_v56 = vld [vmem:[#allocation12_spill] sm:$0xff] }
 0x309   : > { %v2056_v6 = vadd.f32 %v2012_v17, %v5046_v63 }
 0x30a   : > { %v3134_v37 = vsub.f32 0.0, %v3098_v44  ;;  %v2785_v31 = vadd.f32 %v2740_v14, %v2416_v43  ;;  %v2978_v39 = vpop.f32.mrf.mxu0  ;;  %v2747_v52 = vpop.f32.mrf.mxu3 }
 0x30c   : > { %v4121_v12 = vpop.eup %4120  ;;  %v3199_v58 = vmul.f32 1.442695, %v3134_v37  ;;  %v3021_v29 = vadd.f32 %v2976_v9, %v2785_v31 }
 0x30d   : > { %v4123_v46 = vpop.eup %4122  ;;  %v3241_v16 = vadd.f32 1.0, %v4121_v12 }
 0x30e   : > { %v3312_v5 = vmul.f32 %v4123_v46, %v3096_v13  ;;  %4124 = vpow2.f32 %v3199_v58  ;;  %v3060_v3 = vmul.f32 %v5581_v23, %v3021_v29 }
 0x30f   : > { %4126 = vrcp.f32 %v3241_v16  ;;  %v2373_v10 = vpop.f32.mrf.mxu2 }
 0x310   : > { %3348 = vst [vmem:[%s5198_s24 + $0xd8] sm:$0xff] %v3312_v5  ;;  %v3099_v7 = vadd.f32 %v5589_v26, %v3060_v3  ;;  %v2417_v45 = vadd.f32 %v2373_v10, %v2056_v6  ;;  %v2015_v25 = vpop.f32.mrf.mxu1 }
 0x311   : > { %v2057_v13 = vadd.f32 %v2015_v25, %v5055_v53 }
 0x312   : > { %v3135_v32 = vsub.f32 0.0, %v3099_v7  ;;  %v2786_v54 = vadd.f32 %v2742_v21, %v2417_v45  ;;  %v2981_v24 = vpop.f32.mrf.mxu0  ;;  %v2750_v43 = vpop.f32.mrf.mxu3 }
 0x314   : > { %v4125_v27 = vpop.eup %4124  ;;  %v3201_v34 = vmul.f32 1.442695, %v3135_v32  ;;  %v3022_v2 = vadd.f32 %v2978_v39, %v2786_v54 }
 0x315   : > { %v4127_v0 = vpop.eup %4126  ;;  %v3242_v15 = vadd.f32 1.0, %v4125_v27 }
 0x316   : > { %v3313_v40 = vmul.f32 %v4127_v0, %v3097_v60  ;;  %4128 = vpow2.f32 %v3201_v34  ;;  %v3061_v63 = vmul.f32 %v5581_v23, %v3022_v2 }
 0x317   : > { %4130 = vrcp.f32 %v3242_v15  ;;  %v2376_v41 = vpop.f32.mrf.mxu2 }
 0x318   : > { %3349 = vst [vmem:[%s5198_s24 + $0xe0] sm:$0xff] %v3313_v40  ;;  %v3100_v28 = vadd.f32 %v5589_v26, %v3061_v63  ;;  %v2418_v36 = vadd.f32 %v2376_v41, %v2057_v13  ;;  %v2017_v51 = vpop.f32.mrf.mxu1 }
 0x319   : > { %v2058_v14 = vadd.f32 %v2017_v51, %v5729_v19 }
 0x31a   : > { %v3136_v57 = vsub.f32 0.0, %v3100_v28  ;;  %v2787_v8 = vadd.f32 %v2745_v42, %v2418_v36  ;;  %v2983_v60 = vpop.f32.mrf.mxu0  ;;  %v2752_v42 = vpop.f32.mrf.mxu3 }
 0x31c   : > { %v4129_v59 = vpop.eup %4128  ;;  %v3203_v35 = vmul.f32 1.442695, %v3136_v57  ;;  %v3023_v30 = vadd.f32 %v2981_v24, %v2787_v8 }
 0x31d   : > { %v4131_v47 = vpop.eup %4130  ;;  %v3243_v18 = vadd.f32 1.0, %v4129_v59 }
 0x31e   : > { %v3314_v38 = vmul.f32 %v4131_v47, %v3098_v44  ;;  %4132 = vpow2.f32 %v3203_v35  ;;  %v3062_v53 = vmul.f32 %v5581_v23, %v3023_v30 }
 0x31f   : > { %4134 = vrcp.f32 %v3243_v18  ;;  %v2378_v11 = vpop.f32.mrf.mxu2 }
 0x320   : > { %3350 = vst [vmem:[%s5198_s24 + $0xe8] sm:$0xff] %v3314_v38  ;;  %v3101_v22 = vadd.f32 %v5589_v26, %v3062_v53  ;;  %v2419_v33 = vadd.f32 %v2378_v11, %v2058_v14  ;;  %v2020_v49 = vpop.f32.mrf.mxu1 }
 0x321   : > { %v2059_v44 = vadd.f32 %v2020_v49, %v5730_v56 }
 0x322   : > { %v3137_v9 = vsub.f32 0.0, %v3101_v22  ;;  %v2788_v48 = vadd.f32 %v2747_v52, %v2419_v33  ;;  %v2986_v31 = vpop.f32.mrf.mxu0 }
 0x324   : > { %v4133_v50 = vpop.eup %4132  ;;  %v3205_v62 = vmul.f32 1.442695, %v3137_v9  ;;  %v3024_v20 = vadd.f32 %v2983_v60, %v2788_v48 }
 0x325   : > { %v4135_v4 = vpop.eup %4134  ;;  %v3244_v61 = vadd.f32 1.0, %v4133_v50 }
 0x326   : > { %v3315_v55 = vmul.f32 %v4135_v4, %v3099_v7  ;;  %4136 = vpow2.f32 %v3205_v62  ;;  %v3063_v1 = vmul.f32 %v5581_v23, %v3024_v20  ;;  %v5731_v7 = vld [vmem:[#allocation5_spill] sm:$0xff] }
 0x327   : > { %4138 = vrcp.f32 %v3244_v61  ;;  %v2381_v17 = vpop.f32.mrf.mxu2 }
 0x328   : > { %3351 = vst [vmem:[%s5198_s24 + $0xf0] sm:$0xff] %v3315_v55  ;;  %v3102_v21 = vadd.f32 %v5589_v26, %v3063_v1  ;;  %v2420_v37 = vadd.f32 %v2381_v17, %v2059_v44  ;;  %v2022_v58 = vpop.f32.mrf.mxu1 }
 0x329   : > { %v2060_v45 = vadd.f32 %v2022_v58, %v5731_v7 }
 0x32a   : > { %v3138_v39 = vsub.f32 0.0, %v3102_v21  ;;  %v2789_v12 = vadd.f32 %v2750_v43, %v2420_v37  ;;  %v2988_v2 = vpop.f32.mrf.mxu0 }
 0x32c   : > { %v4137_v29 = vpop.eup %4136  ;;  %v3207_v46 = vmul.f32 1.442695, %v3138_v39  ;;  %v3025_v16 = vadd.f32 %v2986_v31, %v2789_v12 }
 0x32d   : > { %v4139_v5 = vpop.eup %4138  ;;  %v3245_v3 = vadd.f32 1.0, %v4137_v29 }
 0x32e   : > { %v3316_v6 = vmul.f32 %v4139_v5, %v3100_v28  ;;  %4140 = vpow2.f32 %v3207_v46  ;;  %v3064_v10 = vmul.f32 %v5581_v23, %v3025_v16 }
 0x32f   : > { %4142 = vrcp.f32 %v3245_v3  ;;  %v2383_v25 = vpop.f32.mrf.mxu2 }
 0x330   : > { %3352 = vst [vmem:[%s5198_s24 + $0xf8] sm:$0xff] %v3316_v6  ;;  %v3103_v32 = vadd.f32 %v5589_v26, %v3064_v10  ;;  %v2421_v54 = vadd.f32 %v2383_v25, %v2060_v45 }
 0x332   : > { %v3139_v27 = vsub.f32 0.0, %v3103_v32  ;;  %v2790_v34 = vadd.f32 %v2752_v42, %v2421_v54 }
 0x334   : > { %v4141_v0 = vpop.eup %4140  ;;  %v3209_v15 = vmul.f32 1.442695, %v3139_v27  ;;  %v3026_v24 = vadd.f32 %v2988_v2, %v2790_v34 }
 0x335   : > { %v4143_v40 = vpop.eup %4142  ;;  %v3246_v63 = vadd.f32 1.0, %v4141_v0 }
 0x336   : > { %v3317_v13 = vmul.f32 %v4143_v40, %v3101_v22  ;;  %4144 = vpow2.f32 %v3209_v15  ;;  %v3065_v41 = vmul.f32 %v5581_v23, %v3026_v24 }
 0x337   : > { %4146 = vrcp.f32 %v3246_v63 }
 0x338   : > { %3353 = vst [vmem:[%s5198_s24 + $0x100] sm:$0xff] %v3317_v13  ;;  %v3104_v28 = vadd.f32 %v5589_v26, %v3065_v41 }
 0x33a   : > { %v3140_v36 = vsub.f32 0.0, %v3104_v28 }
 0x33c   : > { %v4145_v51 = vpop.eup %4144  ;;  %v3211_v57 = vmul.f32 1.442695, %v3140_v36 }
 0x33d   : > { %v4147_v8 = vpop.eup %4146  ;;  %v3247_v59 = vadd.f32 1.0, %v4145_v51 }
 0x33e   : > { %v3318_v35 = vmul.f32 %v4147_v8, %v3102_v21  ;;  %4148 = vpow2.f32 %v3211_v57 }
 0x33f   : > { %4150 = vrcp.f32 %v3247_v59 }
 0x340   : > { %3354 = vst [vmem:[%s5198_s24 + $0x108] sm:$0xff] %v3318_v35 }
 0x344   : > { %v4149_v30 = vpop.eup %4148 }
 0x345   : > { %v4151_v23 = vpop.eup %4150  ;;  %v3248_v47 = vadd.f32 1.0, %v4149_v30 }
 0x346   : > { %v3319_v18 = vmul.f32 %v4151_v23, %v3103_v32 }
 0x347   : > { %4152 = vrcp.f32 %v3248_v47 }
 0x348   : > { %3355 = vst [vmem:[%s5198_s24 + $0x110] sm:$0xff] %v3319_v18 }
 0x34d   : > { %v4153_v26 = vpop.eup %4152 }
 0x34e   : > { %v3320_v52 = vmul.f32 %v4153_v26, %v3104_v28 }
 0x350   : > { %3356 = vst [vmem:[%s5198_s24 + $0x118] sm:$0xff] %v3320_v52 }
 0x351   : > { %4203 = shalt.err (!%p4200_p5)
}
 0x352   : > { %s4256_s14 = smov 128   ;;  %s4257_s24 = smov 8  }
 0x353   : > { %3951 = dma.vmem_to_hbm [thread:$0]  (%p4323_p4), %s3374_s9, 4608, %s3376_s10, %s3358_s18, %s4256_s14, %s4256_s14, %s4257_s24  }
 0x354 PF: > { %p3957_p6 = scmp.ge.s32.totalorder %s4254_s20, 2  ;;  %s3390_s30 = sand.u32 1, %s4234_s15  }
 0x355   : > { %s3391_s5 = scalar_lea.sflag [#allocation3], %s3390_s30 }
 0x356   : > { %p3954_p7 = pnand %p3957_p6, %p4330_p8 }
 0x358   : > { %p3955_p9 = pneg %p3954_p7 }
 0x35a   : > { %4229 = dma.done.wait (%p3955_p9), %s3391_s5, 4608  }
 0x35b   : > { %4231 = vsyncadd (%p3955_p9), %s3391_s5, 4294962688  ;;  %s17_s20 = sadd.s32 1, %s4254_s20   ;;  %s5732_s15 = smov %s4238_s16 }
 0x35c   : > { %p14_p10 = scmp.ge.s32.totalorder %s17_s20, 4   ;;  %s5733_s16 = smov %s4242_s17 }
 0x35d   : > { %s5734_s17 = smov %s4336_s28  ;;  %s5735_s18 = smov %s4250_s19 }
 0x35e   : > { %s5736_s19 = smov %s5738_s23  ;;  %16 = sbr.rel (!%p14_p10) target bundleno = 4 (0x4), region = 88 }
 0x363   :  { %3397 = vsyncpa [#allocation3], 1 }
 0x364   :  { %3399 = vsyncpa [#allocation3 + $0x1], 1 }

</bundles_post_ra>
